<compile_context>
chip_gen: v7x
topology: tpu7x:2x2x1
jax: 0.10.0
libtpu: 0.0.40
codegen_flags: <defaults>
</compile_context>

<pallas_src>
import functools

import jax
import jax.numpy as jnp
from jax.experimental import pallas as pl
from jax.experimental.pallas import tpu as pltpu


def _round_up(x, m):
    return ((x + m - 1) // m) * m


def _soft_attention_kernel(h_ref, ww_ref, bw_ref, wv_ref, o_ref, *,
                           b_tile, seq, chunk_b):
    # h_ref:  (b_tile*seq, H)  rows [b*seq : (b+1)*seq] belong to batch element b
    # ww_ref: (H, H)           W_w^T (z = h @ ww + bw), activation dtype
    # bw_ref: (1, H)  f32
    # wv_ref: (1, H)  f32      row of W_v  (score = sum(z * wv, -1))
    # o_ref:  (b_tile, H)
    hidden = h_ref.shape[-1]
    rows_c = chunk_b * seq
    n_chunks = b_tile // chunk_b

    bw = bw_ref[...]                                     # (1, H) f32
    wv = wv_ref[...]                                     # (1, H) f32

    # Chunked body ("a few static chunks"): lets the scheduler overlap chunk
    # i's EUP/VPU/XLU post-processing with chunk i+1's MXU matmul, and keeps
    # every f32 temp chunk-sized instead of tile-sized.
    for c in range(n_chunks):
        r0 = c * rows_c
        hc = h_ref[pl.ds(r0, rows_c), :]                 # (rows_c, H), native dtype

        # z = tanh(h @ W_w^T + b_w): MXU GEMM with f32 accumulation.
        z = jnp.tanh(
            jnp.dot(hc, ww_ref[...], preferred_element_type=jnp.float32) + bw)

        # score = z . w_v : VPU multiply + lane reduction (no N=1 MXU matmul).
        s = jnp.sum(z * wv, axis=-1, keepdims=True)      # (rows_c, 1) f32
        s = s.reshape(chunk_b, seq, 1)

        # Per-batch-row softmax over the sequence axis (f32, max-subtracted).
        m = jnp.max(s, axis=1, keepdims=True)            # (chunk_b, 1, 1)
        e = jnp.exp(s - m)                               # (chunk_b, seq, 1)
        inv = pl.reciprocal(jnp.sum(e, axis=1, keepdims=True), approx=True)

        # Weighted sum with h kept in its native dtype (no f32 copy of h),
        # f32 accumulation; normalization deferred to the (chunk_b, H) result.
        h3 = hc.reshape(chunk_b, seq, hidden)
        acc = jnp.sum(h3 * e.astype(hc.dtype), axis=1, dtype=jnp.float32)
        out = acc * inv.reshape(chunk_b, 1)              # (chunk_b, H) f32

        o_ref[pl.ds(c * chunk_b, chunk_b), :] = out.astype(o_ref.dtype)


def soft_attention(h, w_weight, w_bias, v_weight, v_bias, *,
                   b_tile=None, chunk_b=None, single_buffer_weights=True):
    """h: (B, S, H). PyTorch Linear params: w_weight (H, H), w_bias (H,),
    v_weight (1, H), v_bias (1,). Output: (B, H) in h's dtype."""
    B, S, H = h.shape
    dtype = h.dtype
    itemsize = jnp.dtype(dtype).itemsize
    # Packed-sublane alignment for the activation dtype: f32:8, bf16:16, int8/fp8:32.
    align = {1: 32, 2: 16}.get(itemsize, 8)

    # --- generation-aware budgets -------------------------------------------
    try:
        vmem_phys = int(getattr(pltpu.get_tpu_info(), "vmem_capacity_bytes",
                                64 * 1024 * 1024))
    except Exception:  # conservative fallback if TPU info is unavailable
        vmem_phys = 64 * 1024 * 1024
    small_vmem = vmem_phys <= 64 * 1024 * 1024        # v7x-like (64 MiB, 2 TCs)
    rows_target = 256 if small_vmem else 1024         # GEMM rows per grid step
    h_buf_cap = (8 if small_vmem else 24) * 1024 * 1024   # double-buffered h cap
    vmem_budget = vmem_phys * 3 // 4                  # leave ~25% headroom

    # --- tile selection ------------------------------------------------------
    if chunk_b is None:
        chunk_b = pl.cdiv(256, S)                     # ~256 GEMM rows per chunk
    chunk_b = max(align, _round_up(int(chunk_b), align))

    if b_tile is None:
        b_tile = pl.cdiv(rows_target, S)
    b_tile = _round_up(max(chunk_b, int(b_tile)), chunk_b)

    b_cap = _round_up(B, chunk_b)
    b_tile = min(b_tile, b_cap)
    if small_vmem and b_cap >= 2 * chunk_b:
        # v7x: keep >= 2 grid steps so the "parallel" axis shards over both TCs.
        b_tile = min(b_tile, _round_up(pl.cdiv(B, 2), chunk_b))
    while b_tile > chunk_b and 2 * b_tile * S * H * itemsize > h_buf_cap:
        b_tile -= chunk_b

    def _vmem_est(bt, wbuf):
        return (2 * bt * S * H * itemsize             # h blocks (double-buffered)
                + 2 * bt * H * itemsize               # out blocks (double-buffered)
                + wbuf * (H * H * itemsize + 2 * H * 4)   # W_w^T + b_w + w_v
                + 4 * chunk_b * S * H * 4)            # f32 per-chunk temps

    wbuf0 = 1 if single_buffer_weights else 2
    while b_tile > chunk_b and _vmem_est(b_tile, wbuf0) > vmem_budget:
        b_tile -= chunk_b

    # Prefer a b_tile that divides B exactly (skips the ragged tail) if one
    # exists close to the target.
    if B >= b_tile and B % b_tile != 0:
        for cand in range(b_tile, chunk_b - 1, -chunk_b):
            if B % cand == 0 and 2 * cand >= b_tile:
                b_tile = cand
                break

    grid_b = pl.cdiv(B, b_tile)
    rows = b_tile * S

    # Weights in the activation dtype for the MXU; bias / v-row stay f32 for
    # the post-matmul math (v5e-safe).
    ww = jnp.asarray(w_weight).astype(dtype).T                # (H, H): z = h @ ww + bw
    bw = jnp.asarray(w_bias, jnp.float32).reshape(1, H)       # (1, H)
    wv = jnp.asarray(v_weight, jnp.float32).reshape(1, H)     # (1, H)
    # v_bias intentionally unused: softmax(score + c) == softmax(score).

    if B < b_tile:
        # Tiny batch: cheap zero-pad (< chunk_b batch rows).
        h2d = jnp.pad(h.reshape(B * S, H), ((0, (b_tile - B) * S), (0, 0)))
    else:
        # No HBM pad copy: the last grid step may read a ragged (partial)
        # input block; garbage rows only feed their own output rows, which
        # land past row B of the padded output and are cropped below.
        h2d = h.reshape(B * S, H)

    n_rows = grid_b * rows
    cost = pl.CostEstimate(
        flops=2 * n_rows * H * H + 4 * n_rows * H,
        transcendentals=n_rows * (H + 1),
        bytes_accessed=(B * S * H * itemsize + H * H * itemsize + 2 * H * 4
                        + grid_b * b_tile * H * itemsize),
    )
    kernel = functools.partial(_soft_attention_kernel,
                               b_tile=b_tile, seq=S, chunk_b=chunk_b)

    def _call(single_buf):
        # Single-buffer the grid-invariant operands (index_map is constant):
        # saves H*H*itemsize of VMEM with zero pipelining cost.
        wmode = ({"pipeline_mode": pl.Buffered(buffer_count=1)}
                 if single_buf else {})
        est = _vmem_est(b_tile, 1 if single_buf else 2)
        vmem_limit = int(max(32 * 1024 * 1024,
                             min(vmem_budget, int(1.25 * est) + (2 << 20))))
        grid_spec = pltpu.PrefetchScalarGridSpec(
            num_scalar_prefetch=0,
            grid=(grid_b,),
            in_specs=[
                pl.BlockSpec((rows, H), lambda b: (b, 0)),          # h row slab
                pl.BlockSpec((H, H), lambda b: (0, 0), **wmode),    # W_w^T (invariant)
                pl.BlockSpec((1, H), lambda b: (0, 0), **wmode),    # b_w
                pl.BlockSpec((1, H), lambda b: (0, 0), **wmode),    # w_v row
            ],
            out_specs=pl.BlockSpec((b_tile, H), lambda b: (b, 0)),
        )
        return pl.pallas_call(
            kernel,
            out_shape=jax.ShapeDtypeStruct((grid_b * b_tile, H), dtype),
            grid_spec=grid_spec,
            compiler_params=pltpu.CompilerParams(
                dimension_semantics=("parallel",),
                vmem_limit_bytes=vmem_limit,
            ),
            cost_estimate=cost,
        )(h2d, ww, bw, wv)

    try:
        out = _call(single_buffer_weights)
    except Exception:
        if not single_buffer_weights:
            raise
        out = _call(False)   # fall back to default double-buffered weights
    return out[:B]


def soft_attention_ref(h, w_weight, w_bias, v_weight, v_bias):
    """Pure-JAX reference matching the PyTorch forward (f32)."""
    h = jnp.asarray(h, jnp.float32)
    z = jnp.tanh(jnp.einsum("bsh,oh->bso", h, w_weight) + w_bias)
    score = (jnp.einsum("bsh,oh->bso", z, v_weight) + v_bias)[..., 0]   # (B, S)
    attn = jax.nn.softmax(score, axis=1)[..., None]                     # (B, S, 1)
    return jnp.sum(h * attn, axis=1)                                    # (B, H)


if __name__ == "__main__":
    key = jax.random.PRNGKey(0)

    # Small shapes consistent with the module: batch=2, seq=8, hidden=32.
    B, S, H = 2, 8, 32
    k_h, k_ww, k_bw, k_wv, k_bv = jax.random.split(key, 5)
    h = jax.random.normal(k_h, (B, S, H), dtype=jnp.float32)
    # PyTorch Linear shapes: weight (out, in), bias (out,)
    w_weight = jax.random.normal(k_ww, (H, H), dtype=jnp.float32) * 0.1
    w_bias = jax.random.normal(k_bw, (H,), dtype=jnp.float32) * 0.1
    v_weight = jax.random.normal(k_wv, (1, H), dtype=jnp.float32) * 0.1
    v_bias = jax.random.normal(k_bv, (1,), dtype=jnp.float32) * 0.1

    ref = soft_attention_ref(h, w_weight, w_bias, v_weight, v_bias)

    # f32 path (tolerance covers MXU default f32 precision + approx reciprocal).
    out_f32 = jax.block_until_ready(
        soft_attention(h, w_weight, w_bias, v_weight, v_bias))
    assert out_f32.shape == (B, H)
    err = float(jnp.max(jnp.abs(out_f32 - ref)))
    assert jnp.allclose(out_f32, ref, atol=2e-2, rtol=2e-2), f"f32 max err {err}"

    # bf16 activation path (production config): h and W_w in bf16 on the MXU,
    # all post-matmul math in f32 inside the kernel.
    out_bf16 = jax.block_until_ready(
        soft_attention(h.astype(jnp.bfloat16), w_weight, w_bias,
                       v_weight, v_bias))
    assert out_bf16.shape == (B, H)
    err_bf16 = float(jnp.max(jnp.abs(out_bf16.astype(jnp.float32) - ref)))
    assert jnp.allclose(out_bf16.astype(jnp.float32), ref,
                        atol=7e-2, rtol=7e-2), f"bf16 max err {err_bf16}"

    # Larger ragged batch: exercises grid > 1, the chunked body, and the
    # no-pad ragged last input block.
    B2, S2, H2 = 150, 8, 128
    k2h, k2w, k2b, k2v, _ = jax.random.split(jax.random.PRNGKey(1), 5)
    h2 = jax.random.normal(k2h, (B2, S2, H2), dtype=jnp.float32)
    w2 = jax.random.normal(k2w, (H2, H2), dtype=jnp.float32) * 0.05
    b2 = jax.random.normal(k2b, (H2,), dtype=jnp.float32) * 0.05
    v2 = jax.random.normal(k2v, (1, H2), dtype=jnp.float32) * 0.05
    vb2 = jnp.zeros((1,), jnp.float32)

    ref2 = soft_attention_ref(h2, w2, b2, v2, vb2)
    out2 = jax.block_until_ready(soft_attention(h2, w2, b2, v2, vb2))
    assert out2.shape == (B2, H2)
    err2 = float(jnp.max(jnp.abs(out2 - ref2)))
    assert jnp.allclose(out2, ref2, atol=2e-2, rtol=2e-2), f"ragged max err {err2}"

    print("KERNEL_OK")
</pallas_src>

<mosaic_0001>
module attributes {stable_mosaic.version = 11 : i64} {
  func.func @_soft_attention_kernel(%arg0: i32, %arg1: memref<256x32xf32, #tpu.memory_space<vmem>>, %arg2: memref<32x32xf32, #tpu.memory_space<vmem>>, %arg3: memref<1x32xf32, #tpu.memory_space<vmem>>, %arg4: memref<1x32xf32, #tpu.memory_space<vmem>>, %arg5: memref<32x32xf32, #tpu.memory_space<vmem>>) attributes {dimension_semantics = [#tpu.dimension_semantics<parallel>], iteration_bounds = array<i64: 1>, scalar_prefetch = 0 : i64, scratch_operands = 0 : i64, tpu.core_type = #tpu.core_type<tc>, window_params = [{transform_indices = @transform_0, window_bounds = array<i64: 256, 32>}, {pipeline_mode = #tpu.pipeline_mode<synchronous>, transform_indices = @transform_1, window_bounds = array<i64: 32, 32>}, {pipeline_mode = #tpu.pipeline_mode<synchronous>, transform_indices = @transform_2, window_bounds = array<i64: 1, 32>}, {pipeline_mode = #tpu.pipeline_mode<synchronous>, transform_indices = @transform_3, window_bounds = array<i64: 1, 32>}, {transform_indices = @transform_4, window_bounds = array<i64: 32, 32>}]} {
    %c0 = arith.constant 0 : index
    %c0_0 = arith.constant 0 : index
    %0 = vector.load %arg3[%c0, %c0_0] : memref<1x32xf32, #tpu.memory_space<vmem>>, vector<1x32xf32>
    %c0_1 = arith.constant 0 : index
    %c0_2 = arith.constant 0 : index
    %1 = vector.load %arg4[%c0_1, %c0_2] : memref<1x32xf32, #tpu.memory_space<vmem>>, vector<1x32xf32>
    %c0_3 = arith.constant 0 : index
    %c0_4 = arith.constant 0 : index
    %2 = vector.load %arg1[%c0_3, %c0_4] : memref<256x32xf32, #tpu.memory_space<vmem>>, vector<256x32xf32>
    %c0_5 = arith.constant 0 : index
    %c0_6 = arith.constant 0 : index
    %3 = vector.load %arg2[%c0_5, %c0_6] : memref<32x32xf32, #tpu.memory_space<vmem>>, vector<32x32xf32>
    %cst = arith.constant dense<0.000000e+00> : vector<256x32xf32>
    %4 = tpu.matmul %2, %3, %cst {dimension_numbers = #tpu.dot_dimension_numbers<[1], [0], [0], [1], [0, 0, 1, 1], [], []>} : vector<256x32xf32>, vector<32x32xf32>, vector<256x32xf32> -> vector<256x32xf32>
    %5 = vector.broadcast %0 : vector<1x32xf32> to vector<256x32xf32>
    %6 = arith.addf %4, %5 : vector<256x32xf32>
    %7 = math.tanh %6 : vector<256x32xf32>
    %8 = vector.broadcast %1 : vector<1x32xf32> to vector<256x32xf32>
    %9 = arith.mulf %7, %8 : vector<256x32xf32>
    %cst_7 = arith.constant dense<0.000000e+00> : vector<256xf32>
    %10 = vector.multi_reduction <add>, %9, %cst_7 [1] : vector<256x32xf32> to vector<256xf32>
    %11 = vector.shape_cast %10 : vector<256xf32> to vector<256x1xf32>
    %12 = vector.shape_cast %11 : vector<256x1xf32> to vector<32x8x1xf32>
    %cst_8 = arith.constant dense<0xFF800000> : vector<32x1xf32>
    %13 = vector.multi_reduction <maximumf>, %12, %cst_8 [1] : vector<32x8x1xf32> to vector<32x1xf32>
    %14 = vector.shape_cast %13 : vector<32x1xf32> to vector<32x1x1xf32>
    %15 = vector.broadcast %14 : vector<32x1x1xf32> to vector<32x8x1xf32>
    %16 = arith.subf %12, %15 : vector<32x8x1xf32>
    %17 = math.exp %16 : vector<32x8x1xf32>
    %cst_9 = arith.constant dense<0.000000e+00> : vector<32x1xf32>
    %18 = vector.multi_reduction <add>, %17, %cst_9 [1] : vector<32x8x1xf32> to vector<32x1xf32>
    %19 = vector.shape_cast %18 : vector<32x1xf32> to vector<32x1x1xf32>
    %20 = tpu.reciprocal %19 {approx = true} : vector<32x1x1xf32> -> vector<32x1x1xf32>
    %21 = vector.shape_cast %2 : vector<256x32xf32> to vector<32x8x32xf32>
    %22 = vector.broadcast %17 : vector<32x8x1xf32> to vector<32x8x32xf32>
    %23 = arith.mulf %21, %22 : vector<32x8x32xf32>
    %cst_10 = arith.constant dense<0.000000e+00> : vector<32x32xf32>
    %24 = vector.multi_reduction <add>, %23, %cst_10 [1] : vector<32x8x32xf32> to vector<32x32xf32>
    %25 = vector.shape_cast %20 : vector<32x1x1xf32> to vector<32x1xf32>
    %26 = vector.broadcast %25 : vector<32x1xf32> to vector<32x32xf32>
    %27 = arith.mulf %24, %26 : vector<32x32xf32>
    %c0_11 = arith.constant 0 : index
    %c0_12 = arith.constant 0 : index
    %28 = vector.load %arg5[%c0_11, %c0_12] : memref<32x32xf32, #tpu.memory_space<vmem>>, vector<32x32xf32>
    tpu.vector_store %arg5[%c0_11, %c0_12], %27 {strides = array<i32>} : memref<32x32xf32, #tpu.memory_space<vmem>>, vector<32x32xf32>,
    return
  }
  func.func @transform_0(%arg0: i32) -> (i32, i32) {
    %c0_i32 = arith.constant 0 : i32
    %c0_i32_0 = arith.constant 0 : i32
    return %arg0, %c0_i32 : i32, i32
  }
  func.func @transform_1(%arg0: i32) -> (i32, i32) {
    %c0_i32 = arith.constant 0 : i32
    %c0_i32_0 = arith.constant 0 : i32
    %c0_i32_1 = arith.constant 0 : i32
    return %c0_i32, %c0_i32_0 : i32, i32
  }
  func.func @transform_2(%arg0: i32) -> (i32, i32) {
    %c0_i32 = arith.constant 0 : i32
    %c0_i32_0 = arith.constant 0 : i32
    %c0_i32_1 = arith.constant 0 : i32
    return %c0_i32, %c0_i32_0 : i32, i32
  }
  func.func @transform_3(%arg0: i32) -> (i32, i32) {
    %c0_i32 = arith.constant 0 : i32
    %c0_i32_0 = arith.constant 0 : i32
    %c0_i32_1 = arith.constant 0 : i32
    return %c0_i32, %c0_i32_0 : i32, i32
  }
  func.func @transform_4(%arg0: i32) -> (i32, i32) {
    %c0_i32 = arith.constant 0 : i32
    %c0_i32_0 = arith.constant 0 : i32
    return %arg0, %c0_i32 : i32, i32
  }
}

module attributes {stable_mosaic.version = 11 : i64} {
  func.func @_soft_attention_kernel(%arg0: i32, %arg1: memref<256x32xf32, #tpu.memory_space<vmem>>, %arg2: memref<32x32xf32, #tpu.memory_space<vmem>>, %arg3: memref<1x32xf32, #tpu.memory_space<vmem>>, %arg4: memref<1x32xf32, #tpu.memory_space<vmem>>, %arg5: memref<32x32xf32, #tpu.memory_space<vmem>>) attributes {dimension_semantics = [#tpu.dimension_semantics<parallel>], iteration_bounds = array<i64: 1>, scalar_prefetch = 0 : i64, scratch_operands = 0 : i64, tpu.core_type = #tpu.core_type<tc>, window_params = [{transform_indices = @transform_0, window_bounds = array<i64: 256, 32>}, {pipeline_mode = #tpu.pipeline_mode<synchronous>, transform_indices = @transform_1, window_bounds = array<i64: 32, 32>}, {pipeline_mode = #tpu.pipeline_mode<synchronous>, transform_indices = @transform_2, window_bounds = array<i64: 1, 32>}, {pipeline_mode = #tpu.pipeline_mode<synchronous>, transform_indices = @transform_3, window_bounds = array<i64: 1, 32>}, {transform_indices = @transform_4, window_bounds = array<i64: 32, 32>}]} {
    %c0 = arith.constant 0 : index
    %c0_0 = arith.constant 0 : index
    %0 = vector.load %arg3[%c0, %c0_0] : memref<1x32xf32, #tpu.memory_space<vmem>>, vector<1x32xf32>
    %c0_1 = arith.constant 0 : index
    %c0_2 = arith.constant 0 : index
    %1 = vector.load %arg4[%c0_1, %c0_2] : memref<1x32xf32, #tpu.memory_space<vmem>>, vector<1x32xf32>
    %c0_3 = arith.constant 0 : index
    %c0_4 = arith.constant 0 : index
    %2 = vector.load %arg1[%c0_3, %c0_4] : memref<256x32xf32, #tpu.memory_space<vmem>>, vector<256x32xf32>
    %c0_5 = arith.constant 0 : index
    %c0_6 = arith.constant 0 : index
    %3 = vector.load %arg2[%c0_5, %c0_6] : memref<32x32xf32, #tpu.memory_space<vmem>>, vector<32x32xf32>
    %cst = arith.constant dense<0.000000e+00> : vector<256x32xf32>
    %4 = tpu.matmul %2, %3, %cst {dimension_numbers = #tpu.dot_dimension_numbers<[1], [0], [0], [1], [0, 0, 1, 1], [], []>} : vector<256x32xf32>, vector<32x32xf32>, vector<256x32xf32> -> vector<256x32xf32>
    %5 = vector.broadcast %0 : vector<1x32xf32> to vector<256x32xf32>
    %6 = arith.addf %4, %5 : vector<256x32xf32>
    %7 = math.tanh %6 : vector<256x32xf32>
    %8 = vector.broadcast %1 : vector<1x32xf32> to vector<256x32xf32>
    %9 = arith.mulf %7, %8 : vector<256x32xf32>
    %cst_7 = arith.constant dense<0.000000e+00> : vector<256xf32>
    %10 = vector.multi_reduction <add>, %9, %cst_7 [1] : vector<256x32xf32> to vector<256xf32>
    %11 = vector.shape_cast %10 : vector<256xf32> to vector<256x1xf32>
    %12 = vector.shape_cast %11 : vector<256x1xf32> to vector<32x8x1xf32>
    %cst_8 = arith.constant dense<0xFF800000> : vector<32x1xf32>
    %13 = vector.multi_reduction <maximumf>, %12, %cst_8 [1] : vector<32x8x1xf32> to vector<32x1xf32>
    %14 = vector.shape_cast %13 : vector<32x1xf32> to vector<32x1x1xf32>
    %15 = vector.broadcast %14 : vector<32x1x1xf32> to vector<32x8x1xf32>
    %16 = arith.subf %12, %15 : vector<32x8x1xf32>
    %17 = math.exp %16 : vector<32x8x1xf32>
    %cst_9 = arith.constant dense<0.000000e+00> : vector<32x1xf32>
    %18 = vector.multi_reduction <add>, %17, %cst_9 [1] : vector<32x8x1xf32> to vector<32x1xf32>
    %19 = vector.shape_cast %18 : vector<32x1xf32> to vector<32x1x1xf32>
    %20 = tpu.reciprocal %19 {approx = true} : vector<32x1x1xf32> -> vector<32x1x1xf32>
    %21 = vector.shape_cast %2 : vector<256x32xf32> to vector<32x8x32xf32>
    %22 = vector.broadcast %17 : vector<32x8x1xf32> to vector<32x8x32xf32>
    %23 = arith.mulf %21, %22 : vector<32x8x32xf32>
    %cst_10 = arith.constant dense<0.000000e+00> : vector<32x32xf32>
    %24 = vector.multi_reduction <add>, %23, %cst_10 [1] : vector<32x8x32xf32> to vector<32x32xf32>
    %25 = vector.shape_cast %20 : vector<32x1x1xf32> to vector<32x1xf32>
    %26 = vector.broadcast %25 : vector<32x1xf32> to vector<32x32xf32>
    %27 = arith.mulf %24, %26 : vector<32x32xf32>
    %c0_11 = arith.constant 0 : index
    %c0_12 = arith.constant 0 : index
    %28 = vector.load %arg5[%c0_11, %c0_12] : memref<32x32xf32, #tpu.memory_space<vmem>>, vector<32x32xf32>
    tpu.vector_store %arg5[%c0_11, %c0_12], %27 {strides = array<i32>} : memref<32x32xf32, #tpu.memory_space<vmem>>, vector<32x32xf32>,
    return
  }
  func.func @transform_0(%arg0: i32) -> (i32, i32) {
    %c0_i32 = arith.constant 0 : i32
    %c0_i32_0 = arith.constant 0 : i32
    return %arg0, %c0_i32 : i32, i32
  }
  func.func @transform_1(%arg0: i32) -> (i32, i32) {
    %c0_i32 = arith.constant 0 : i32
    %c0_i32_0 = arith.constant 0 : i32
    %c0_i32_1 = arith.constant 0 : i32
    return %c0_i32, %c0_i32_0 : i32, i32
  }
  func.func @transform_2(%arg0: i32) -> (i32, i32) {
    %c0_i32 = arith.constant 0 : i32
    %c0_i32_0 = arith.constant 0 : i32
    %c0_i32_1 = arith.constant 0 : i32
    return %c0_i32, %c0_i32_0 : i32, i32
  }
  func.func @transform_3(%arg0: i32) -> (i32, i32) {
    %c0_i32 = arith.constant 0 : i32
    %c0_i32_0 = arith.constant 0 : i32
    %c0_i32_1 = arith.constant 0 : i32
    return %c0_i32, %c0_i32_0 : i32, i32
  }
  func.func @transform_4(%arg0: i32) -> (i32, i32) {
    %c0_i32 = arith.constant 0 : i32
    %c0_i32_0 = arith.constant 0 : i32
    return %arg0, %c0_i32 : i32, i32
  }
}

</mosaic_0001>

<bundles_post_ra>
// kernel: tpu_custom_call.1
= control target key start
LH: loop header
LB: loop body
LE: loop exit
PB: predicated region body
PF: predicated region fallthrough
CT: control target
= control target key end

     0   :  { %vm62_vm0 = vcmask 261120   ;;  %s2722_s0 = inlined_call_operand.vmem [shape: f32[256,32], index: 0, kind: input, shape index: {}]   ;;  %s2723_s1 = inlined_call_operand.vmem [shape: f32[32,32], index: 1, kind: input, shape index: {}]   ;;  %s2724_s2 = inlined_call_operand.vmem [shape: f32[1,32], index: 2, kind: input, shape index: {}]   ;;  %s2725_s3 = inlined_call_operand.vmem [shape: f32[1,32], index: 3, kind: input, shape index: {}]   ;;  %s2726_s4 = inlined_call_operand.hbm [shape: f32[32,32], index: 4, kind: output, shape index: {}]  }
   0x1   :  { %v52_v0 = vld [vmem:[%s2723_s1] sm:$0xff]  ;;  %v53_v1 = vld [vmem:[%s2723_s1 + $0x8] sm:$0xff]  ;;  %v54_v2 = vld [vmem:[%s2723_s1 + $0x10] sm:$0xff] }
   0x2   :  { %v1567_v3 = vpack.c.bf16 %v53_v1, %v52_v0  ;;  %v55_v4 = vld [vmem:[%s2723_s1 + $0x18] sm:$0xff]  ;;  %v1865_v5 = vld [vmem:[%s2722_s0] sm:$0xff]  ;;  %v1879_v8 = vld [vmem:[%s2722_s0 + $0x8] sm:$0xff] }
   0x3   :  { %v1870_v6 = vld [vmem:[%s2722_s0 + $0x80] sm:$0xff]  ;;  %v1571_v7 = vpack.c.bf16 %v55_v4, %v54_v2  ;;  %1519 = vmatprep.mubr.msk.f32.mxu0 %vm62_vm0, %v1865_v5  ;;  %v1884_v9 = vld [vmem:[%s2722_s0 + $0x88] sm:$0xff]  ;;  %v22_v10 = vld [vmem:[%s2722_s0 + $0x10] sm:$0xff] }
   0x4   :  { %1543 = vmatprep.mubr.msk.f32.mxu1 %vm62_vm0, %v1870_v6  ;;  %1568 = vmatprep.subr.bf16.mxu0 %v1567_v3  ;;  %v38_v11 = vld [vmem:[%s2722_s0 + $0x90] sm:$0xff]  ;;  %v1900_v12 = vld [vmem:[%s2722_s0 + $0x18] sm:$0xff] }
   0x5   :  { %1575 = vmatprep.subr.bf16.mxu1 %v1567_v3  ;;  %1570 = vmatpush3.bf16.msra.mxu0 %v1567_v3  ;;  %v1906_v13 = vld [vmem:[%s2722_s0 + $0x98] sm:$0xff] }
   0x6   :  { %1577 = vmatpush3.bf16.msra.mxu1 %v1567_v3  ;;  %1572 = vmatprep.subr.bf16.mxu0 %v1571_v7 }
   0x7   :  { %1576 = vmatprep.subr.bf16.mxu1 %v1571_v7 }
   0x9   :  { %1574 = vmatpush3.bf16.msra.mxu0 %v1571_v7 }
   0xa   :  { %1578 = vmatpush3.bf16.msra.mxu1 %v1571_v7 }
   0xc   :  { %1520 = vmatmul.mubr.msk.f32.vlgmr.msra.gmra.mrb[0].mxu0 %vm62_vm0, %v1879_v8 }
   0xd   :  { %1544 = vmatmul.mubr.msk.f32.vlgmr.msra.gmra.mrb[0].mxu1 %vm62_vm0, %v1884_v9  ;;  %1522 = vmatprep.mubr.msk.f32.mxu0 %vm62_vm0, %v22_v10 }
   0xe   :  { %1546 = vmatprep.mubr.msk.f32.mxu1 %vm62_vm0, %v38_v11 }
   0xf   :  { %9 = vsyncpa [#allocation3], 0  ;;  %v24_v14 = vld [vmem:[%s2722_s0 + $0x20] sm:$0xff]  ;;  %v25_v16 = vld [vmem:[%s2722_s0 + $0x28] sm:$0xff]  ;;  %vm1382_vm1 = vcmask 1041409   ;;  %vm1384_vm2 = vcmask 1042434  }
  0x10   :  { %v40_v15 = vld [vmem:[%s2722_s0 + $0xa0] sm:$0xff]  ;;  %1523 = vmatmul.mubr.msk.f32.gmra.mrb[2].mxu0 %vm62_vm0, %v1900_v12  ;;  %v41_v17 = vld [vmem:[%s2722_s0 + $0xa8] sm:$0xff]  ;;  %v26_v18 = vld [vmem:[%s2722_s0 + $0x30] sm:$0xff]  ;;  %vm1386_vm3 = vcmask 1043459   ;;  %vm1388_vm4 = vcmask 1044484   ;;  %vm1390_vm5 = vcmask 1045509  }
  0x11   :  { %1547 = vmatmul.mubr.msk.f32.gmra.mrb[2].mxu1 %vm62_vm0, %v1906_v13  ;;  %1525 = vmatprep.mubr.msk.f32.mxu0 %vm62_vm0, %v24_v14  ;;  %v42_v19 = vld [vmem:[%s2722_s0 + $0xb0] sm:$0xff]  ;;  %v27_v20 = vld [vmem:[%s2722_s0 + $0x38] sm:$0xff]  ;;  %v28_v22 = vld [vmem:[%s2722_s0 + $0x40] sm:$0xff]  ;;  %vm1392_vm6 = vcmask 1046534   ;;  %vm1394_vm7 = vcmask 1047559  }
  0x12   :  { %1549 = vmatprep.mubr.msk.f32.mxu1 %vm62_vm0, %v40_v15  ;;  %v43_v21 = vld [vmem:[%s2722_s0 + $0xb8] sm:$0xff]  ;;  %v44_v23 = vld [vmem:[%s2722_s0 + $0xc0] sm:$0xff]  ;;  %v1954_v24 = vld [vmem:[%s2722_s0 + $0x48] sm:$0xff] }
  0x13   :  { %v1960_v25 = vld [vmem:[%s2722_s0 + $0xc8] sm:$0xff]  ;;  %v30_v26 = vld [vmem:[%s2722_s0 + $0x50] sm:$0xff]  ;;  %v31_v28 = vld [vmem:[%s2722_s0 + $0x58] sm:$0xff] }
  0x14   :  { %1526 = vmatmul.mubr.msk.f32.gmra.mrb[4].mxu0 %vm62_vm0, %v25_v16  ;;  %v46_v27 = vld [vmem:[%s2722_s0 + $0xd0] sm:$0xff]  ;;  %v47_v29 = vld [vmem:[%s2722_s0 + $0xd8] sm:$0xff]  ;;  %v32_v30 = vld [vmem:[%s2722_s0 + $0x60] sm:$0xff] }
  0x15   :  { %1550 = vmatmul.mubr.msk.f32.gmra.mrb[4].mxu1 %vm62_vm0, %v41_v17  ;;  %1528 = vmatprep.mubr.msk.f32.mxu0 %vm62_vm0, %v26_v18  ;;  %v48_v31 = vld [vmem:[%s2722_s0 + $0xe0] sm:$0xff]  ;;  %v33_v32 = vld [vmem:[%s2722_s0 + $0x68] sm:$0xff]  ;;  %v34_v34 = vld [vmem:[%s2722_s0 + $0x70] sm:$0xff] }
  0x16   :  { %1552 = vmatprep.mubr.msk.f32.mxu1 %vm62_vm0, %v42_v19  ;;  %v49_v33 = vld [vmem:[%s2722_s0 + $0xe8] sm:$0xff]  ;;  %v50_v35 = vld [vmem:[%s2722_s0 + $0xf0] sm:$0xff]  ;;  %v35_v36 = vld [vmem:[%s2722_s0 + $0x78] sm:$0xff] }
  0x17   :  { %v51_v37 = vld [vmem:[%s2722_s0 + $0xf8] sm:$0xff]  ;;  %v2017_v38 = vld [vmem:[%s2724_s2] ss:$0 sm:$0xff] }
  0x18   :  { %1529 = vmatmul.mubr.msk.f32.gmra.mrb[6].mxu0 %vm62_vm0, %v27_v20  ;;  %v2030_v57 = vld [vmem:[%s2725_s3] ss:$0 sm:$0xff] }
  0x19   :  { %1553 = vmatmul.mubr.msk.f32.gmra.mrb[6].mxu1 %vm62_vm0, %v43_v21  ;;  %1531 = vmatprep.mubr.msk.f32.mxu0 %vm62_vm0, %v28_v22 }
  0x1a   :  { %1555 = vmatprep.mubr.msk.f32.mxu1 %vm62_vm0, %v44_v23 }
  0x1c   :  { %1532 = vmatmul.mubr.msk.f32.gmra.mrb[8].mxu0 %vm62_vm0, %v1954_v24 }
  0x1d   :  { %1556 = vmatmul.mubr.msk.f32.gmra.mrb[8].mxu1 %vm62_vm0, %v1960_v25  ;;  %1534 = vmatprep.mubr.msk.f32.mxu0 %vm62_vm0, %v30_v26 }
  0x1e   :  { %1558 = vmatprep.mubr.msk.f32.mxu1 %vm62_vm0, %v46_v27 }
  0x20   :  { %1535 = vmatmul.mubr.msk.f32.gmra.mrb[10].mxu0 %vm62_vm0, %v31_v28 }
  0x21   :  { %1559 = vmatmul.mubr.msk.f32.gmra.mrb[10].mxu1 %vm62_vm0, %v47_v29  ;;  %1537 = vmatprep.mubr.msk.f32.mxu0 %vm62_vm0, %v32_v30 }
  0x22   :  { %1561 = vmatprep.mubr.msk.f32.mxu1 %vm62_vm0, %v48_v31 }
  0x24   :  { %1538 = vmatmul.mubr.msk.f32.gmra.mrb[12].mxu0 %vm62_vm0, %v33_v32 }
  0x25   :  { %1562 = vmatmul.mubr.msk.f32.gmra.mrb[12].mxu1 %vm62_vm0, %v49_v33  ;;  %1540 = vmatprep.mubr.msk.f32.mxu0 %vm62_vm0, %v34_v34 }
  0x26   :  { %1564 = vmatprep.mubr.msk.f32.mxu1 %vm62_vm0, %v50_v35 }
  0x28   :  { %1541 = vmatmul.mubr.msk.f32.gmra.mrb[14].mxu0 %vm62_vm0, %v35_v36 }
  0x29   :  { %1565 = vmatmul.mubr.msk.f32.gmra.mrb[14].mxu1 %vm62_vm0, %v51_v37 }
  0xdf   :  { %v1521_v39 = vpop.f32.mrb[0].mxu0 }
  0xe0   :  { %v1545_v40 = vpop.f32.mrb[0].mxu1  ;;  %v231_v41 = vadd.f32 %v1521_v39, %v2017_v38  ;;  %v225_v43 = vpop.f32.mrb[1].mxu0 }
  0xe1   :  { %v311_v42 = vadd.f32 %v1545_v40, %v2017_v38  ;;  %v305_v44 = vpop.f32.mrb[1].mxu1  ;;  %v226_v45 = vadd.f32 %v2017_v38, %v225_v43 }
  0xe2   :  { %1582 = vtanh.f32 %v231_v41  ;;  %v306_v46 = vadd.f32 %v2017_v38, %v305_v44 }
  0xe3   :  { %1584 = vtanh.f32 %v311_v42  ;;  %v1524_v47 = vpop.f32.mrb[2].mxu0 }
  0xe4   :  { %v1548_v48 = vpop.f32.mrb[2].mxu1  ;;  %1586 = vtanh.f32 %v226_v45  ;;  %v235_v49 = vpop.f32.mrb[3].mxu0  ;;  %v241_v51 = vadd.f32 %v1524_v47, %v2017_v38 }
  0xe5   :  { %v315_v50 = vpop.f32.mrb[3].mxu1  ;;  %1588 = vtanh.f32 %v306_v46  ;;  %v321_v56 = vadd.f32 %v1548_v48, %v2017_v38  ;;  %v236_v0 = vadd.f32 %v2017_v38, %v235_v49 }
  0xe6   :  { %1590 = vtanh.f32 %v241_v51  ;;  %v316_v20 = vadd.f32 %v2017_v38, %v315_v50 }
  0xe7   :  { %v1527_v52 = vpop.f32.mrb[4].mxu0  ;;  %1592 = vtanh.f32 %v321_v56 }
  0xe8   :  { %v1551_v53 = vpop.f32.mrb[4].mxu1  ;;  %v245_v54 = vpop.f32.mrb[5].mxu0  ;;  %1594 = vtanh.f32 %v236_v0  ;;  %v251_v32 = vadd.f32 %v1527_v52, %v2017_v38 }
  0xe9   :  { %v2024_v55 = vpop.f32.mrb[5].mxu1  ;;  %v246_v34 = vadd.f32 %v2017_v38, %v245_v54  ;;  %v331_v43 = vadd.f32 %v1551_v53, %v2017_v38 }
  0xeb   :  { %v2032_v58 = vpop.f32.mrb[6].mxu0 }
  0xec   :  { %v2034_v59 = vpop.f32.mrb[6].mxu1  ;;  %v1583_v60 = vpop.eup %1582 }
  0xed   :  { %v2036_v61 = vpop.f32.mrb[7].mxu0  ;;  %v2038_v62 = vpop.f32.mrb[7].mxu1  ;;  %v423_v1 = vmul.f32 %v1583_v60, %v2030_v57 }
  0xee   :  { %v1585_v63 = vpop.eup %1584 }
  0xef   :  { %v1587_v2 = vpop.eup %1586  ;;  %v439_v3 = vmul.f32 %v1585_v63, %v2030_v57  ;;  %v1533_v4 = vpop.f32.mrb[8].mxu0  ;;  %v457_v7 = vsel %vm62_vm0, %v423_v1, 0.0 }
  0xf0   :  { %v1557_v10 = vpop.f32.mrb[8].mxu1  ;;  %v422_v11 = vmul.f32 %v1587_v2, %v2030_v57  ;;  %v1589_v14 = vpop.eup %1588  ;;  %v271_v15 = vadd.f32 %v1533_v4, %v2017_v38  ;;  %458 = vadd.xlane.f32.xlu0 %v457_v7 }
  0xf1   :  { %v265_v16 = vpop.f32.mrb[9].mxu0  ;;  %v505_v17 = vsel %vm62_vm0, %v439_v3, 0.0  ;;  %v351_v18 = vadd.f32 %v1557_v10, %v2017_v38  ;;  %v2048_v19 = vpop.f32.mrb[9].mxu1  ;;  %v438_v23 = vmul.f32 %v1589_v14, %v2030_v57  ;;  %v326_v10 = vadd.f32 %v2017_v38, %v2024_v55 }
  0xf2   :  { %506 = vadd.xlane.f32.xlu1 %v505_v17  ;;  %1596 = vtanh.f32 %v271_v15  ;;  %v266_v21 = vadd.f32 %v2017_v38, %v265_v16  ;;  %v454_v22 = vsel %vm62_vm0, %v422_v11, 0.0  ;;  %v1591_v28 = vpop.eup %1590 }
  0xf3   :  { %v1536_v26 = vpop.f32.mrb[10].mxu0  ;;  %1598 = vtanh.f32 %v351_v18  ;;  %v1593_v33 = vpop.eup %1592  ;;  %v502_v35 = vsel %vm62_vm0, %v438_v23, 0.0  ;;  %v425_v36 = vmul.f32 %v1591_v28, %v2030_v57 }
  0xf4   :  { %v1560_v27 = vpop.f32.mrb[10].mxu1  ;;  %455 = vadd.xlane.f32.xlu0 %v454_v22  ;;  %v281_v29 = vadd.f32 %v1536_v26, %v2017_v38  ;;  %v275_v30 = vpop.f32.mrb[11].mxu0  ;;  %1600 = vtanh.f32 %v316_v20  ;;  %v441_v44 = vmul.f32 %v1593_v33, %v2030_v57  ;;  %v256_v26 = vadd.f32 %v2017_v38, %v2036_v61 }
  0xf5   :  { %v355_v31 = vpop.f32.mrb[11].mxu1  ;;  %1602 = vtanh.f32 %v266_v21  ;;  %v361_v40 = vadd.f32 %v1560_v27, %v2017_v38  ;;  %v1595_v45 = vpop.eup %1594  ;;  %v463_v46 = vsel %vm62_vm0, %v425_v36, 0.0  ;;  %v276_v56 = vadd.f32 %v2017_v38, %v275_v30 }
  0xf6   :  { %1604 = vtanh.f32 %v281_v29  ;;  %v511_v60 = vsel %vm62_vm0, %v441_v44, 0.0  ;;  %v424_v63 = vmul.f32 %v1595_v45, %v2030_v57  ;;  %v356_v15 = vadd.f32 %v2017_v38, %v355_v31 }
  0xf7   :  { %v1539_v37 = vpop.f32.mrb[12].mxu0  ;;  %1606 = vtanh.f32 %v251_v32  ;;  %v336_v61 = vadd.f32 %v2017_v38, %v2038_v62  ;;  %v346_v62 = vadd.f32 %v2017_v38, %v2048_v19 }
  0xf8   :  { %v1563_v39 = vpop.f32.mrb[12].mxu1  ;;  %503 = vadd.xlane.f32.xlu0 %v502_v35  ;;  %v2060_v41 = vpop.f32.mrb[13].mxu0  ;;  %1608 = vtanh.f32 %v246_v34  ;;  %v460_v16 = vsel %vm62_vm0, %v424_v63, 0.0  ;;  %v291_v21 = vadd.f32 %v1539_v37, %v2017_v38 }
  0xf9   :  { %v2062_v42 = vpop.f32.mrb[13].mxu1  ;;  %1610 = vtanh.f32 %v361_v40  ;;  %v371_v31 = vadd.f32 %v1563_v39, %v2017_v38 }
  0xfa   :  { %1612 = vtanh.f32 %v331_v43 }
  0xfb   :  { %v2067_v47 = vpop.f32.mrb[14].mxu0 }
  0xfc   :  { %v1566_v48 = vpop.f32.mrb[14].mxu1  ;;  %v1597_v49 = vpop.eup %1596  ;;  %464 = vadd.xlane.f32.xlu0 %v463_v46 }
  0xfd   :  { %v295_v50 = vpop.f32.mrb[15].mxu0  ;;  %v375_v51 = vpop.f32.mrb[15].mxu1  ;;  %v431_v52 = vmul.f32 %v1597_v49, %v2030_v57  ;;  %v381_v0 = vadd.f32 %v1566_v48, %v2017_v38  ;;  %v286_v48 = vadd.f32 %v2017_v38, %v2060_v41 }
  0xfe   :  { %v296_v53 = vadd.f32 %v2017_v38, %v295_v50  ;;  %v1599_v54 = vpop.eup %1598  ;;  %v376_v4 = vadd.f32 %v2017_v38, %v375_v51 }
  0xff   :  { %v1601_v1 = vpop.eup %1600  ;;  %v481_v2 = vsel %vm62_vm0, %v431_v52, 0.0  ;;  %v447_v3 = vmul.f32 %v1599_v54, %v2030_v57  ;;  %v261_v54 = vadd.f32 %v2032_v58, %v2017_v38  ;;  %v301_v58 = vadd.f32 %v2067_v47, %v2017_v38 }
 0x100   :  { %1614 = vtanh.f32 %v296_v53  ;;  %v1603_v7 = vpop.eup %1602  ;;  %482 = vadd.xlane.f32.xlu1 %v481_v2  ;;  %512 = vadd.xlane.f32.xlu0 %v511_v60  ;;  %v440_v18 = vmul.f32 %v1601_v1, %v2030_v57 }
 0x101   :  { %1616 = vtanh.f32 %v381_v0  ;;  %v529_v11 = vsel %vm62_vm0, %v447_v3, 0.0  ;;  %v1605_v14 = vpop.eup %1604  ;;  %v430_v17 = vmul.f32 %v1603_v7, %v2030_v57 }
 0x102   :  { %1618 = vtanh.f32 %v376_v4  ;;  %v1607_v20 = vpop.eup %1606  ;;  %v433_v55 = vmul.f32 %v1605_v14, %v2030_v57  ;;  %v508_v29 = vsel %vm62_vm0, %v440_v18, 0.0 }
 0x103   :  { %1620 = vtanh.f32 %v276_v56  ;;  %v1609_v22 = vpop.eup %1608  ;;  %v478_v28 = vsel %vm62_vm0, %v430_v17, 0.0  ;;  %v427_v30 = vmul.f32 %v1607_v20, %v2030_v57  ;;  %v366_v56 = vadd.f32 %v2017_v38, %v2062_v42 }
 0x104   :  { %530 = vadd.xlane.f32.xlu1 %v529_v11  ;;  %461 = vadd.xlane.f32.xlu0 %v460_v16  ;;  %1622 = vtanh.f32 %v326_v10  ;;  %v1611_v23 = vpop.eup %1610  ;;  %v487_v33 = vsel %vm62_vm0, %v433_v55, 0.0  ;;  %v426_v52 = vmul.f32 %v1609_v22, %v2030_v57  ;;  %v341_v42 = vadd.f32 %v2034_v59, %v2017_v38 }
 0x105   :  { %1624 = vtanh.f32 %v356_v15  ;;  %v1613_v27 = vpop.eup %1612  ;;  %v449_v34 = vmul.f32 %v1611_v23, %v2030_v57  ;;  %v469_v40 = vsel %vm62_vm0, %v427_v30, 0.0 }
 0x106   :  { %1626 = vtanh.f32 %v291_v21  ;;  %v443_v43 = vmul.f32 %v1613_v27, %v2030_v57  ;;  %v466_v60 = vsel %vm62_vm0, %v426_v52, 0.0 }
 0x107   :  { %1628 = vtanh.f32 %v256_v26  ;;  %v535_v46 = vsel %vm62_vm0, %v449_v34, 0.0 }
 0x108   :  { %479 = vadd.xlane.f32.xlu1 %v478_v28  ;;  %509 = vadd.xlane.f32.xlu0 %v508_v29  ;;  %1630 = vtanh.f32 %v371_v31  ;;  %v517_v50 = vsel %vm62_vm0, %v443_v43, 0.0 }
 0x109   :  { %1632 = vtanh.f32 %v336_v61 }
 0x10a   :  { %v1615_v32 = vpop.eup %1614  ;;  %1634 = vtanh.f32 %v346_v62 }
 0x10b   :  { %v1617_v35 = vpop.eup %1616  ;;  %v2098_v36 = vmul.f32 %v1615_v32, %v2030_v57  ;;  %1636 = vtanh.f32 %v286_v48 }
 0x10c   :  { %v1619_v37 = vpop.eup %1618  ;;  %v2103_v39 = vmul.f32 %v1617_v35, %v2030_v57  ;;  %488 = vadd.xlane.f32.xlu1 %v487_v33  ;;  %470 = vadd.xlane.f32.xlu0 %v469_v40  ;;  %1638 = vtanh.f32 %v261_v54 }
 0x10d   :  { %v1621_v44 = vpop.eup %1620  ;;  %v2106_v45 = vmul.f32 %v1619_v37, %v2030_v57  ;;  %1640 = vtanh.f32 %v366_v56  ;;  %v496_v37 = vsel %vm62_vm0, %v2098_v36, 0.0 }
 0x10e   :  { %v1623_v49 = vpop.eup %1622  ;;  %v432_v51 = vmul.f32 %v1621_v44, %v2030_v57  ;;  %1642 = vtanh.f32 %v301_v58  ;;  %v547_v43 = vsel %vm62_vm0, %v2103_v39, 0.0 }
 0x10f   :  { %v1625_v53 = vpop.eup %1624  ;;  %v442_v0 = vmul.f32 %v1623_v49, %v2030_v57  ;;  %1644 = vtanh.f32 %v341_v42  ;;  %v544_v40 = vsel %vm62_vm0, %v2106_v45, 0.0 }
 0x110   :  { %536 = vadd.xlane.f32.xlu1 %v535_v46  ;;  %518 = vadd.xlane.f32.xlu0 %v517_v50  ;;  %v1627_v19 = vpop.eup %1626  ;;  %v484_v41 = vsel %vm62_vm0, %v432_v51, 0.0  ;;  %v448_v63 = vmul.f32 %v1625_v53, %v2030_v57 }
 0x111   :  { %v1629_v1 = vpop.eup %1628  ;;  %v435_v2 = vmul.f32 %v1627_v19, %v2030_v57  ;;  %v514_v7 = vsel %vm62_vm0, %v442_v0, 0.0 }
 0x112   :  { %v1631_v3 = vpop.eup %1630  ;;  %v532_v4 = vsel %vm62_vm0, %v448_v63, 0.0  ;;  %v428_v10 = vmul.f32 %v1629_v1, %v2030_v57 }
 0x113   :  { %v1633_v11 = vpop.eup %1632  ;;  %v493_v47 = vsel %vm62_vm0, %v435_v2, 0.0  ;;  %v451_v14 = vmul.f32 %v1631_v3, %v2030_v57 }
 0x114   :  { %485 = vadd.xlane.f32.xlu1 %v484_v41  ;;  %467 = vadd.xlane.f32.xlu0 %v466_v60  ;;  %v1635_v15 = vpop.eup %1634  ;;  %v472_v16 = vsel %vm62_vm0, %v428_v10, 0.0  ;;  %v444_v38 = vmul.f32 %v1633_v11, %v2030_v57 }
 0x115   :  { %v1637_v59 = vpop.eup %1636  ;;  %v541_v17 = vsel %vm62_vm0, %v451_v14, 0.0  ;;  %v446_v22 = vmul.f32 %v1635_v15, %v2030_v57 }
 0x116   :  { %v1639_v18 = vpop.eup %1638  ;;  %v520_v20 = vsel %vm62_vm0, %v444_v38, 0.0  ;;  %v434_v21 = vmul.f32 %v1637_v59, %v2030_v57 }
 0x117   :  { %v1641_v55 = vpop.eup %1640  ;;  %v526_v27 = vsel %vm62_vm0, %v446_v22, 0.0  ;;  %v429_v29 = vmul.f32 %v1639_v18, %v2030_v57 }
 0x118   :  { %533 = vadd.xlane.f32.xlu1 %v532_v4  ;;  %515 = vadd.xlane.f32.xlu0 %v514_v7  ;;  %v1643_v23 = vpop.eup %1642  ;;  %v490_v26 = vsel %vm62_vm0, %v434_v21, 0.0  ;;  %v450_v28 = vmul.f32 %v1641_v55, %v2030_v57 }
 0x119   :  { %v1645_v30 = vpop.eup %1644  ;;  %v437_v31 = vmul.f32 %v1643_v23, %v2030_v57  ;;  %v475_v33 = vsel %vm62_vm0, %v429_v29, 0.0 }
 0x11a   :  { %v538_v32 = vsel %vm62_vm0, %v450_v28, 0.0  ;;  %v445_v34 = vmul.f32 %v1645_v30, %v2030_v57 }
 0x11b   :  { %v499_v35 = vsel %vm62_vm0, %v437_v31, 0.0 }
 0x11c   :  { %494 = vadd.xlane.f32.xlu1 %v493_v47  ;;  %473 = vadd.xlane.f32.xlu0 %v472_v16  ;;  %v523_v61 = vsel %vm62_vm0, %v445_v34, 0.0 }
 0x120   :  { %542 = vadd.xlane.f32.xlu1 %v541_v17  ;;  %521 = vadd.xlane.f32.xlu0 %v520_v20 }
 0x124   :  { %491 = vadd.xlane.f32.xlu1 %v490_v26  ;;  %527 = vadd.xlane.f32.xlu0 %v526_v27 }
 0x128   :  { %539 = vadd.xlane.f32.xlu1 %v538_v32  ;;  %476 = vadd.xlane.f32.xlu0 %v475_v33 }
 0x12c   :  { %500 = vadd.xlane.f32.xlu1 %v499_v35  ;;  %524 = vadd.xlane.f32.xlu0 %v523_v61 }
 0x130   :  { %497 = vadd.xlane.f32.xlu1 %v496_v37 }
 0x134   :  { %545 = vadd.xlane.f32.xlu1 %v544_v40 }
 0x138   :  { %548 = vadd.xlane.f32.xlu1 %v547_v43 }
 0x17d   :  { %v459_v57 = vpop.xlane.xlu0 %458 }
 0x17e   :  { %v556_v62 = vrot.slane %v459_v57, 4 }
 0x17f   :  { %v507_v44 = vpop.xlane.xlu1 %506 }
 0x180   :  { %v652_v46 = vrot.slane %v507_v44, 4  ;;  %v557_v48 = vmax.f32 %v459_v57, %v556_v62 }
 0x181   :  { %v456_v50 = vpop.xlane.xlu0 %455 }
 0x182   :  { %v653_v49 = vmax.f32 %v507_v44, %v652_v46  ;;  %v558_v51 = vrot.slane %v557_v48, 2  ;;  %v550_v52 = vrot.slane %v456_v50, 4 }
 0x184   :  { %v654_v53 = vrot.slane %v653_v49, 2  ;;  %v559_v36 = vmax.f32 %v557_v48, %v558_v51  ;;  %v551_v54 = vmax.f32 %v456_v50, %v550_v52 }
 0x185   :  { %v504_v56 = vpop.xlane.xlu0 %503 }
 0x186   :  { %v655_v19 = vmax.f32 %v653_v49, %v654_v53  ;;  %v560_v45 = vrot.slane %v559_v36, 1  ;;  %v552_v41 = vrot.slane %v551_v54, 2  ;;  %v646_v60 = vrot.slane %v504_v56, 4 }
 0x188   :  { %v656_v63 = vrot.slane %v655_v19, 1  ;;  %v561_v39 = vmax.f32 %v559_v36, %v560_v45  ;;  %v553_v0 = vmax.f32 %v551_v54, %v552_v41  ;;  %v647_v1 = vmax.f32 %v504_v56, %v646_v60 }
 0x189   :  { %v465_v2 = vpop.xlane.xlu0 %464 }
 0x18a   :  { %v657_v58 = vmax.f32 %v655_v19, %v656_v63  ;;  %v743_v3 = vsub.f32 %v459_v57, %v561_v39  ;;  %v554_v42 = vrot.slane %v553_v0, 1  ;;  %v648_v4 = vrot.slane %v647_v1, 2 }
 0x18b   :  { %v568_v7 = vrot.slane %v465_v2, 4 }
 0x18c   :  { %v759_v10 = vsub.f32 %v507_v44, %v657_v58  ;;  %v776_v11 = vmul.f32 1.442695, %v743_v3  ;;  %v555_v47 = vmax.f32 %v553_v0, %v554_v42  ;;  %v649_v14 = vmax.f32 %v647_v1, %v648_v4 }
 0x18d   :  { %v569_v15 = vmax.f32 %v465_v2, %v568_v7  ;;  %v2156_v38 = vpop.xlane.xlu1 %482  ;;  %v2158_v59 = vpop.xlane.xlu0 %512 }
 0x18e   :  { %v808_v16 = vmul.f32 1.442695, %v759_v10  ;;  %1646 = vpow2.f32 %v776_v11  ;;  %v742_v17 = vsub.f32 %v456_v50, %v555_v47  ;;  %v650_v18 = vrot.slane %v649_v14, 1 }
 0x18f   :  { %v570_v20 = vrot.slane %v569_v15, 2  ;;  %v604_v21 = vrot.slane %v2156_v38, 4  ;;  %v664_v22 = vrot.slane %v2158_v59, 4 }
 0x190   :  { %1648 = vpow2.f32 %v808_v16  ;;  %v774_v55 = vmul.f32 1.442695, %v742_v17  ;;  %v651_v23 = vmax.f32 %v649_v14, %v650_v18 }
 0x191   :  { %v571_v26 = vmax.f32 %v569_v15, %v570_v20  ;;  %v605_v27 = vmax.f32 %v2156_v38, %v604_v21  ;;  %v665_v28 = vmax.f32 %v2158_v59, %v664_v22  ;;  %v2164_v29 = vpop.xlane.xlu1 %530  ;;  %v2166_v30 = vpop.xlane.xlu0 %461 }
 0x192   :  { %1650 = vpow2.f32 %v774_v55  ;;  %v758_v31 = vsub.f32 %v504_v56, %v651_v23  ;;  %v700_v33 = vrot.slane %v2164_v29, 4  ;;  %v562_v61 = vrot.slane %v2166_v30, 4 }
 0x193   :  { %v572_v32 = vrot.slane %v571_v26, 1  ;;  %v606_v34 = vrot.slane %v605_v27, 2  ;;  %v666_v35 = vrot.slane %v665_v28, 2 }
 0x194   :  { %v806_v37 = vmul.f32 1.442695, %v758_v31  ;;  %v701_v43 = vmax.f32 %v2164_v29, %v700_v33  ;;  %v2172_v62 = vmax.f32 %v2166_v30, %v562_v61 }
 0x195   :  { %v573_v40 = vmax.f32 %v571_v26, %v572_v32  ;;  %v607_v57 = vmax.f32 %v605_v27, %v606_v34  ;;  %v667_v44 = vmax.f32 %v665_v28, %v666_v35  ;;  %v2174_v46 = vpop.xlane.xlu1 %479  ;;  %v2176_v48 = vpop.xlane.xlu0 %509 }
 0x196   :  { %1652 = vpow2.f32 %v806_v37  ;;  %v702_v50 = vrot.slane %v701_v43, 2  ;;  %v598_v51 = vrot.slane %v2174_v46, 4  ;;  %v564_v36 = vrot.slane %v2172_v62, 2 }
 0x197   :  { %v745_v49 = vsub.f32 %v465_v2, %v573_v40  ;;  %v608_v52 = vrot.slane %v607_v57, 1  ;;  %v668_v53 = vrot.slane %v667_v44, 1  ;;  %v658_v41 = vrot.slane %v2176_v48, 4 }
 0x198   :  { %v1647_v54 = vpop.eup %1646  ;;  %v703_v56 = vmax.f32 %v701_v43, %v702_v50  ;;  %v2181_v45 = vmax.f32 %v2174_v46, %v598_v51 }
 0x199   :  { %v780_v19 = vmul.f32 1.442695, %v745_v49  ;;  %v844_v63 = vrot.slane %v1647_v54, 4  ;;  %v1063_v39 = vmul.f32 %v1647_v54, %v1879_v8  ;;  %v609_v0 = vmax.f32 %v607_v57, %v608_v52 }
 0x19a   :  { %v1649_v60 = vpop.eup %1648  ;;  %v669_v1 = vmax.f32 %v667_v44, %v668_v53  ;;  %v704_v3 = vrot.slane %v703_v56, 1 }
 0x19b   :  { %v940_v58 = vrot.slane %v1649_v60, 4  ;;  %v1079_v2 = vmul.f32 %v1649_v60, %v1884_v9  ;;  %1654 = vpow2.f32 %v780_v19  ;;  %v845_v42 = vadd.f32 %v1647_v54, %v844_v63 }
 0x19c   :  { %v1101_v4 = vsel %vm62_vm0, %v1063_v39, 0.0  ;;  %v751_v7 = vsub.f32 %v2156_v38, %v609_v0  ;;  %v761_v10 = vsub.f32 %v2158_v59, %v669_v1  ;;  %v1651_v11 = vpop.eup %1650  ;;  %v2190_v8 = vmax.f32 %v703_v56, %v704_v3 }
 0x19d   :  { %v941_v47 = vadd.f32 %v1649_v60, %v940_v58  ;;  %v1213_v14 = vsel %vm62_vm0, %v1079_v2, 0.0  ;;  %v1102_v15 = vrot.slane %v1101_v4, 4  ;;  %v846_v17 = vrot.slane %v845_v42, 2 }
 0x19e   :  { %v1214_v16 = vrot.slane %v1213_v14, 4  ;;  %v838_v18 = vrot.slane %v1651_v11, 4  ;;  %v1062_v9 = vmul.f32 %v1651_v11, %v1865_v5  ;;  %v792_v22 = vmul.f32 1.442695, %v751_v7 }
 0x19f   :  { %v942_v20 = vrot.slane %v941_v47, 2  ;;  %v1103_v21 = vadd.f32 %v1102_v15, %v1101_v4  ;;  %v812_v55 = vmul.f32 1.442695, %v761_v10  ;;  %v847_v38 = vadd.f32 %v846_v17, %v845_v42 }
 0x1a0   :  { %v1215_v23 = vadd.f32 %v1214_v16, %v1213_v14  ;;  %v839_v26 = vadd.f32 %v1651_v11, %v838_v18  ;;  %v1094_v59 = vsel %vm62_vm0, %v1062_v9, 0.0  ;;  %v1653_v27 = vpop.eup %1652  ;;  %1656 = vpow2.f32 %v792_v22 }
 0x1a1   :  { %v943_v28 = vadd.f32 %v942_v20, %v941_v47  ;;  %v1104_v31 = vrot.slane %v1103_v21, 2  ;;  %v1095_v32 = vrot.slane %v1094_v59, 4  ;;  %v848_v34 = vrot.slane %v847_v38, 1 }
 0x1a2   :  { %v1216_v33 = vrot.slane %v1215_v23, 2  ;;  %v840_v35 = vrot.slane %v839_v26, 2  ;;  %v934_v61 = vrot.slane %v1653_v27, 4  ;;  %v1078_v43 = vmul.f32 %v1653_v27, %v1870_v6 }
 0x1a3   :  { %v944_v37 = vrot.slane %v943_v28, 1  ;;  %v1105_v5 = vadd.f32 %v1104_v31, %v1103_v21  ;;  %v1096_v40 = vadd.f32 %v1095_v32, %v1094_v59  ;;  %v849_v44 = vadd.f32 %v848_v34, %v847_v38  ;;  %v2218_v34 = vpop.xlane.xlu0 %470 }
 0x1a4   :  { %v1217_v57 = vadd.f32 %v1216_v33, %v1215_v23  ;;  %v841_v49 = vadd.f32 %v840_v35, %v839_v26  ;;  %v935_v50 = vadd.f32 %v1653_v27, %v934_v61  ;;  %v1206_v19 = vsel %vm62_vm0, %v1078_v43, 0.0 }
 0x1a5   :  { %v1655_v51 = vpop.eup %1654  ;;  %v945_v52 = vadd.f32 %v944_v37, %v943_v28  ;;  %v1106_v53 = vrot.slane %v1105_v5, 1  ;;  %v1097_v54 = vrot.slane %v1096_v40, 2  ;;  %1658 = vrcp.f32 %v849_v44 }
 0x1a6   :  { %v1218_v56 = vrot.slane %v1217_v57, 1  ;;  %v842_v60 = vrot.slane %v841_v49, 1  ;;  %v936_v63 = vrot.slane %v935_v50, 2  ;;  %v1207_v1 = vrot.slane %v1206_v19, 4 }
 0x1a7   :  { %1660 = vrcp.f32 %v945_v52  ;;  %v2196_v39 = vadd.f32 %v1106_v53, %v1105_v5  ;;  %v1098_v0 = vadd.f32 %v1097_v54, %v1096_v40  ;;  %v856_v3 = vrot.slane %v1655_v51, 4 }
 0x1a8   :  { %v2198_v6 = vadd.f32 %v1218_v56, %v1217_v57  ;;  %v843_v58 = vadd.f32 %v842_v60, %v841_v49  ;;  %v937_v2 = vadd.f32 %v936_v63, %v935_v50  ;;  %v1208_v4 = vadd.f32 %v1207_v1, %v1206_v19 }
 0x1a9   :  { %v1099_v42 = vrot.slane %v1098_v0, 1  ;;  %v1065_v7 = vmul.f32 %v1655_v51, %v1900_v12  ;;  %1662 = vpow2.f32 %v812_v55  ;;  %v857_v11 = vadd.f32 %v1655_v51, %v856_v3 }
 0x1aa   :  { %2727 = vst [vmem:[#allocation5_spill] sm:$0xff] %v2198_v6  ;;  %1664 = vrcp.f32 %v843_v58  ;;  %v938_v10 = vrot.slane %v937_v2, 1  ;;  %v767_v47 = vsub.f32 %v2164_v29, %v2190_v8  ;;  %v1657_v14 = vpop.eup %1656  ;;  %v1209_v16 = vrot.slane %v1208_v4, 2 }
 0x1ab   :  { %v2203_v15 = vadd.f32 %v1099_v42, %v1098_v0  ;;  %v1115_v17 = vsel %vm62_vm0, %v1065_v7, 0.0  ;;  %v565_v18 = vmax.f32 %v2172_v62, %v564_v36  ;;  %v858_v20 = vrot.slane %v857_v11, 2  ;;  %v2213_v62 = vpop.xlane.xlu1 %488 }
 0x1ac   :  { %v939_v9 = vadd.f32 %v938_v10, %v937_v2  ;;  %v1116_v12 = vrot.slane %v1115_v17, 4  ;;  %v892_v21 = vrot.slane %v1657_v14, 4  ;;  %v1210_v22 = vadd.f32 %v1209_v16, %v1208_v4 }
 0x1ad   :  { %v1071_v55 = vmul.f32 %v1657_v14, %v1954_v24  ;;  %v824_v23 = vmul.f32 1.442695, %v767_v47  ;;  %v566_v38 = vrot.slane %v565_v18, 1  ;;  %v859_v29 = vadd.f32 %v858_v20, %v857_v11 }
 0x1ae   :  { %1666 = vrcp.f32 %v939_v9  ;;  %v2210_v8 = vadd.f32 %v1116_v12, %v1115_v17  ;;  %v893_v26 = vadd.f32 %v1657_v14, %v892_v21  ;;  %v1211_v59 = vrot.slane %v1210_v22, 1 }
 0x1af   :  { %v1157_v27 = vsel %vm62_vm0, %v1071_v55, 0.0  ;;  %1668 = vpow2.f32 %v824_v23  ;;  %v567_v28 = vmax.f32 %v565_v18, %v566_v38  ;;  %v2215_v36 = vpop.eup %1658  ;;  %v860_v31 = vrot.slane %v859_v29, 1 }
 0x1b0   :  { %v894_v24 = vrot.slane %v893_v26, 2  ;;  %v1158_v33 = vrot.slane %v1157_v27, 4  ;;  %v2222_v61 = vadd.f32 %v1211_v59, %v1210_v22  ;;  %v600_v5 = vrot.slane %v2181_v45, 2 }
 0x1b1   :  { %v2220_v35 = vpop.eup %1660  ;;  %v744_v37 = vsub.f32 %v2166_v30, %v567_v28  ;;  %v659_v40 = vmax.f32 %v2176_v48, %v658_v41  ;;  %v861_v43 = vadd.f32 %v860_v31, %v859_v29  ;;  %v616_v49 = vrot.slane %v2213_v62, 4  ;;  %v2248_v28 = vpop.xlane.xlu1 %536 }
 0x1b2   :  { %2728 = vst [vmem:[#allocation6_spill] sm:$0xff] %v2220_v35  ;;  %2729 = vst [vmem:[#allocation7_spill] sm:$0xff] %v2222_v61  ;;  %v895_v57 = vadd.f32 %v894_v24, %v893_v26  ;;  %v1159_v44 = vadd.f32 %v1158_v33, %v1157_v27  ;;  %v601_v52 = vmax.f32 %v2181_v45, %v600_v5  ;;  %v580_v54 = vrot.slane %v2218_v34, 4  ;;  %v2250_v31 = vpop.xlane.xlu0 %518 }
 0x1b3   :  { %v1663_v50 = vpop.eup %1662  ;;  %v778_v51 = vmul.f32 1.442695, %v744_v37  ;;  %v660_v53 = vrot.slane %v659_v40, 2  ;;  %1670 = vrcp.f32 %v861_v43  ;;  %v617_v3 = vmax.f32 %v2213_v62, %v616_v49 }
 0x1b4   :  { %v2232_v19 = vpop.eup %1664  ;;  %v896_v30 = vrot.slane %v895_v57, 1  ;;  %v1160_v56 = vrot.slane %v1159_v44, 2  ;;  %v952_v60 = vrot.slane %v1663_v50, 4  ;;  %v1081_v41 = vmul.f32 %v1663_v50, %v1906_v13 }
 0x1b5   :  { %1672 = vpow2.f32 %v778_v51  ;;  %v602_v63 = vrot.slane %v601_v52, 1  ;;  %v661_v0 = vmax.f32 %v659_v40, %v660_v53  ;;  %v581_v7 = vmax.f32 %v2218_v34, %v580_v54  ;;  %v1774_v54 = vld [vmem:[%s2722_s0 + $0x10] sm:$0xff] }
 0x1b6   :  { %v897_v1 = vadd.f32 %v896_v30, %v895_v57  ;;  %v1161_v58 = vadd.f32 %v1160_v56, %v1159_v44  ;;  %v953_v2 = vadd.f32 %v1663_v50, %v952_v60  ;;  %v1227_v45 = vsel %vm62_vm0, %v1081_v41, 0.0 }
 0x1b7   :  { %v603_v42 = vmax.f32 %v601_v52, %v602_v63  ;;  %v662_v4 = vrot.slane %v661_v0, 1  ;;  %v1228_v13 = vrot.slane %v1227_v45, 4  ;;  %v618_v18 = vrot.slane %v617_v3, 2 }
 0x1b8   :  { %v2238_v10 = vpop.eup %1666  ;;  %1674 = vrcp.f32 %v897_v1  ;;  %v1162_v11 = vrot.slane %v1161_v58, 1  ;;  %v954_v47 = vrot.slane %v953_v2, 2  ;;  %v582_v9 = vrot.slane %v581_v7, 2 }
 0x1b9   :  { %2730 = vst [vmem:[#allocation8_spill] sm:$0xff] %v2238_v10  ;;  %v1669_v14 = vpop.eup %1668  ;;  %v750_v16 = vsub.f32 %v2174_v46, %v603_v42  ;;  %v663_v17 = vmax.f32 %v661_v0, %v662_v4  ;;  %v2243_v21 = vadd.f32 %v1228_v13, %v1227_v45  ;;  %v619_v29 = vmax.f32 %v617_v3, %v618_v18  ;;  %v2267_v13 = vpop.xlane.xlu1 %485 }
 0x1ba   :  { %v2241_v20 = vadd.f32 %v1162_v11, %v1161_v58  ;;  %v955_v12 = vadd.f32 %v954_v47, %v953_v2  ;;  %v988_v22 = vrot.slane %v1669_v14, 4  ;;  %v1087_v55 = vmul.f32 %v1669_v14, %v1960_v25 }
 0x1bb   :  { %v790_v23 = vmul.f32 1.442695, %v750_v16  ;;  %v760_v38 = vsub.f32 %v2176_v48, %v663_v17  ;;  %v583_v46 = vmax.f32 %v581_v7, %v582_v9  ;;  %v620_v37 = vrot.slane %v619_v29, 1 }
 0x1bc   :  { %v956_v26 = vrot.slane %v955_v12, 1  ;;  %v989_v27 = vadd.f32 %v1669_v14, %v988_v22  ;;  %v1269_v24 = vsel %vm62_vm0, %v1087_v55, 0.0  ;;  %v712_v49 = vrot.slane %v2248_v28, 4 }
 0x1bd   :  { %1676 = vpow2.f32 %v790_v23  ;;  %v810_v33 = vmul.f32 1.442695, %v760_v38  ;;  %v2253_v5 = vpop.eup %1670  ;;  %v1270_v48 = vrot.slane %v1269_v24, 4  ;;  %v584_v43 = vrot.slane %v583_v46, 1 }
 0x1be   :  { %v957_v25 = vadd.f32 %v956_v26, %v955_v12  ;;  %v990_v40 = vrot.slane %v989_v27, 2  ;;  %v621_v44 = vmax.f32 %v619_v29, %v620_v37  ;;  %v676_v50 = vrot.slane %v2250_v31, 4 }
 0x1bf   :  { %v1673_v57 = vpop.eup %1672  ;;  %1678 = vpow2.f32 %v810_v33  ;;  %v1271_v52 = vadd.f32 %v1270_v48, %v1269_v24  ;;  %v585_v60 = vmax.f32 %v583_v46, %v584_v43  ;;  %v713_v41 = vmax.f32 %v2248_v28, %v712_v49  ;;  %v1775_v24 = vld [vmem:[%s2722_s0 + $0x40] sm:$0xff] }
 0x1c0   :  { %1680 = vrcp.f32 %v957_v25  ;;  %v991_v51 = vadd.f32 %v990_v40, %v989_v27  ;;  %v850_v53 = vrot.slane %v1673_v57, 4  ;;  %v1064_v30 = vmul.f32 %v1774_v54, %v1673_v57 }
 0x1c1   :  { %v753_v56 = vsub.f32 %v2213_v62, %v621_v44  ;;  %v1272_v1 = vrot.slane %v1271_v52, 2  ;;  %v677_v2 = vmax.f32 %v2250_v31, %v676_v50  ;;  %v747_v42 = vsub.f32 %v2218_v34, %v585_v60 }
 0x1c2   :  { %v2262_v63 = vpop.eup %1674  ;;  %v992_v0 = vrot.slane %v991_v51, 1  ;;  %v851_v58 = vadd.f32 %v1673_v57, %v850_v53  ;;  %v1108_v3 = vsel %vm62_vm0, %v1064_v30, 0.0  ;;  %v714_v4 = vrot.slane %v713_v41, 2 }
 0x1c3   :  { %v796_v45 = vmul.f32 1.442695, %v753_v56  ;;  %v1273_v11 = vadd.f32 %v1272_v1, %v1271_v52  ;;  %v1109_v62 = vrot.slane %v1108_v3, 4  ;;  %v784_v14 = vmul.f32 1.442695, %v747_v42 }
 0x1c4   :  { %v993_v7 = vadd.f32 %v992_v0, %v991_v51  ;;  %v852_v47 = vrot.slane %v851_v58, 2  ;;  %v715_v16 = vmax.f32 %v713_v41, %v714_v4  ;;  %v678_v17 = vrot.slane %v677_v2, 2  ;;  %v1776_v51 = vld [vmem:[%s2722_s0 + $0x90] sm:$0xff]  ;;  %v2285_v41 = vpop.xlane.xlu0 %467 }
 0x1c5   :  { %1682 = vpow2.f32 %v796_v45  ;;  %v1274_v18 = vrot.slane %v1273_v11, 1  ;;  %v1110_v12 = vadd.f32 %v1109_v62, %v1108_v3  ;;  %v610_v34 = vrot.slane %v2267_v13, 4  ;;  %v2290_v62 = vpop.xlane.xlu1 %533 }
 0x1c6   :  { %1684 = vrcp.f32 %v993_v7  ;;  %v853_v9 = vadd.f32 %v852_v47, %v851_v58  ;;  %v716_v55 = vrot.slane %v715_v16, 1  ;;  %v679_v23 = vmax.f32 %v677_v2, %v678_v17 }
 0x1c7   :  { %v1677_v22 = vpop.eup %1676  ;;  %1686 = vpow2.f32 %v784_v14  ;;  %v2270_v38 = vadd.f32 %v1274_v18, %v1273_v11  ;;  %v1111_v26 = vrot.slane %v1110_v12, 2  ;;  %v611_v40 = vmax.f32 %v2267_v13, %v610_v34 }
 0x1c8   :  { %v854_v29 = vrot.slane %v853_v9, 1  ;;  %v886_v27 = vrot.slane %v1677_v22, 4  ;;  %v1070_v33 = vmul.f32 %v1775_v24, %v1677_v22  ;;  %v717_v37 = vmax.f32 %v715_v16, %v716_v55 }
 0x1c9   :  { %2731 = vst [vmem:[#allocation9_spill] sm:$0xff] %v2270_v38  ;;  %v1679_v46 = vpop.eup %1678  ;;  %v680_v25 = vrot.slane %v679_v23, 1  ;;  %v2278_v57 = vadd.f32 %v1111_v26, %v1110_v12  ;;  %v612_v2 = vrot.slane %v611_v40, 2  ;;  %v574_v47 = vrot.slane %v2285_v41, 4 }
 0x1ca   :  { %v2276_v48 = vpop.eup %1680  ;;  %v855_v43 = vadd.f32 %v854_v29, %v853_v9  ;;  %v887_v44 = vadd.f32 %v1677_v22, %v886_v27  ;;  %v946_v49 = vrot.slane %v1679_v46, 4  ;;  %v1150_v50 = vsel %vm62_vm0, %v1070_v33, 0.0  ;;  %v1777_v22 = vld [vmem:[%s2722_s0 + $0x58] sm:$0xff] }
 0x1cb   :  { %2732 = vst [vmem:[#allocation10_spill] sm:$0xff] %v2276_v48  ;;  %v1080_v52 = vmul.f32 %v1776_v51, %v1679_v46  ;;  %v769_v53 = vsub.f32 %v2248_v28, %v717_v37  ;;  %v681_v54 = vmax.f32 %v679_v23, %v680_v25  ;;  %v1151_v56 = vrot.slane %v1150_v50, 4  ;;  %v1778_v37 = vld [vmem:[%s2722_s0 + $0x28] sm:$0xff] }
 0x1cc   :  { %1688 = vrcp.f32 %v855_v43  ;;  %v888_v30 = vrot.slane %v887_v44, 2  ;;  %v947_v60 = vadd.f32 %v1679_v46, %v946_v49  ;;  %v613_v11 = vmax.f32 %v611_v40, %v612_v2 }
 0x1cd   :  { %v1220_v0 = vsel %vm62_vm0, %v1080_v52, 0.0  ;;  %v828_v1 = vmul.f32 1.442695, %v769_v53  ;;  %v763_v58 = vsub.f32 %v2250_v31, %v681_v54  ;;  %v1152_v45 = vadd.f32 %v1151_v56, %v1150_v50  ;;  %v2306_v53 = vpop.xlane.xlu0 %515  ;;  %v2308_v54 = vpop.xlane.xlu1 %494 }
 0x1ce   :  { %v889_v3 = vadd.f32 %v888_v30, %v887_v44  ;;  %v948_v42 = vrot.slane %v947_v60, 2  ;;  %v1221_v4 = vrot.slane %v1220_v0, 4  ;;  %v614_v23 = vrot.slane %v613_v11, 1 }
 0x1cf   :  { %v1683_v7 = vpop.eup %1682  ;;  %1690 = vpow2.f32 %v828_v1  ;;  %v816_v28 = vmul.f32 1.442695, %v763_v58  ;;  %v1153_v17 = vrot.slane %v1152_v45, 2 }
 0x1d0   :  { %v2292_v14 = vpop.eup %1684  ;;  %v890_v16 = vrot.slane %v889_v3, 1  ;;  %v949_v18 = vadd.f32 %v948_v42, %v947_v60  ;;  %v1222_v9 = vadd.f32 %v1221_v4, %v1220_v0  ;;  %v904_v12 = vrot.slane %v1683_v7, 4 }
 0x1d1   :  { %2733 = vst [vmem:[#allocation11_spill] sm:$0xff] %v2292_v14  ;;  %v1687_v31 = vpop.eup %1686  ;;  %v1073_v55 = vmul.f32 %v1777_v22, %v1683_v7  ;;  %1692 = vpow2.f32 %v816_v28  ;;  %v1154_v29 = vadd.f32 %v1153_v17, %v1152_v45  ;;  %v615_v0 = vmax.f32 %v613_v11, %v614_v23 }
 0x1d2   :  { %v891_v34 = vadd.f32 %v890_v16, %v889_v3  ;;  %v950_v26 = vrot.slane %v949_v18, 1  ;;  %v1223_v27 = vrot.slane %v1222_v9, 2  ;;  %v905_v46 = vadd.f32 %v1683_v7, %v904_v12 }
 0x1d3   :  { %v1171_v24 = vsel %vm62_vm0, %v1073_v55, 0.0  ;;  %v868_v33 = vrot.slane %v1687_v31, 4  ;;  %v1067_v25 = vmul.f32 %v1778_v37, %v1687_v31  ;;  %v1155_v40 = vrot.slane %v1154_v29, 1 }
 0x1d4   :  { %1694 = vrcp.f32 %v891_v34  ;;  %v951_v43 = vadd.f32 %v950_v26, %v949_v18  ;;  %v2301_v44 = vadd.f32 %v1223_v27, %v1222_v9  ;;  %v906_v49 = vrot.slane %v905_v46, 2 }
 0x1d5   :  { %v1172_v50 = vrot.slane %v1171_v24, 4  ;;  %v869_v51 = vadd.f32 %v1687_v31, %v868_v33  ;;  %v2304_v52 = vsel %vm62_vm0, %v1067_v25, 0.0  ;;  %v2312_v56 = vadd.f32 %v1155_v40, %v1154_v29  ;;  %v1779_v31 = vld [vmem:[%s2722_s0 + $0xd8] sm:$0xff] }
 0x1d6   :  { %v2310_v30 = vpop.eup %1688  ;;  %1696 = vrcp.f32 %v951_v43  ;;  %v907_v1 = vadd.f32 %v906_v49, %v905_v46  ;;  %v575_v3 = vmax.f32 %v2285_v41, %v574_v47  ;;  %v752_v45 = vsub.f32 %v2267_v13, %v615_v0  ;;  %v2337_v0 = vpop.xlane.xlu0 %473 }
 0x1d7   :  { %v2315_v58 = vadd.f32 %v1172_v50, %v1171_v24  ;;  %v870_v2 = vrot.slane %v869_v51, 2  ;;  %v706_v42 = vrot.slane %v2290_v62, 4  ;;  %v670_v4 = vrot.slane %v2306_v53, 4  ;;  %v1780_v24 = vld [vmem:[%s2722_s0 + $0xa8] sm:$0xff] }
 0x1d8   :  { %v628_v7 = vrot.slane %v2308_v54, 4  ;;  %v908_v16 = vrot.slane %v907_v1, 1  ;;  %v576_v11 = vrot.slane %v575_v3, 2  ;;  %v794_v12 = vmul.f32 1.442695, %v752_v45  ;;  %v2342_v45 = vpop.xlane.xlu1 %542 }
 0x1d9   :  { %v1691_v28 = vpop.eup %1690  ;;  %v871_v18 = vadd.f32 %v870_v2, %v869_v51  ;;  %v707_v13 = vmax.f32 %v2290_v62, %v706_v42  ;;  %v671_v29 = vmax.f32 %v2306_v53, %v670_v4 }
 0x1da   :  { %v1000_v9 = vrot.slane %v1691_v28, 4  ;;  %v1089_v47 = vmul.f32 %v1779_v31, %v1691_v28  ;;  %v909_v55 = vadd.f32 %v908_v16, %v907_v1  ;;  %v577_v34 = vmax.f32 %v575_v3, %v576_v11 }
 0x1db   :  { %v1693_v22 = vpop.eup %1692  ;;  %v872_v23 = vrot.slane %v871_v18, 1  ;;  %v708_v16 = vrot.slane %v707_v13, 2  ;;  %v629_v31 = vmax.f32 %v2308_v54, %v628_v7 }
 0x1dc   :  { %v1001_v26 = vadd.f32 %v1691_v28, %v1000_v9  ;;  %v1283_v27 = vsel %vm62_vm0, %v1089_v47, 0.0  ;;  %v964_v46 = vrot.slane %v1693_v22, 4  ;;  %v1083_v33 = vmul.f32 %v1780_v24, %v1693_v22 }
 0x1dd   :  { %1698 = vrcp.f32 %v909_v55  ;;  %v873_v37 = vadd.f32 %v872_v23, %v871_v18  ;;  %v1284_v25 = vrot.slane %v1283_v27, 4  ;;  %v578_v40 = vrot.slane %v577_v34, 1 }
 0x1de   :  { %v2332_v43 = vpop.eup %1694  ;;  %v1002_v49 = vrot.slane %v1001_v26, 2  ;;  %v965_v50 = vadd.f32 %v1693_v22, %v964_v46  ;;  %v2335_v51 = vsel %vm62_vm0, %v1083_v33, 0.0  ;;  %1700 = vpow2.f32 %v794_v12 }
 0x1df   :  { %1702 = vrcp.f32 %v873_v37  ;;  %v2339_v1 = vadd.f32 %v1284_v25, %v1283_v27  ;;  %v579_v3 = vmax.f32 %v577_v34, %v578_v40  ;;  %v672_v18 = vrot.slane %v671_v29, 2  ;;  %v2352_v40 = vpop.xlane.xlu0 %521 }
 0x1e0   :  { %v2344_v42 = vpop.eup %1696  ;;  %v1003_v4 = vadd.f32 %v1002_v49, %v1001_v26  ;;  %v966_v28 = vrot.slane %v965_v50, 2  ;;  %v586_v47 = vrot.slane %v2337_v0, 4  ;;  %v709_v55 = vmax.f32 %v707_v13, %v708_v16 }
 0x1e1   :  { %2734 = vst [vmem:[#allocation12_spill] sm:$0xff] %v2344_v42  ;;  %v746_v9 = vsub.f32 %v2285_v41, %v579_v3  ;;  %v673_v23 = vmax.f32 %v671_v29, %v672_v18  ;;  %v630_v27 = vrot.slane %v629_v31, 2  ;;  %v724_v26 = vrot.slane %v2342_v45, 4 }
 0x1e2   :  { %v1004_v12 = vrot.slane %v1003_v4, 1  ;;  %v967_v22 = vadd.f32 %v966_v28, %v965_v50  ;;  %v587_v46 = vmax.f32 %v2337_v0, %v586_v47  ;;  %v710_v37 = vrot.slane %v709_v55, 1  ;;  %v2355_v50 = vpop.xlane.xlu1 %491 }
 0x1e3   :  { %v782_v34 = vmul.f32 1.442695, %v746_v9  ;;  %v674_v25 = vrot.slane %v673_v23, 1  ;;  %v631_v41 = vmax.f32 %v629_v31, %v630_v27  ;;  %v725_v49 = vmax.f32 %v2342_v45, %v724_v26  ;;  %v2371_v2 = vpop.xlane.xlu0 %527 }
 0x1e4   :  { %v1005_v24 = vadd.f32 %v1004_v12, %v1003_v4  ;;  %v968_v33 = vrot.slane %v967_v22, 1  ;;  %v588_v7 = vrot.slane %v587_v46, 2  ;;  %v711_v29 = vmax.f32 %v709_v55, %v710_v37  ;;  %v1781_v55 = vld [vmem:[%s2722_s0 + $0x50] sm:$0xff] }
 0x1e5   :  { %1704 = vpow2.f32 %v782_v34  ;;  %v675_v3 = vmax.f32 %v673_v23, %v674_v25  ;;  %v632_v16 = vrot.slane %v631_v41, 1  ;;  %v726_v18 = vrot.slane %v725_v49, 2 }
 0x1e6   :  { %1706 = vrcp.f32 %v1005_v24  ;;  %v969_v13 = vadd.f32 %v968_v33, %v967_v22  ;;  %v589_v4 = vmax.f32 %v587_v46, %v588_v7  ;;  %v682_v9 = vrot.slane %v2352_v40, 4 }
 0x1e7   :  { %v2357_v28 = vpop.eup %1698  ;;  %v768_v31 = vsub.f32 %v2290_v62, %v711_v29  ;;  %v762_v12 = vsub.f32 %v2306_v53, %v675_v3  ;;  %v622_v34 = vrot.slane %v2355_v50, 4  ;;  %v633_v46 = vmax.f32 %v631_v41, %v632_v16 }
 0x1e8   :  { %2735 = vst [vmem:[#allocation13_spill] sm:$0xff] %v2357_v28  ;;  %v1701_v47 = vpop.eup %1700  ;;  %1708 = vrcp.f32 %v969_v13  ;;  %v590_v26 = vrot.slane %v589_v4, 1  ;;  %v727_v37 = vmax.f32 %v725_v49, %v726_v18  ;;  %v683_v25 = vmax.f32 %v2352_v40, %v682_v9 }
 0x1e9   :  { %v2363_v27 = vpop.eup %1702  ;;  %v898_v22 = vrot.slane %v1701_v47, 4  ;;  %v1072_v23 = vmul.f32 %v1781_v55, %v1701_v47  ;;  %v826_v24 = vmul.f32 1.442695, %v768_v31  ;;  %v814_v33 = vmul.f32 1.442695, %v762_v12 }
 0x1ea   :  { %v755_v7 = vsub.f32 %v2308_v54, %v633_v46  ;;  %v591_v13 = vmax.f32 %v589_v4, %v590_v26  ;;  %v728_v3 = vrot.slane %v727_v37, 1  ;;  %v684_v11 = vrot.slane %v683_v25, 2  ;;  %v1782_v26 = vld [vmem:[%s2722_s0 + $0x20] sm:$0xff] }
 0x1eb   :  { %v899_v62 = vadd.f32 %v1701_v47, %v898_v22  ;;  %v1164_v53 = vsel %vm62_vm0, %v1072_v23, 0.0  ;;  %1710 = vpow2.f32 %v826_v24  ;;  %v623_v47 = vmax.f32 %v2355_v50, %v622_v34 }
 0x1ec   :  { %v1165_v29 = vrot.slane %v1164_v53, 4  ;;  %1712 = vpow2.f32 %v814_v33  ;;  %v800_v41 = vmul.f32 1.442695, %v755_v7  ;;  %v748_v16 = vsub.f32 %v2337_v0, %v591_v13 }
 0x1ed   :  { %v900_v55 = vrot.slane %v899_v62, 2  ;;  %v729_v18 = vmax.f32 %v727_v37, %v728_v3  ;;  %v685_v9 = vmax.f32 %v683_v25, %v684_v11  ;;  %v694_v4 = vrot.slane %v2371_v2, 4  ;;  %v2382_v37 = vpop.xlane.xlu1 %539 }
 0x1ee   :  { %v1166_v49 = vadd.f32 %v1165_v29, %v1164_v53  ;;  %1714 = vpow2.f32 %v800_v41  ;;  %v786_v54 = vmul.f32 1.442695, %v748_v16  ;;  %v624_v33 = vrot.slane %v623_v47, 2  ;;  %v2389_v16 = vpop.xlane.xlu0 %476 }
 0x1ef   :  { %v1705_v31 = vpop.eup %1704  ;;  %v901_v12 = vadd.f32 %v900_v55, %v899_v62  ;;  %v771_v24 = vsub.f32 %v2342_v45, %v729_v18  ;;  %v686_v34 = vrot.slane %v685_v9, 1  ;;  %v695_v18 = vmax.f32 %v2371_v2, %v694_v4  ;;  %v1783_v4 = vld [vmem:[%s2722_s0 + $0xd0] sm:$0xff] }
 0x1f0   :  { %v2376_v22 = vpop.eup %1706  ;;  %v1167_v23 = vrot.slane %v1166_v49, 2  ;;  %v862_v46 = vrot.slane %v1705_v31, 4  ;;  %v1066_v0 = vmul.f32 %v1782_v26, %v1705_v31  ;;  %1716 = vpow2.f32 %v786_v54 }
 0x1f1   :  { %2736 = vst [vmem:[#allocation14_spill] sm:$0xff] %v2376_v22  ;;  %v902_v11 = vrot.slane %v901_v12, 1  ;;  %v832_v13 = vmul.f32 1.442695, %v771_v24  ;;  %v687_v55 = vmax.f32 %v685_v9, %v686_v34  ;;  %v625_v41 = vmax.f32 %v623_v47, %v624_v33  ;;  %v2410_v59 = vpop.xlane.xlu1 %500 }
 0x1f2   :  { %v2384_v25 = vpop.eup %1708  ;;  %v2386_v62 = vadd.f32 %v1167_v23, %v1166_v49  ;;  %v863_v53 = vadd.f32 %v1705_v31, %v862_v46  ;;  %v1122_v7 = vsel %vm62_vm0, %v1066_v0, 0.0  ;;  %v718_v54 = vrot.slane %v2382_v37, 4 }
 0x1f3   :  { %2737 = vst [vmem:[#allocation15_spill] sm:$0xff] %v2384_v25  ;;  %v903_v29 = vadd.f32 %v902_v11, %v901_v12  ;;  %v1123_v3 = vrot.slane %v1122_v7, 4  ;;  %1718 = vpow2.f32 %v832_v13  ;;  %v764_v49 = vsub.f32 %v2352_v40, %v687_v55 }
 0x1f4   :  { %v864_v45 = vrot.slane %v863_v53, 2  ;;  %v626_v31 = vrot.slane %v625_v41, 1  ;;  %v696_v12 = vrot.slane %v695_v18, 2  ;;  %v2397_v9 = vmax.f32 %v2382_v37, %v718_v54 }
 0x1f5   :  { %1720 = vrcp.f32 %v903_v29  ;;  %v2393_v26 = vadd.f32 %v1123_v3, %v1122_v7  ;;  %v1711_v23 = vpop.eup %1710  ;;  %v818_v34 = vmul.f32 1.442695, %v764_v49 }
 0x1f6   :  { %v865_v46 = vadd.f32 %v864_v45, %v863_v53  ;;  %v1713_v0 = vpop.eup %1712  ;;  %v994_v24 = vrot.slane %v1711_v23, 4  ;;  %v1088_v11 = vmul.f32 %v1783_v4, %v1711_v23  ;;  %v627_v33 = vmax.f32 %v625_v41, %v626_v31  ;;  %v1784_v53 = vld [vmem:[%s2722_s0 + $0xa0] sm:$0xff] }
 0x1f7   :  { %v958_v40 = vrot.slane %v1713_v0, 4  ;;  %v1082_v13 = vmul.f32 %v1784_v53, %v1713_v0  ;;  %v2406_v29 = vmax.f32 %v695_v18, %v696_v12  ;;  %1722 = vpow2.f32 %v818_v34  ;;  %v1785_v18 = vld [vmem:[%s2722_s0 + $0x68] sm:$0xff] }
 0x1f8   :  { %v866_v7 = vrot.slane %v865_v46, 1  ;;  %v1715_v3 = vpop.eup %1714  ;;  %v995_v55 = vadd.f32 %v1711_v23, %v994_v24  ;;  %v1276_v45 = vsel %vm62_vm0, %v1088_v11, 0.0  ;;  %v754_v54 = vsub.f32 %v2355_v50, %v627_v33 }
 0x1f9   :  { %v1277_v41 = vrot.slane %v1276_v45, 4  ;;  %v959_v31 = vadd.f32 %v1713_v0, %v958_v40  ;;  %v1234_v4 = vsel %vm62_vm0, %v1082_v13, 0.0  ;;  %v916_v53 = vrot.slane %v1715_v3, 4 }
 0x1fa   :  { %v867_v49 = vadd.f32 %v866_v7, %v865_v46  ;;  %v1717_v17 = vpop.eup %1716  ;;  %v996_v60 = vrot.slane %v995_v55, 2  ;;  %v1235_v32 = vrot.slane %v1234_v4, 4  ;;  %v1075_v23 = vmul.f32 %v1785_v18, %v1715_v3 }
 0x1fb   :  { %v1278_v12 = vadd.f32 %v1277_v41, %v1276_v45  ;;  %v960_v24 = vrot.slane %v959_v31, 2  ;;  %v874_v50 = vrot.slane %v1717_v17, 4  ;;  %v917_v46 = vadd.f32 %v1715_v3, %v916_v53 }
 0x1fc   :  { %1724 = vrcp.f32 %v867_v49  ;;  %v997_v11 = vadd.f32 %v996_v60, %v995_v55  ;;  %v2416_v34 = vadd.f32 %v1235_v32, %v1234_v4  ;;  %v2419_v0 = vsel %vm62_vm0, %v1075_v23, 0.0  ;;  %v1786_v60 = vld [vmem:[%s2722_s0 + $0x30] sm:$0xff]  ;;  %v2429_v55 = vpop.xlane.xlu1 %497  ;;  %v1787_v4 = vld [vmem:[%s2722_s0 + $0xe8] sm:$0xff] }
 0x1fd   :  { %v1719_v33 = vpop.eup %1718  ;;  %v1279_v7 = vrot.slane %v1278_v12, 2  ;;  %v961_v40 = vadd.f32 %v960_v24, %v959_v31  ;;  %v875_v47 = vadd.f32 %v1717_v17, %v874_v50  ;;  %v918_v49 = vrot.slane %v917_v46, 2 }
 0x1fe   :  { %v998_v18 = vrot.slane %v997_v11, 1  ;;  %v2427_v32 = vmul.f32 %v1786_v60, %v1717_v17  ;;  %v1012_v3 = vrot.slane %v1719_v33, 4  ;;  %v1091_v53 = vmul.f32 %v1787_v4, %v1719_v33 }
 0x1ff   :  { %v2422_v22 = vpop.eup %1720  ;;  %v2431_v45 = vadd.f32 %v1279_v7, %v1278_v12  ;;  %v962_v41 = vrot.slane %v961_v40, 1  ;;  %v876_v31 = vrot.slane %v875_v47, 2  ;;  %v919_v24 = vadd.f32 %v918_v49, %v917_v46 }
 0x200   :  { %2738 = vst [vmem:[#allocation16_spill] sm:$0xff] %v2422_v22  ;;  %v999_v23 = vadd.f32 %v998_v18, %v997_v11  ;;  %v1013_v50 = vadd.f32 %v1719_v33, %v1012_v3  ;;  %v798_v13 = vmul.f32 1.442695, %v754_v54  ;;  %v2437_v17 = vsel %vm62_vm0, %v1091_v53, 0.0  ;;  %v1788_v54 = vld [vmem:[%s2722_s0 + $0xb0] sm:$0xff]  ;;  %v2455_v53 = vpop.xlane.xlu0 %524 }
 0x201   :  { %v963_v14 = vadd.f32 %v962_v41, %v961_v40  ;;  %v877_v38 = vadd.f32 %v876_v31, %v875_v47  ;;  %v698_v60 = vrot.slane %v2406_v29, 1  ;;  %v1723_v12 = vpop.eup %1722  ;;  %v920_v7 = vrot.slane %v919_v24, 1  ;;  %v2447_v40 = vpop.xlane.xlu1 %545 }
 0x202   :  { %1726 = vrcp.f32 %v999_v23  ;;  %v1014_v25 = vrot.slane %v1013_v50, 2  ;;  %v970_v4 = vrot.slane %v1723_v12, 4  ;;  %v2444_v11 = vmul.f32 %v1788_v54, %v1723_v12 }
 0x203   :  { %1728 = vrcp.f32 %v963_v14  ;;  %v878_v42 = vrot.slane %v877_v38, 1  ;;  %v921_v47 = vadd.f32 %v920_v7, %v919_v24  ;;  %v699_v33 = vmax.f32 %v2406_v29, %v698_v60 }
 0x204   :  { %v1015_v46 = vadd.f32 %v1014_v25, %v1013_v50  ;;  %1730 = vpow2.f32 %v798_v13  ;;  %v971_v3 = vadd.f32 %v1723_v12, %v970_v4  ;;  %v720_v14 = vrot.slane %v2397_v9, 2 }
 0x205   :  { %v879_v49 = vadd.f32 %v878_v42, %v877_v38  ;;  %v2739_v41 = vrot.slane %v2389_v16, 4  ;;  %1732 = vrcp.f32 %v921_v47  ;;  %v766_v25 = vsub.f32 %v2371_v2, %v699_v33 }
 0x206   :  { %v2449_v18 = vpop.eup %1724  ;;  %v1016_v23 = vrot.slane %v1015_v46, 1  ;;  %v640_v29 = vrot.slane %v2410_v59, 4  ;;  %v972_v13 = vrot.slane %v971_v3, 2  ;;  %v721_v24 = vmax.f32 %v2397_v9, %v720_v14 }
 0x207   :  { %v593_v31 = vmax.f32 %v2389_v16, %v2739_v41  ;;  %1734 = vrcp.f32 %v879_v49  ;;  %v822_v50 = vmul.f32 1.442695, %v766_v25  ;;  %v688_v12 = vrot.slane %v2455_v53, 4  ;;  %v2465_v41 = vpop.xlane.xlu1 %548 }
 0x208   :  { %v1017_v42 = vadd.f32 %v1016_v23, %v1015_v46  ;;  %v641_v60 = vmax.f32 %v2410_v59, %v640_v29  ;;  %v973_v7 = vadd.f32 %v972_v13, %v971_v3  ;;  %v722_v4 = vrot.slane %v721_v24, 1 }
 0x209   :  { %v594_v38 = vrot.slane %v593_v31, 2  ;;  %v634_v47 = vrot.slane %v2429_v55, 4  ;;  %v689_v33 = vmax.f32 %v2455_v53, %v688_v12  ;;  %v730_v49 = vrot.slane %v2447_v40, 4 }
 0x20a   :  { %1736 = vrcp.f32 %v1017_v42  ;;  %v642_v2 = vrot.slane %v641_v60, 2  ;;  %v974_v9 = vrot.slane %v973_v7, 1  ;;  %v723_v46 = vmax.f32 %v721_v24, %v722_v4 }
 0x20b   :  { %v595_v54 = vmax.f32 %v593_v31, %v594_v38  ;;  %1738 = vpow2.f32 %v822_v50  ;;  %v690_v3 = vrot.slane %v689_v33, 2  ;;  %v635_v31 = vmax.f32 %v2429_v55, %v634_v47  ;;  %v1789_v47 = vld [vmem:[%s2722_s0 + $0x60] sm:$0xff] }
 0x20c   :  { %v2467_v23 = vpop.eup %1726  ;;  %v643_v25 = vmax.f32 %v641_v60, %v642_v2  ;;  %v731_v29 = vmax.f32 %v2447_v40, %v730_v49  ;;  %v975_v38 = vadd.f32 %v974_v9, %v973_v7  ;;  %v770_v42 = vsub.f32 %v2382_v37, %v723_v46 }
 0x20d   :  { %v596_v14 = vrot.slane %v595_v54, 1  ;;  %2740 = vst [vmem:[#allocation17_spill] sm:$0xff] %v2467_v23  ;;  %v2471_v13 = vpop.eup %1728  ;;  %v736_v48 = vrot.slane %v2465_v41, 4  ;;  %v691_v24 = vmax.f32 %v689_v33, %v690_v3  ;;  %v636_v4 = vrot.slane %v635_v31, 2 }
 0x20e   :  { %2741 = vst [vmem:[#allocation18_spill] sm:$0xff] %v2471_v13  ;;  %v1731_v35 = vpop.eup %1730  ;;  %v644_v50 = vrot.slane %v643_v25, 1  ;;  %v732_v6 = vrot.slane %v731_v29, 2  ;;  %1740 = vrcp.f32 %v975_v38  ;;  %v830_v49 = vmul.f32 1.442695, %v770_v42 }
 0x20f   :  { %v597_v12 = vmax.f32 %v595_v54, %v596_v14  ;;  %v910_v60 = vrot.slane %v1731_v35, 4  ;;  %v1074_v2 = vmul.f32 %v1789_v47, %v1731_v35  ;;  %v2478_v23 = vpop.eup %1732  ;;  %v692_v54 = vrot.slane %v691_v24, 1 }
 0x210   :  { %2742 = vst [vmem:[#allocation19_spill] sm:$0xff] %v2478_v23  ;;  %v645_v7 = vmax.f32 %v643_v25, %v644_v50  ;;  %v637_v9 = vmax.f32 %v635_v31, %v636_v4  ;;  %1742 = vpow2.f32 %v830_v49  ;;  %v733_v3 = vmax.f32 %v731_v29, %v732_v6 }
 0x211   :  { %v749_v37 = vsub.f32 %v2389_v16, %v597_v12  ;;  %v2481_v46 = vpop.eup %1734  ;;  %v911_v33 = vadd.f32 %v1731_v35, %v910_v60  ;;  %v1178_v14 = vsel %vm62_vm0, %v1074_v2, 0.0  ;;  %v693_v47 = vmax.f32 %v691_v24, %v692_v54  ;;  %v1790_v24 = vld [vmem:[%s2722_s0 + $0xc0] sm:$0xff] }
 0x212   :  { %v1179_v38 = vrot.slane %v1178_v14, 4  ;;  %v757_v10 = vsub.f32 %v2410_v59, %v645_v7  ;;  %v638_v61 = vrot.slane %v637_v9, 1  ;;  %v734_v23 = vrot.slane %v733_v3, 1 }
 0x213   :  { %v788_v13 = vmul.f32 1.442695, %v749_v37  ;;  %v912_v42 = vrot.slane %v911_v33, 2  ;;  %v737_v16 = vmax.f32 %v2465_v41, %v736_v48  ;;  %v765_v12 = vsub.f32 %v2455_v53, %v693_v47 }
 0x214   :  { %v2486_v25 = vpop.eup %1736  ;;  %v2488_v31 = vadd.f32 %v1179_v38, %v1178_v14  ;;  %v804_v35 = vmul.f32 1.442695, %v757_v10  ;;  %v639_v29 = vmax.f32 %v637_v9, %v638_v61  ;;  %v735_v4 = vmax.f32 %v733_v3, %v734_v23 }
 0x215   :  { %2743 = vst [vmem:[#allocation20_spill] sm:$0xff] %v2486_v25  ;;  %1744 = vpow2.f32 %v788_v13  ;;  %v1739_v50 = vpop.eup %1738  ;;  %v913_v6 = vadd.f32 %v912_v42, %v911_v33  ;;  %v738_v60 = vrot.slane %v737_v16, 2  ;;  %v820_v48 = vmul.f32 1.442695, %v765_v12 }
 0x216   :  { %v982_v59 = vrot.slane %v1739_v50, 4  ;;  %v1086_v2 = vmul.f32 %v1790_v24, %v1739_v50  ;;  %1746 = vpow2.f32 %v804_v35  ;;  %v756_v37 = vsub.f32 %v2429_v55, %v639_v29 }
 0x217   :  { %v914_v49 = vrot.slane %v913_v6, 1  ;;  %v772_v10 = vsub.f32 %v2447_v40, %v735_v4  ;;  %v739_v13 = vmax.f32 %v737_v16, %v738_v60  ;;  %1748 = vpow2.f32 %v820_v48 }
 0x218   :  { %v983_v53 = vadd.f32 %v1739_v50, %v982_v59  ;;  %v1262_v7 = vsel %vm62_vm0, %v1086_v2, 0.0  ;;  %v1113_v61 = vrot.slane %v2278_v57, 1  ;;  %v2498_v23 = vpop.eup %1740  ;;  %v802_v33 = vmul.f32 1.442695, %v756_v37 }
 0x219   :  { %2744 = vst [vmem:[#allocation21_spill] sm:$0xff] %v2498_v23  ;;  %v915_v54 = vadd.f32 %v914_v49, %v913_v6  ;;  %v1263_v9 = vrot.slane %v1262_v7, 4  ;;  %v834_v14 = vmul.f32 1.442695, %v772_v10  ;;  %v740_v38 = vrot.slane %v739_v13, 1 }
 0x21a   :  { %v984_v3 = vrot.slane %v983_v53, 2  ;;  %v2501_v47 = vadd.f32 %v1113_v61, %v2278_v57  ;;  %v2745_v55 = vrot.slane %v2210_v8, 2  ;;  %v1743_v42 = vpop.eup %1742  ;;  %v1125_v35 = vrot.slane %v2393_v26, 2  ;;  %v1791_v57 = vld [vmem:[%s2722_s0 + $0xe0] sm:$0xff] }
 0x21b   :  { %1750 = vrcp.f32 %v915_v54  ;;  %v1264_v16 = vadd.f32 %v1263_v9, %v1262_v7  ;;  %v2746_v12 = vrot.slane %v2304_v52, 4  ;;  %v1006_v29 = vrot.slane %v1743_v42, 4  ;;  %v1792_v7 = vld [vmem:[%s2722_s0 + $0x38] sm:$0xff] }
 0x21c   :  { %v1119_v40 = vadd.f32 %v2745_v55, %v2210_v8  ;;  %v985_v6 = vadd.f32 %v984_v3, %v983_v53  ;;  %v1090_v4 = vmul.f32 %v1791_v57, %v1743_v42  ;;  %1752 = vpow2.f32 %v802_v33 }
 0x21d   :  { %v2510_v50 = vadd.f32 %v2746_v12, %v2304_v52  ;;  %v1265_v60 = vrot.slane %v1264_v16, 2  ;;  %1754 = vpow2.f32 %v834_v14  ;;  %v741_v8 = vmax.f32 %v739_v13, %v740_v38 }
 0x21e   :  { %v1120_v59 = vrot.slane %v1119_v40, 1  ;;  %v986_v2 = vrot.slane %v985_v6, 1  ;;  %v1007_v48 = vadd.f32 %v1743_v42, %v1006_v29  ;;  %v1290_v49 = vsel %vm62_vm0, %v1090_v4, 0.0 }
 0x21f   :  { %v1745_v24 = vpop.eup %1744  ;;  %v1126_v52 = vadd.f32 %v1125_v35, %v2393_v26  ;;  %v1266_v37 = vadd.f32 %v1265_v60, %v1264_v16  ;;  %v1291_v10 = vrot.slane %v1290_v49, 4  ;;  %v773_v13 = vsub.f32 %v2465_v41, %v741_v8  ;;  %v1793_v35 = vld [vmem:[%s2722_s0 + $0x78] sm:$0xff] }
 0x220   :  { %v880_v53 = vrot.slane %v1745_v24, 4  ;;  %v1069_v61 = vmul.f32 %v1792_v7, %v1745_v24  ;;  %v1747_v54 = vpop.eup %1746  ;;  %v987_v9 = vadd.f32 %v986_v2, %v985_v6  ;;  %v1008_v33 = vrot.slane %v1007_v48, 2  ;;  %v1794_v60 = vld [vmem:[%s2722_s0 + $0xb8] sm:$0xff] }
 0x221   :  { %v2521_v14 = vadd.f32 %v1120_v59, %v1119_v40  ;;  %v1267_v3 = vrot.slane %v1266_v37, 1  ;;  %v2523_v38 = vadd.f32 %v1291_v10, %v1290_v49  ;;  %v928_v26 = vrot.slane %v1747_v54, 4  ;;  %v1749_v42 = vpop.eup %1748 }
 0x222   :  { %v881_v55 = vadd.f32 %v1745_v24, %v880_v53  ;;  %1756 = vrcp.f32 %v987_v9  ;;  %v1009_v16 = vadd.f32 %v1008_v33, %v1007_v48  ;;  %v2528_v12 = vmul.f32 %v1793_v35, %v1747_v54 }
 0x223   :  { %v836_v6 = vmul.f32 1.442695, %v773_v13  ;;  %v2530_v29 = vadd.f32 %v1267_v3, %v1266_v37  ;;  %v929_v40 = vadd.f32 %v1747_v54, %v928_v26  ;;  %v976_v57 = vrot.slane %v1749_v42, 4 }
 0x224   :  { %v882_v41 = vrot.slane %v881_v55, 2  ;;  %v1010_v4 = vrot.slane %v1009_v16, 1  ;;  %v2535_v8 = vmul.f32 %v1794_v60, %v1749_v42  ;;  %v1127_v59 = vrot.slane %v1126_v52, 1 }
 0x225   :  { %2747 = vst [vmem:[#allocation22_spill] sm:$0xff] %v2530_v29  ;;  %1758 = vpow2.f32 %v836_v6  ;;  %v2537_v24 = vpop.eup %1750  ;;  %v930_v48 = vrot.slane %v929_v40, 2  ;;  %v977_v49 = vadd.f32 %v1749_v42, %v976_v57  ;;  %v1132_v37 = vrot.slane %v2510_v50, 2 }
 0x226   :  { %2748 = vst [vmem:[#allocation23_spill] sm:$0xff] %v2537_v24  ;;  %v883_v2 = vadd.f32 %v882_v41, %v881_v55  ;;  %v1753_v10 = vpop.eup %1752  ;;  %v1011_v53 = vadd.f32 %v1010_v4, %v1009_v16  ;;  %v2540_v7 = vadd.f32 %v1127_v59, %v1126_v52  ;;  %v1136_v54 = vsel %vm62_vm0, %v2427_v32, 0.0  ;;  %v1795_v55 = vld [vmem:[%s2722_s0 + $0x70] sm:$0xff] }
 0x227   :  { %v1143_v9 = vsel %vm62_vm0, %v1069_v61, 0.0  ;;  %v1755_v33 = vpop.eup %1754  ;;  %v931_v3 = vadd.f32 %v930_v48, %v929_v40  ;;  %v978_v26 = vrot.slane %v977_v49, 2  ;;  %v922_v35 = vrot.slane %v1753_v10, 4  ;;  %v1796_v52 = vld [vmem:[%s2722_s0 + $0xf0] sm:$0xff] }
 0x228   :  { %v884_v13 = vrot.slane %v883_v2, 1  ;;  %1760 = vrcp.f32 %v1011_v53  ;;  %v1076_v42 = vmul.f32 %v1795_v55, %v1753_v10  ;;  %v1018_v6 = vrot.slane %v1755_v33, 4 }
 0x229   :  { %v2551_v16 = vmul.f32 %v1796_v52, %v1755_v33  ;;  %v932_v32 = vrot.slane %v931_v3, 1  ;;  %v979_v61 = vadd.f32 %v978_v26, %v977_v49  ;;  %v923_v41 = vadd.f32 %v1753_v10, %v922_v35  ;;  %v1797_v26 = vld [vmem:[%s2722_s0 + $0xf8] sm:$0xff]  ;;  %s1822_s0 = smov [#allocation2]  }
 0x22a   :  { %v885_v57 = vadd.f32 %v884_v13, %v883_v2  ;;  %v1019_v40 = vadd.f32 %v1755_v33, %v1018_v6  ;;  %v1133_v4 = vadd.f32 %v1132_v37, %v2510_v50  ;;  %v1137_v60 = vrot.slane %v1136_v54, 4  ;;  %s1430_s1 = sshll.u32 %s1822_s0, 4  ;;  %s1431_s1 = int_to_ptr.vmem [resolvable:$true] %s1430_s1 }
 0x22b   :  { %v1144_v59 = vrot.slane %v1143_v9, 4  ;;  %v980_v48 = vrot.slane %v979_v61, 1  ;;  %v924_v53 = vrot.slane %v923_v41, 2  ;;  %v933_v25 = vadd.f32 %v932_v32, %v931_v3  ;;  %s1798_s27 = scalar_lea.vmem %s1431_s1, 512  ;;  %p1803_p1 = scmp.lt.s32.totalorder %s1431_s1, %s1431_s1 }
 0x22c   :  { %1762 = vrcp.f32 %v885_v57  ;;  %v2554_v55 = vpop.eup %1756  ;;  %v1020_v29 = vrot.slane %v1019_v40, 2  ;;  %v1134_v23 = vrot.slane %v1133_v4, 1  ;;  %v1138_v24 = vadd.f32 %v1137_v60, %v1136_v54  ;;  %p1799_p0 = scmp.ne.s32.totalorder %s1431_s1, %s1798_s27  ;;  %p1804_p2 = scmp.lt.s32.totalorder %s1798_s27, %s1798_s27 }
 0x22d   :  { %v1145_v52 = vadd.f32 %v1144_v59, %v1143_v9  ;;  %v981_v28 = vadd.f32 %v980_v48, %v979_v61  ;;  %v925_v22 = vadd.f32 %v924_v53, %v923_v41  ;;  %1764 = vrcp.f32 %v933_v25 }
 0x22e   :  { %v1169_v2 = vrot.slane %v2386_v62, 1  ;;  %v1021_v10 = vadd.f32 %v1020_v29, %v1019_v40  ;;  %v2557_v50 = vadd.f32 %v1134_v23, %v1133_v4  ;;  %v1139_v37 = vrot.slane %v1138_v24, 2  ;;  %p1805_p3 = por %p1804_p2, %p1803_p1 }
 0x22f   :  { %v1759_v49 = vpop.eup %1758  ;;  %v1146_v33 = vrot.slane %v1145_v52, 2  ;;  %v926_v13 = vrot.slane %v925_v22, 1  ;;  %1766 = vrcp.f32 %v981_v28  ;;  %v2749_v32 = vrot.slane %v2315_v58, 2 }
 0x230   :  { %v1024_v3 = vrot.slane %v1759_v49, 4  ;;  %v2562_v35 = vmul.f32 %v1797_v26, %v1759_v49  ;;  %v1022_v54 = vrot.slane %v1021_v10, 1  ;;  %v1140_v9 = vadd.f32 %v1139_v37, %v1138_v24  ;;  %p1806_p4 = pnand %p1805_p3, %p1799_p0 }
 0x231   :  { %v1147_v25 = vadd.f32 %v1146_v33, %v1145_v52  ;;  %v2565_v6 = vadd.f32 %v1169_v2, %v2386_v62  ;;  %v927_v29 = vadd.f32 %v926_v13, %v925_v22  ;;  %v1175_v61 = vadd.f32 %v2749_v32, %v2315_v58 }
 0x232   :  { %v1025_v23 = vadd.f32 %v1759_v49, %v1024_v3  ;;  %v1181_v41 = vrot.slane %v2488_v31, 2  ;;  %v2571_v57 = vpop.eup %1760  ;;  %v1023_v40 = vadd.f32 %v1022_v54, %v1021_v10  ;;  %v1141_v4 = vrot.slane %v1140_v9, 1 }
 0x233   :  { %v1148_v60 = vrot.slane %v1147_v25, 1  ;;  %v2750_v28 = vrot.slane %v2419_v0, 4  ;;  %1768 = vrcp.f32 %v927_v29  ;;  %v1176_v59 = vrot.slane %v1175_v61, 1 }
 0x234   :  { %v1026_v62 = vrot.slane %v1025_v23, 2  ;;  %v1182_v22 = vadd.f32 %v1181_v41, %v2488_v31  ;;  %1770 = vrcp.f32 %v1023_v40  ;;  %v2577_v48 = vadd.f32 %v1141_v4, %v1140_v9 }
 0x235   :  { %v1187_v24 = vadd.f32 %v2750_v28, %v2419_v0  ;;  %v2579_v58 = vadd.f32 %v1148_v60, %v1147_v25  ;;  %v2583_v49 = vadd.f32 %v1176_v59, %v1175_v61  ;;  %v1192_v37 = vsel %vm62_vm0, %v1076_v42, 0.0 }
 0x236   :  { %v2581_v52 = vpop.eup %1762  ;;  %v1027_v2 = vadd.f32 %v1026_v62, %v1025_v23  ;;  %v1183_v10 = vrot.slane %v1182_v22, 1  ;;  %v1193_v33 = vrot.slane %v1192_v37, 4  ;;  %v1199_v13 = vsel %vm62_vm0, %v2528_v12, 0.0 }
 0x237   :  { %v1188_v53 = vrot.slane %v1187_v24, 2  ;;  %v1225_v31 = vrot.slane %v2301_v44, 1  ;;  %v2589_v3 = vpop.eup %1764  ;;  %v1200_v9 = vrot.slane %v1199_v13, 4  ;;  %v2751_v25 = vrot.slane %v2243_v21, 2 }
 0x238   :  { %v1028_v26 = vrot.slane %v1027_v2, 1  ;;  %v2591_v54 = vadd.f32 %v1183_v10, %v1182_v22  ;;  %v1194_v32 = vadd.f32 %v1193_v33, %v1192_v37  ;;  %v1237_v61 = vrot.slane %v2416_v34, 2 }
 0x239   :  { %v1189_v0 = vadd.f32 %v1188_v53, %v1187_v24  ;;  %v1231_v29 = vadd.f32 %v2751_v25, %v2243_v21  ;;  %v2597_v42 = vadd.f32 %v1225_v31, %v2301_v44  ;;  %v2600_v12 = vpop.eup %1766  ;;  %v1201_v40 = vadd.f32 %v1200_v9, %v1199_v13 }
 0x23a   :  { %v1029_v41 = vadd.f32 %v1028_v26, %v1027_v2  ;;  %v2752_v60 = vrot.slane %v2335_v51, 4  ;;  %v1195_v62 = vrot.slane %v1194_v32, 2  ;;  %v1238_v21 = vadd.f32 %v1237_v61, %v2416_v34 }
 0x23b   :  { %v1190_v23 = vrot.slane %v1189_v0, 1  ;;  %v1232_v4 = vrot.slane %v1231_v29, 1  ;;  %v1248_v44 = vsel %vm62_vm0, %v2444_v11, 0.0  ;;  %v1202_v59 = vrot.slane %v1201_v40, 2 }
 0x23c   :  { %v1243_v28 = vadd.f32 %v2752_v60, %v2335_v51  ;;  %1772 = vrcp.f32 %v1029_v41  ;;  %v1196_v2 = vadd.f32 %v1195_v62, %v1194_v32  ;;  %v1239_v10 = vrot.slane %v1238_v21, 1 }
 0x23d   :  { %v2605_v24 = vadd.f32 %v1190_v23, %v1189_v0  ;;  %v2610_v22 = vadd.f32 %v1232_v4, %v1231_v29  ;;  %v1249_v37 = vrot.slane %v1248_v44, 4  ;;  %v1255_v33 = vsel %vm62_vm0, %v2535_v8, 0.0  ;;  %v1769_v51 = vpop.eup %1768 }
 0x23e   :  { %v1244_v53 = vrot.slane %v1243_v28, 2  ;;  %v1203_v0 = vadd.f32 %v1202_v59, %v1201_v40  ;;  %v1256_v31 = vrot.slane %v1255_v33, 4  ;;  %v1281_v34 = vrot.slane %v2431_v45, 1  ;;  %v2615_v26 = vpop.eup %1770 }
 0x23f   :  { %v1197_v11 = vrot.slane %v1196_v2, 1  ;;  %v2617_v9 = vadd.f32 %v1239_v10, %v1238_v21  ;;  %v1250_v25 = vadd.f32 %v1249_v37, %v1248_v44  ;;  %v2753_v29 = vrot.slane %v2339_v1, 2 }
 0x240   :  { %v1245_v13 = vadd.f32 %v1244_v53, %v1243_v28  ;;  %v1204_v32 = vrot.slane %v1203_v0, 1  ;;  %v1257_v41 = vadd.f32 %v1256_v31, %v1255_v33  ;;  %v2623_v8 = vadd.f32 %v1281_v34, %v2431_v45 }
 0x241   :  { %v1287_v23 = vadd.f32 %v2753_v29, %v2339_v1  ;;  %v1198_v40 = vadd.f32 %v1197_v11, %v1196_v2  ;;  %v1251_v4 = vrot.slane %v1250_v25, 2  ;;  %v1293_v28 = vrot.slane %v2523_v38, 2 }
 0x242   :  { %v1246_v61 = vrot.slane %v1245_v13, 1  ;;  %v1205_v62 = vadd.f32 %v1204_v32, %v1203_v0  ;;  %v1258_v21 = vrot.slane %v1257_v41, 2  ;;  %v2754_v44 = vrot.slane %v2437_v17, 4 }
 0x243   :  { %v1288_v60 = vrot.slane %v1287_v23, 1  ;;  %v1252_v10 = vadd.f32 %v1251_v4, %v1250_v25  ;;  %v1294_v37 = vadd.f32 %v1293_v28, %v2523_v38  ;;  %v1304_v45 = vsel %vm62_vm0, %v2551_v16, 0.0 }
 0x244   :  { %v1247_v59 = vadd.f32 %v1246_v61, %v1245_v13  ;;  %v1299_v53 = vadd.f32 %v2754_v44, %v2437_v17  ;;  %v1259_v33 = vadd.f32 %v1258_v21, %v1257_v41  ;;  %v1305_v31 = vrot.slane %v1304_v45, 4 }
 0x245   :  { %v1289_v1 = vadd.f32 %v1288_v60, %v1287_v23  ;;  %v1311_v34 = vsel %vm62_vm0, %v2562_v35, 0.0  ;;  %v1253_v0 = vrot.slane %v1252_v10, 1  ;;  %v1295_v13 = vrot.slane %v1294_v37, 1 }
 0x246   :  { %v1300_v2 = vrot.slane %v1299_v53, 2  ;;  %v1312_v11 = vrot.slane %v1311_v34, 4  ;;  %v1318_v29 = vmul.f32 %v2232_v19, %v2203_v15  ;;  %v1773_v17 = vpop.eup %1772  ;;  %v1260_v25 = vrot.slane %v1259_v33, 1 }
 0x247   :  { %v1306_v32 = vadd.f32 %v1305_v31, %v1304_v45  ;;  %v1319_v38 = vmul.f32 %v2215_v36, %v2196_v39  ;;  %v1254_v16 = vadd.f32 %v1253_v0, %v1252_v10  ;;  %v1296_v61 = vadd.f32 %v1295_v13, %v1294_v37  ;;  %v2758_v37 = vld [vmem:[#allocation19_spill] sm:$0xff]  ;;  %v2764_v0 = vld [vmem:[#allocation10_spill] sm:$0xff] }
 0x248   :  { %v1301_v23 = vadd.f32 %v1300_v2, %v1299_v53  ;;  %v1313_v41 = vadd.f32 %v1312_v11, %v1311_v34  ;;  %v1320_v4 = vmul.f32 %v2310_v30, %v2501_v47  ;;  %v1261_v35 = vadd.f32 %v1260_v25, %v1259_v33  ;;  %v2760_v33 = vld [vmem:[#allocation8_spill] sm:$0xff]  ;;  %v2762_v2 = vld [vmem:[#allocation6_spill] sm:$0xff] }
 0x249   :  { %v1307_v28 = vrot.slane %v1306_v32, 2  ;;  %v1321_v21 = vmul.f32 %v2253_v5, %v2521_v14  ;;  %v1322_v19 = vmul.f32 %v2449_v18, %v2540_v7  ;;  %v1323_v44 = vmul.f32 %v2363_v27, %v2557_v50  ;;  %v2755_v18 = vld [vmem:[#allocation16_spill] sm:$0xff]  ;;  %v2756_v27 = vld [vmem:[#allocation13_spill] sm:$0xff]  ;;  %v2765_v13 = vld [vmem:[#allocation18_spill] sm:$0xff] }
 0x24a   :  { %v1302_v60 = vrot.slane %v1301_v23, 1  ;;  %v1314_v15 = vrot.slane %v1313_v41, 2  ;;  %v1324_v39 = vmul.f32 %v2481_v46, %v2577_v48  ;;  %v1325_v30 = vmul.f32 %v2581_v52, %v2579_v58  ;;  %v2757_v46 = vld [vmem:[#allocation23_spill] sm:$0xff] }
 0x24b   :  { %v1308_v53 = vadd.f32 %v1307_v28, %v1306_v32  ;;  %v1326_v47 = vmul.f32 %v2332_v43, %v2312_v56  ;;  %v1327_v5 = vmul.f32 %v2262_v63, %v2241_v20  ;;  %v1328_v14 = vmul.f32 %v2755_v18, %v2565_v6  ;;  %v2759_v43 = vld [vmem:[#allocation7_spill] sm:$0xff]  ;;  %v2761_v63 = vld [vmem:[#allocation5_spill] sm:$0xff] }
 0x24c   :  { %v1303_v36 = vadd.f32 %v1302_v60, %v1301_v23  ;;  %v1315_v10 = vadd.f32 %v1314_v15, %v1313_v41  ;;  %v1329_v7 = vmul.f32 %v2756_v27, %v2583_v49  ;;  %v1330_v48 = vmul.f32 %v2757_v46, %v2591_v54  ;;  %v2763_v49 = vld [vmem:[#allocation12_spill] sm:$0xff]  ;;  %v2768_v23 = vld [vmem:[#allocation22_spill] sm:$0xff]  ;;  %v2769_v41 = vld [vmem:[#allocation9_spill] sm:$0xff] }
 0x24d   :  { %v1309_v50 = vrot.slane %v1308_v53, 1  ;;  %v1331_v58 = vmul.f32 %v2758_v37, %v2605_v24  ;;  %v1332_v52 = vmul.f32 %v1769_v51, %v1198_v40  ;;  %v1333_v56 = vmul.f32 %v2589_v3, %v1205_v62  ;;  %v2766_v40 = vld [vmem:[#allocation15_spill] sm:$0xff]  ;;  %v2767_v3 = vld [vmem:[#allocation21_spill] sm:$0xff] }
 0x24e   :  { %v1316_v45 = vrot.slane %v1315_v10, 1  ;;  %v1334_v20 = vmul.f32 %v2760_v33, %v2759_v43  ;;  %v1335_v6 = vmul.f32 %v2762_v2, %v2761_v63  ;;  %v1336_v34 = vmul.f32 %v2763_v49, %v2597_v42  ;;  %v2770_v60 = vld [vmem:[#allocation11_spill] sm:$0xff]  ;;  %v2771_v42 = vld [vmem:[#allocation17_spill] sm:$0xff] }
 0x24f   :  { %v1310_v31 = vadd.f32 %v1309_v50, %v1308_v53  ;;  %v1337_v54 = vmul.f32 %v2764_v0, %v2610_v22  ;;  %v1338_v24 = vmul.f32 %v2765_v13, %v2617_v9  ;;  %v1339_v11 = vmul.f32 %v2766_v40, %v1247_v59  ;;  %v2772_v22 = vld [vmem:[#allocation14_spill] sm:$0xff] }
 0x250   :  { %v1317_v51 = vadd.f32 %v1316_v45, %v1315_v10  ;;  %v1340_v62 = vmul.f32 %v2767_v3, %v1254_v16  ;;  %v1341_v25 = vmul.f32 %v2600_v12, %v1261_v35  ;;  %v1342_v32 = vmul.f32 %v2554_v55, %v2768_v23  ;;  %v2773_v10 = vld [vmem:[#allocation20_spill] sm:$0xff] }
 0x251   :  { %v1343_v28 = vmul.f32 %v2770_v60, %v2769_v41  ;;  %v1344_v15 = vmul.f32 %v2771_v42, %v2623_v8  ;;  %v1345_v53 = vmul.f32 %v2772_v22, %v1289_v1  ;;  %v1346_v9 = vmul.f32 %v2571_v57, %v1296_v61 }
 0x252   :  { %v1347_v18 = vmul.f32 %v2773_v10, %v1303_v36  ;;  %v1348_v59 = vmul.f32 %v2615_v26, %v1310_v31  ;;  %v1349_v16 = vmul.f32 %v1773_v17, %v1317_v51  ;;  %v1383_v55 = vsel %vm1382_vm1, %v1319_v38, %v1318_v29 }
 0x253   :  { %v1385_v12 = vsel %vm1384_vm2, %v1320_v4, %v1383_v55  ;;  %v1396_v35 = vsel %vm1382_vm1, %v1327_v5, %v1326_v47  ;;  %v1403_v8 = vsel %vm1382_vm1, %v1335_v6, %v1334_v20  ;;  %v1410_v27 = vsel %vm1382_vm1, %v1343_v28, %v1342_v32 }
 0x254   :  { %v1387_v1 = vsel %vm1386_vm3, %v1321_v21, %v1385_v12  ;;  %v1397_v57 = vsel %vm1384_vm2, %v1328_v14, %v1396_v35  ;;  %v1404_v61 = vsel %vm1384_vm2, %v1336_v34, %v1403_v8  ;;  %v1411_v36 = vsel %vm1384_vm2, %v1344_v15, %v1410_v27 }
 0x255   :  { %v1389_v26 = vsel %vm1388_vm4, %v1322_v19, %v1387_v1  ;;  %v1398_v17 = vsel %vm1386_vm3, %v1329_v7, %v1397_v57  ;;  %v1405_v50 = vsel %vm1386_vm3, %v1337_v54, %v1404_v61  ;;  %v1412_v29 = vsel %vm1386_vm3, %v1345_v53, %v1411_v36 }
 0x256   :  { %v1391_v38 = vsel %vm1390_vm5, %v1323_v44, %v1389_v26  ;;  %v1399_v4 = vsel %vm1388_vm4, %v1330_v48, %v1398_v17  ;;  %v1406_v47 = vsel %vm1388_vm4, %v1338_v24, %v1405_v50  ;;  %v1413_v21 = vsel %vm1388_vm4, %v1346_v9, %v1412_v29 }
 0x257   :  { %v1393_v5 = vsel %vm1392_vm6, %v1324_v39, %v1391_v38  ;;  %v1400_v19 = vsel %vm1390_vm5, %v1331_v58, %v1399_v4  ;;  %v1407_v14 = vsel %vm1390_vm5, %v1339_v11, %v1406_v47  ;;  %v1414_v7 = vsel %vm1390_vm5, %v1347_v18, %v1413_v21 }
 0x258   :  { %v1395_v46 = vsel %vm1394_vm7, %v1325_v30, %v1393_v5  ;;  %v1401_v37 = vsel %vm1392_vm6, %v1332_v52, %v1400_v19  ;;  %v1408_v44 = vsel %vm1392_vm6, %v1340_v62, %v1407_v14  ;;  %v1415_v48 = vsel %vm1392_vm6, %v1348_v59, %v1414_v7 }
 0x259   :  { %v1402_v45 = vsel %vm1394_vm7, %v1333_v56, %v1401_v37  ;;  %v1409_v43 = vsel %vm1394_vm7, %v1341_v25, %v1408_v44  ;;  %v1416_v39 = vsel %vm1394_vm7, %v1349_v16, %v1415_v48  ;;  %1421 = vst.msk [vmem:[#allocation2] sm:$0xff] %vm62_vm0, %v1395_v46 }
 0x25a   :  { %1422 = vst.msk [vmem:[#allocation2 + $0x8] sm:$0xff] %vm62_vm0, %v1402_v45  ;;  %1423 = vst.msk [vmem:[#allocation2 + $0x10] sm:$0xff] %vm62_vm0, %v1409_v43 }
 0x25b   :  { %1424 = vst.msk [vmem:[#allocation2 + $0x18] sm:$0xff] %vm62_vm0, %v1416_v39 }
 0x25c   :  { %1809 = shalt.err (!%p1806_p4)
}
 0x25d   :  { %s1810_s30 = scalar_lea.hbm %s2726_s4, 512 }
 0x25e   :  { %p1811_p5 = scmp.ne.s32.totalorder %s2726_s4, %s1810_s30  ;;  %p1814_p6 = scmp.lt.u32.totalorder %s1810_s30, %s2726_s4 }
 0x260   :  { %p1816_p7 = pnand %p1814_p6, %p1811_p5 }
 0x262   :  { %1819 = shalt.err (!%p1816_p7)
}
 0x263   :  { %s1823_s8 = smov 128   ;;  %s1824_s3 = smov 8  }
 0x264   :  { %1436 = dma.vmem_to_hbm [thread:$0]  %s1431_s1, 512, %s2726_s4, [#allocation3], %s1823_s8, %s1823_s8, %s1824_s3  }
 0x265   :  { %1820 = dma.done.wait [#allocation3], 512  }
 0x266   :  { %1821 = vsyncadd [#allocation3], 4294966784 }
 0x267   :  { %1440 = vsyncpa [#allocation3], 1 }

// kernel: tpu_custom_call.1
= control target key start
LH: loop header
LB: loop body
LE: loop exit
PB: predicated region body
PF: predicated region fallthrough
CT: control target
= control target key end

     0   :  { %vm62_vm0 = vcmask 261120   ;;  %s2722_s0 = inlined_call_operand.vmem [shape: f32[256,32], index: 0, kind: input, shape index: {}]   ;;  %s2723_s1 = inlined_call_operand.vmem [shape: f32[32,32], index: 1, kind: input, shape index: {}]   ;;  %s2724_s2 = inlined_call_operand.vmem [shape: f32[1,32], index: 2, kind: input, shape index: {}]   ;;  %s2725_s3 = inlined_call_operand.vmem [shape: f32[1,32], index: 3, kind: input, shape index: {}]   ;;  %s2726_s4 = inlined_call_operand.hbm [shape: f32[32,32], index: 4, kind: output, shape index: {}]  }
   0x1   :  { %v52_v0 = vld [vmem:[%s2723_s1] sm:$0xff]  ;;  %v53_v1 = vld [vmem:[%s2723_s1 + $0x8] sm:$0xff]  ;;  %v54_v2 = vld [vmem:[%s2723_s1 + $0x10] sm:$0xff] }
   0x2   :  { %v1567_v3 = vpack.c.bf16 %v53_v1, %v52_v0  ;;  %v55_v4 = vld [vmem:[%s2723_s1 + $0x18] sm:$0xff]  ;;  %v1865_v5 = vld [vmem:[%s2722_s0] sm:$0xff]  ;;  %v1879_v8 = vld [vmem:[%s2722_s0 + $0x8] sm:$0xff] }
   0x3   :  { %v1870_v6 = vld [vmem:[%s2722_s0 + $0x80] sm:$0xff]  ;;  %v1571_v7 = vpack.c.bf16 %v55_v4, %v54_v2  ;;  %1519 = vmatprep.mubr.msk.f32.mxu0 %vm62_vm0, %v1865_v5  ;;  %v1884_v9 = vld [vmem:[%s2722_s0 + $0x88] sm:$0xff]  ;;  %v22_v10 = vld [vmem:[%s2722_s0 + $0x10] sm:$0xff] }
   0x4   :  { %1543 = vmatprep.mubr.msk.f32.mxu1 %vm62_vm0, %v1870_v6  ;;  %1568 = vmatprep.subr.bf16.mxu0 %v1567_v3  ;;  %v38_v11 = vld [vmem:[%s2722_s0 + $0x90] sm:$0xff]  ;;  %v1900_v12 = vld [vmem:[%s2722_s0 + $0x18] sm:$0xff] }
   0x5   :  { %1575 = vmatprep.subr.bf16.mxu1 %v1567_v3  ;;  %1570 = vmatpush3.bf16.msra.mxu0 %v1567_v3  ;;  %v1906_v13 = vld [vmem:[%s2722_s0 + $0x98] sm:$0xff] }
   0x6   :  { %1577 = vmatpush3.bf16.msra.mxu1 %v1567_v3  ;;  %1572 = vmatprep.subr.bf16.mxu0 %v1571_v7 }
   0x7   :  { %1576 = vmatprep.subr.bf16.mxu1 %v1571_v7 }
   0x9   :  { %1574 = vmatpush3.bf16.msra.mxu0 %v1571_v7 }
   0xa   :  { %1578 = vmatpush3.bf16.msra.mxu1 %v1571_v7 }
   0xc   :  { %1520 = vmatmul.mubr.msk.f32.vlgmr.msra.gmra.mrb[0].mxu0 %vm62_vm0, %v1879_v8 }
   0xd   :  { %1544 = vmatmul.mubr.msk.f32.vlgmr.msra.gmra.mrb[0].mxu1 %vm62_vm0, %v1884_v9  ;;  %1522 = vmatprep.mubr.msk.f32.mxu0 %vm62_vm0, %v22_v10 }
   0xe   :  { %1546 = vmatprep.mubr.msk.f32.mxu1 %vm62_vm0, %v38_v11 }
   0xf   :  { %9 = vsyncpa [#allocation3], 0  ;;  %v24_v14 = vld [vmem:[%s2722_s0 + $0x20] sm:$0xff]  ;;  %v25_v16 = vld [vmem:[%s2722_s0 + $0x28] sm:$0xff]  ;;  %vm1382_vm1 = vcmask 1041409   ;;  %vm1384_vm2 = vcmask 1042434  }
  0x10   :  { %v40_v15 = vld [vmem:[%s2722_s0 + $0xa0] sm:$0xff]  ;;  %1523 = vmatmul.mubr.msk.f32.gmra.mrb[2].mxu0 %vm62_vm0, %v1900_v12  ;;  %v41_v17 = vld [vmem:[%s2722_s0 + $0xa8] sm:$0xff]  ;;  %v26_v18 = vld [vmem:[%s2722_s0 + $0x30] sm:$0xff]  ;;  %vm1386_vm3 = vcmask 1043459   ;;  %vm1388_vm4 = vcmask 1044484   ;;  %vm1390_vm5 = vcmask 1045509  }
  0x11   :  { %1547 = vmatmul.mubr.msk.f32.gmra.mrb[2].mxu1 %vm62_vm0, %v1906_v13  ;;  %1525 = vmatprep.mubr.msk.f32.mxu0 %vm62_vm0, %v24_v14  ;;  %v42_v19 = vld [vmem:[%s2722_s0 + $0xb0] sm:$0xff]  ;;  %v27_v20 = vld [vmem:[%s2722_s0 + $0x38] sm:$0xff]  ;;  %v28_v22 = vld [vmem:[%s2722_s0 + $0x40] sm:$0xff]  ;;  %vm1392_vm6 = vcmask 1046534   ;;  %vm1394_vm7 = vcmask 1047559  }
  0x12   :  { %1549 = vmatprep.mubr.msk.f32.mxu1 %vm62_vm0, %v40_v15  ;;  %v43_v21 = vld [vmem:[%s2722_s0 + $0xb8] sm:$0xff]  ;;  %v44_v23 = vld [vmem:[%s2722_s0 + $0xc0] sm:$0xff]  ;;  %v1954_v24 = vld [vmem:[%s2722_s0 + $0x48] sm:$0xff] }
  0x13   :  { %v1960_v25 = vld [vmem:[%s2722_s0 + $0xc8] sm:$0xff]  ;;  %v30_v26 = vld [vmem:[%s2722_s0 + $0x50] sm:$0xff]  ;;  %v31_v28 = vld [vmem:[%s2722_s0 + $0x58] sm:$0xff] }
  0x14   :  { %1526 = vmatmul.mubr.msk.f32.gmra.mrb[4].mxu0 %vm62_vm0, %v25_v16  ;;  %v46_v27 = vld [vmem:[%s2722_s0 + $0xd0] sm:$0xff]  ;;  %v47_v29 = vld [vmem:[%s2722_s0 + $0xd8] sm:$0xff]  ;;  %v32_v30 = vld [vmem:[%s2722_s0 + $0x60] sm:$0xff] }
  0x15   :  { %1550 = vmatmul.mubr.msk.f32.gmra.mrb[4].mxu1 %vm62_vm0, %v41_v17  ;;  %1528 = vmatprep.mubr.msk.f32.mxu0 %vm62_vm0, %v26_v18  ;;  %v48_v31 = vld [vmem:[%s2722_s0 + $0xe0] sm:$0xff]  ;;  %v33_v32 = vld [vmem:[%s2722_s0 + $0x68] sm:$0xff]  ;;  %v34_v34 = vld [vmem:[%s2722_s0 + $0x70] sm:$0xff] }
  0x16   :  { %1552 = vmatprep.mubr.msk.f32.mxu1 %vm62_vm0, %v42_v19  ;;  %v49_v33 = vld [vmem:[%s2722_s0 + $0xe8] sm:$0xff]  ;;  %v50_v35 = vld [vmem:[%s2722_s0 + $0xf0] sm:$0xff]  ;;  %v35_v36 = vld [vmem:[%s2722_s0 + $0x78] sm:$0xff] }
  0x17   :  { %v51_v37 = vld [vmem:[%s2722_s0 + $0xf8] sm:$0xff]  ;;  %v2017_v38 = vld [vmem:[%s2724_s2] ss:$0 sm:$0xff] }
  0x18   :  { %1529 = vmatmul.mubr.msk.f32.gmra.mrb[6].mxu0 %vm62_vm0, %v27_v20  ;;  %v2030_v57 = vld [vmem:[%s2725_s3] ss:$0 sm:$0xff] }
  0x19   :  { %1553 = vmatmul.mubr.msk.f32.gmra.mrb[6].mxu1 %vm62_vm0, %v43_v21  ;;  %1531 = vmatprep.mubr.msk.f32.mxu0 %vm62_vm0, %v28_v22 }
  0x1a   :  { %1555 = vmatprep.mubr.msk.f32.mxu1 %vm62_vm0, %v44_v23 }
  0x1c   :  { %1532 = vmatmul.mubr.msk.f32.gmra.mrb[8].mxu0 %vm62_vm0, %v1954_v24 }
  0x1d   :  { %1556 = vmatmul.mubr.msk.f32.gmra.mrb[8].mxu1 %vm62_vm0, %v1960_v25  ;;  %1534 = vmatprep.mubr.msk.f32.mxu0 %vm62_vm0, %v30_v26 }
  0x1e   :  { %1558 = vmatprep.mubr.msk.f32.mxu1 %vm62_vm0, %v46_v27 }
  0x20   :  { %1535 = vmatmul.mubr.msk.f32.gmra.mrb[10].mxu0 %vm62_vm0, %v31_v28 }
  0x21   :  { %1559 = vmatmul.mubr.msk.f32.gmra.mrb[10].mxu1 %vm62_vm0, %v47_v29  ;;  %1537 = vmatprep.mubr.msk.f32.mxu0 %vm62_vm0, %v32_v30 }
  0x22   :  { %1561 = vmatprep.mubr.msk.f32.mxu1 %vm62_vm0, %v48_v31 }
  0x24   :  { %1538 = vmatmul.mubr.msk.f32.gmra.mrb[12].mxu0 %vm62_vm0, %v33_v32 }
  0x25   :  { %1562 = vmatmul.mubr.msk.f32.gmra.mrb[12].mxu1 %vm62_vm0, %v49_v33  ;;  %1540 = vmatprep.mubr.msk.f32.mxu0 %vm62_vm0, %v34_v34 }
  0x26   :  { %1564 = vmatprep.mubr.msk.f32.mxu1 %vm62_vm0, %v50_v35 }
  0x28   :  { %1541 = vmatmul.mubr.msk.f32.gmra.mrb[14].mxu0 %vm62_vm0, %v35_v36 }
  0x29   :  { %1565 = vmatmul.mubr.msk.f32.gmra.mrb[14].mxu1 %vm62_vm0, %v51_v37 }
  0xdf   :  { %v1521_v39 = vpop.f32.mrb[0].mxu0 }
  0xe0   :  { %v1545_v40 = vpop.f32.mrb[0].mxu1  ;;  %v231_v41 = vadd.f32 %v1521_v39, %v2017_v38  ;;  %v225_v43 = vpop.f32.mrb[1].mxu0 }
  0xe1   :  { %v311_v42 = vadd.f32 %v1545_v40, %v2017_v38  ;;  %v305_v44 = vpop.f32.mrb[1].mxu1  ;;  %v226_v45 = vadd.f32 %v2017_v38, %v225_v43 }
  0xe2   :  { %1582 = vtanh.f32 %v231_v41  ;;  %v306_v46 = vadd.f32 %v2017_v38, %v305_v44 }
  0xe3   :  { %1584 = vtanh.f32 %v311_v42  ;;  %v1524_v47 = vpop.f32.mrb[2].mxu0 }
  0xe4   :  { %v1548_v48 = vpop.f32.mrb[2].mxu1  ;;  %1586 = vtanh.f32 %v226_v45  ;;  %v235_v49 = vpop.f32.mrb[3].mxu0  ;;  %v241_v51 = vadd.f32 %v1524_v47, %v2017_v38 }
  0xe5   :  { %v315_v50 = vpop.f32.mrb[3].mxu1  ;;  %1588 = vtanh.f32 %v306_v46  ;;  %v321_v56 = vadd.f32 %v1548_v48, %v2017_v38  ;;  %v236_v0 = vadd.f32 %v2017_v38, %v235_v49 }
  0xe6   :  { %1590 = vtanh.f32 %v241_v51  ;;  %v316_v20 = vadd.f32 %v2017_v38, %v315_v50 }
  0xe7   :  { %v1527_v52 = vpop.f32.mrb[4].mxu0  ;;  %1592 = vtanh.f32 %v321_v56 }
  0xe8   :  { %v1551_v53 = vpop.f32.mrb[4].mxu1  ;;  %v245_v54 = vpop.f32.mrb[5].mxu0  ;;  %1594 = vtanh.f32 %v236_v0  ;;  %v251_v32 = vadd.f32 %v1527_v52, %v2017_v38 }
  0xe9   :  { %v2024_v55 = vpop.f32.mrb[5].mxu1  ;;  %v246_v34 = vadd.f32 %v2017_v38, %v245_v54  ;;  %v331_v43 = vadd.f32 %v1551_v53, %v2017_v38 }
  0xeb   :  { %v2032_v58 = vpop.f32.mrb[6].mxu0 }
  0xec   :  { %v2034_v59 = vpop.f32.mrb[6].mxu1  ;;  %v1583_v60 = vpop.eup %1582 }
  0xed   :  { %v2036_v61 = vpop.f32.mrb[7].mxu0  ;;  %v2038_v62 = vpop.f32.mrb[7].mxu1  ;;  %v423_v1 = vmul.f32 %v1583_v60, %v2030_v57 }
  0xee   :  { %v1585_v63 = vpop.eup %1584 }
  0xef   :  { %v1587_v2 = vpop.eup %1586  ;;  %v439_v3 = vmul.f32 %v1585_v63, %v2030_v57  ;;  %v1533_v4 = vpop.f32.mrb[8].mxu0  ;;  %v457_v7 = vsel %vm62_vm0, %v423_v1, 0.0 }
  0xf0   :  { %v1557_v10 = vpop.f32.mrb[8].mxu1  ;;  %v422_v11 = vmul.f32 %v1587_v2, %v2030_v57  ;;  %v1589_v14 = vpop.eup %1588  ;;  %v271_v15 = vadd.f32 %v1533_v4, %v2017_v38  ;;  %458 = vadd.xlane.f32.xlu0 %v457_v7 }
  0xf1   :  { %v265_v16 = vpop.f32.mrb[9].mxu0  ;;  %v505_v17 = vsel %vm62_vm0, %v439_v3, 0.0  ;;  %v351_v18 = vadd.f32 %v1557_v10, %v2017_v38  ;;  %v2048_v19 = vpop.f32.mrb[9].mxu1  ;;  %v438_v23 = vmul.f32 %v1589_v14, %v2030_v57  ;;  %v326_v10 = vadd.f32 %v2017_v38, %v2024_v55 }
  0xf2   :  { %506 = vadd.xlane.f32.xlu1 %v505_v17  ;;  %1596 = vtanh.f32 %v271_v15  ;;  %v266_v21 = vadd.f32 %v2017_v38, %v265_v16  ;;  %v454_v22 = vsel %vm62_vm0, %v422_v11, 0.0  ;;  %v1591_v28 = vpop.eup %1590 }
  0xf3   :  { %v1536_v26 = vpop.f32.mrb[10].mxu0  ;;  %1598 = vtanh.f32 %v351_v18  ;;  %v1593_v33 = vpop.eup %1592  ;;  %v502_v35 = vsel %vm62_vm0, %v438_v23, 0.0  ;;  %v425_v36 = vmul.f32 %v1591_v28, %v2030_v57 }
  0xf4   :  { %v1560_v27 = vpop.f32.mrb[10].mxu1  ;;  %455 = vadd.xlane.f32.xlu0 %v454_v22  ;;  %v281_v29 = vadd.f32 %v1536_v26, %v2017_v38  ;;  %v275_v30 = vpop.f32.mrb[11].mxu0  ;;  %1600 = vtanh.f32 %v316_v20  ;;  %v441_v44 = vmul.f32 %v1593_v33, %v2030_v57  ;;  %v256_v26 = vadd.f32 %v2017_v38, %v2036_v61 }
  0xf5   :  { %v355_v31 = vpop.f32.mrb[11].mxu1  ;;  %1602 = vtanh.f32 %v266_v21  ;;  %v361_v40 = vadd.f32 %v1560_v27, %v2017_v38  ;;  %v1595_v45 = vpop.eup %1594  ;;  %v463_v46 = vsel %vm62_vm0, %v425_v36, 0.0  ;;  %v276_v56 = vadd.f32 %v2017_v38, %v275_v30 }
  0xf6   :  { %1604 = vtanh.f32 %v281_v29  ;;  %v511_v60 = vsel %vm62_vm0, %v441_v44, 0.0  ;;  %v424_v63 = vmul.f32 %v1595_v45, %v2030_v57  ;;  %v356_v15 = vadd.f32 %v2017_v38, %v355_v31 }
  0xf7   :  { %v1539_v37 = vpop.f32.mrb[12].mxu0  ;;  %1606 = vtanh.f32 %v251_v32  ;;  %v336_v61 = vadd.f32 %v2017_v38, %v2038_v62  ;;  %v346_v62 = vadd.f32 %v2017_v38, %v2048_v19 }
  0xf8   :  { %v1563_v39 = vpop.f32.mrb[12].mxu1  ;;  %503 = vadd.xlane.f32.xlu0 %v502_v35  ;;  %v2060_v41 = vpop.f32.mrb[13].mxu0  ;;  %1608 = vtanh.f32 %v246_v34  ;;  %v460_v16 = vsel %vm62_vm0, %v424_v63, 0.0  ;;  %v291_v21 = vadd.f32 %v1539_v37, %v2017_v38 }
  0xf9   :  { %v2062_v42 = vpop.f32.mrb[13].mxu1  ;;  %1610 = vtanh.f32 %v361_v40  ;;  %v371_v31 = vadd.f32 %v1563_v39, %v2017_v38 }
  0xfa   :  { %1612 = vtanh.f32 %v331_v43 }
  0xfb   :  { %v2067_v47 = vpop.f32.mrb[14].mxu0 }
  0xfc   :  { %v1566_v48 = vpop.f32.mrb[14].mxu1  ;;  %v1597_v49 = vpop.eup %1596  ;;  %464 = vadd.xlane.f32.xlu0 %v463_v46 }
  0xfd   :  { %v295_v50 = vpop.f32.mrb[15].mxu0  ;;  %v375_v51 = vpop.f32.mrb[15].mxu1  ;;  %v431_v52 = vmul.f32 %v1597_v49, %v2030_v57  ;;  %v381_v0 = vadd.f32 %v1566_v48, %v2017_v38  ;;  %v286_v48 = vadd.f32 %v2017_v38, %v2060_v41 }
  0xfe   :  { %v296_v53 = vadd.f32 %v2017_v38, %v295_v50  ;;  %v1599_v54 = vpop.eup %1598  ;;  %v376_v4 = vadd.f32 %v2017_v38, %v375_v51 }
  0xff   :  { %v1601_v1 = vpop.eup %1600  ;;  %v481_v2 = vsel %vm62_vm0, %v431_v52, 0.0  ;;  %v447_v3 = vmul.f32 %v1599_v54, %v2030_v57  ;;  %v261_v54 = vadd.f32 %v2032_v58, %v2017_v38  ;;  %v301_v58 = vadd.f32 %v2067_v47, %v2017_v38 }
 0x100   :  { %1614 = vtanh.f32 %v296_v53  ;;  %v1603_v7 = vpop.eup %1602  ;;  %482 = vadd.xlane.f32.xlu1 %v481_v2  ;;  %512 = vadd.xlane.f32.xlu0 %v511_v60  ;;  %v440_v18 = vmul.f32 %v1601_v1, %v2030_v57 }
 0x101   :  { %1616 = vtanh.f32 %v381_v0  ;;  %v529_v11 = vsel %vm62_vm0, %v447_v3, 0.0  ;;  %v1605_v14 = vpop.eup %1604  ;;  %v430_v17 = vmul.f32 %v1603_v7, %v2030_v57 }
 0x102   :  { %1618 = vtanh.f32 %v376_v4  ;;  %v1607_v20 = vpop.eup %1606  ;;  %v433_v55 = vmul.f32 %v1605_v14, %v2030_v57  ;;  %v508_v29 = vsel %vm62_vm0, %v440_v18, 0.0 }
 0x103   :  { %1620 = vtanh.f32 %v276_v56  ;;  %v1609_v22 = vpop.eup %1608  ;;  %v478_v28 = vsel %vm62_vm0, %v430_v17, 0.0  ;;  %v427_v30 = vmul.f32 %v1607_v20, %v2030_v57  ;;  %v366_v56 = vadd.f32 %v2017_v38, %v2062_v42 }
 0x104   :  { %530 = vadd.xlane.f32.xlu1 %v529_v11  ;;  %461 = vadd.xlane.f32.xlu0 %v460_v16  ;;  %1622 = vtanh.f32 %v326_v10  ;;  %v1611_v23 = vpop.eup %1610  ;;  %v487_v33 = vsel %vm62_vm0, %v433_v55, 0.0  ;;  %v426_v52 = vmul.f32 %v1609_v22, %v2030_v57  ;;  %v341_v42 = vadd.f32 %v2034_v59, %v2017_v38 }
 0x105   :  { %1624 = vtanh.f32 %v356_v15  ;;  %v1613_v27 = vpop.eup %1612  ;;  %v449_v34 = vmul.f32 %v1611_v23, %v2030_v57  ;;  %v469_v40 = vsel %vm62_vm0, %v427_v30, 0.0 }
 0x106   :  { %1626 = vtanh.f32 %v291_v21  ;;  %v443_v43 = vmul.f32 %v1613_v27, %v2030_v57  ;;  %v466_v60 = vsel %vm62_vm0, %v426_v52, 0.0 }
 0x107   :  { %1628 = vtanh.f32 %v256_v26  ;;  %v535_v46 = vsel %vm62_vm0, %v449_v34, 0.0 }
 0x108   :  { %479 = vadd.xlane.f32.xlu1 %v478_v28  ;;  %509 = vadd.xlane.f32.xlu0 %v508_v29  ;;  %1630 = vtanh.f32 %v371_v31  ;;  %v517_v50 = vsel %vm62_vm0, %v443_v43, 0.0 }
 0x109   :  { %1632 = vtanh.f32 %v336_v61 }
 0x10a   :  { %v1615_v32 = vpop.eup %1614  ;;  %1634 = vtanh.f32 %v346_v62 }
 0x10b   :  { %v1617_v35 = vpop.eup %1616  ;;  %v2098_v36 = vmul.f32 %v1615_v32, %v2030_v57  ;;  %1636 = vtanh.f32 %v286_v48 }
 0x10c   :  { %v1619_v37 = vpop.eup %1618  ;;  %v2103_v39 = vmul.f32 %v1617_v35, %v2030_v57  ;;  %488 = vadd.xlane.f32.xlu1 %v487_v33  ;;  %470 = vadd.xlane.f32.xlu0 %v469_v40  ;;  %1638 = vtanh.f32 %v261_v54 }
 0x10d   :  { %v1621_v44 = vpop.eup %1620  ;;  %v2106_v45 = vmul.f32 %v1619_v37, %v2030_v57  ;;  %1640 = vtanh.f32 %v366_v56  ;;  %v496_v37 = vsel %vm62_vm0, %v2098_v36, 0.0 }
 0x10e   :  { %v1623_v49 = vpop.eup %1622  ;;  %v432_v51 = vmul.f32 %v1621_v44, %v2030_v57  ;;  %1642 = vtanh.f32 %v301_v58  ;;  %v547_v43 = vsel %vm62_vm0, %v2103_v39, 0.0 }
 0x10f   :  { %v1625_v53 = vpop.eup %1624  ;;  %v442_v0 = vmul.f32 %v1623_v49, %v2030_v57  ;;  %1644 = vtanh.f32 %v341_v42  ;;  %v544_v40 = vsel %vm62_vm0, %v2106_v45, 0.0 }
 0x110   :  { %536 = vadd.xlane.f32.xlu1 %v535_v46  ;;  %518 = vadd.xlane.f32.xlu0 %v517_v50  ;;  %v1627_v19 = vpop.eup %1626  ;;  %v484_v41 = vsel %vm62_vm0, %v432_v51, 0.0  ;;  %v448_v63 = vmul.f32 %v1625_v53, %v2030_v57 }
 0x111   :  { %v1629_v1 = vpop.eup %1628  ;;  %v435_v2 = vmul.f32 %v1627_v19, %v2030_v57  ;;  %v514_v7 = vsel %vm62_vm0, %v442_v0, 0.0 }
 0x112   :  { %v1631_v3 = vpop.eup %1630  ;;  %v532_v4 = vsel %vm62_vm0, %v448_v63, 0.0  ;;  %v428_v10 = vmul.f32 %v1629_v1, %v2030_v57 }
 0x113   :  { %v1633_v11 = vpop.eup %1632  ;;  %v493_v47 = vsel %vm62_vm0, %v435_v2, 0.0  ;;  %v451_v14 = vmul.f32 %v1631_v3, %v2030_v57 }
 0x114   :  { %485 = vadd.xlane.f32.xlu1 %v484_v41  ;;  %467 = vadd.xlane.f32.xlu0 %v466_v60  ;;  %v1635_v15 = vpop.eup %1634  ;;  %v472_v16 = vsel %vm62_vm0, %v428_v10, 0.0  ;;  %v444_v38 = vmul.f32 %v1633_v11, %v2030_v57 }
 0x115   :  { %v1637_v59 = vpop.eup %1636  ;;  %v541_v17 = vsel %vm62_vm0, %v451_v14, 0.0  ;;  %v446_v22 = vmul.f32 %v1635_v15, %v2030_v57 }
 0x116   :  { %v1639_v18 = vpop.eup %1638  ;;  %v520_v20 = vsel %vm62_vm0, %v444_v38, 0.0  ;;  %v434_v21 = vmul.f32 %v1637_v59, %v2030_v57 }
 0x117   :  { %v1641_v55 = vpop.eup %1640  ;;  %v526_v27 = vsel %vm62_vm0, %v446_v22, 0.0  ;;  %v429_v29 = vmul.f32 %v1639_v18, %v2030_v57 }
 0x118   :  { %533 = vadd.xlane.f32.xlu1 %v532_v4  ;;  %515 = vadd.xlane.f32.xlu0 %v514_v7  ;;  %v1643_v23 = vpop.eup %1642  ;;  %v490_v26 = vsel %vm62_vm0, %v434_v21, 0.0  ;;  %v450_v28 = vmul.f32 %v1641_v55, %v2030_v57 }
 0x119   :  { %v1645_v30 = vpop.eup %1644  ;;  %v437_v31 = vmul.f32 %v1643_v23, %v2030_v57  ;;  %v475_v33 = vsel %vm62_vm0, %v429_v29, 0.0 }
 0x11a   :  { %v538_v32 = vsel %vm62_vm0, %v450_v28, 0.0  ;;  %v445_v34 = vmul.f32 %v1645_v30, %v2030_v57 }
 0x11b   :  { %v499_v35 = vsel %vm62_vm0, %v437_v31, 0.0 }
 0x11c   :  { %494 = vadd.xlane.f32.xlu1 %v493_v47  ;;  %473 = vadd.xlane.f32.xlu0 %v472_v16  ;;  %v523_v61 = vsel %vm62_vm0, %v445_v34, 0.0 }
 0x120   :  { %542 = vadd.xlane.f32.xlu1 %v541_v17  ;;  %521 = vadd.xlane.f32.xlu0 %v520_v20 }
 0x124   :  { %491 = vadd.xlane.f32.xlu1 %v490_v26  ;;  %527 = vadd.xlane.f32.xlu0 %v526_v27 }
 0x128   :  { %539 = vadd.xlane.f32.xlu1 %v538_v32  ;;  %476 = vadd.xlane.f32.xlu0 %v475_v33 }
 0x12c   :  { %500 = vadd.xlane.f32.xlu1 %v499_v35  ;;  %524 = vadd.xlane.f32.xlu0 %v523_v61 }
 0x130   :  { %497 = vadd.xlane.f32.xlu1 %v496_v37 }
 0x134   :  { %545 = vadd.xlane.f32.xlu1 %v544_v40 }
 0x138   :  { %548 = vadd.xlane.f32.xlu1 %v547_v43 }
 0x17d   :  { %v459_v57 = vpop.xlane.xlu0 %458 }
 0x17e   :  { %v556_v62 = vrot.slane %v459_v57, 4 }
 0x17f   :  { %v507_v44 = vpop.xlane.xlu1 %506 }
 0x180   :  { %v652_v46 = vrot.slane %v507_v44, 4  ;;  %v557_v48 = vmax.f32 %v459_v57, %v556_v62 }
 0x181   :  { %v456_v50 = vpop.xlane.xlu0 %455 }
 0x182   :  { %v653_v49 = vmax.f32 %v507_v44, %v652_v46  ;;  %v558_v51 = vrot.slane %v557_v48, 2  ;;  %v550_v52 = vrot.slane %v456_v50, 4 }
 0x184   :  { %v654_v53 = vrot.slane %v653_v49, 2  ;;  %v559_v36 = vmax.f32 %v557_v48, %v558_v51  ;;  %v551_v54 = vmax.f32 %v456_v50, %v550_v52 }
 0x185   :  { %v504_v56 = vpop.xlane.xlu0 %503 }
 0x186   :  { %v655_v19 = vmax.f32 %v653_v49, %v654_v53  ;;  %v560_v45 = vrot.slane %v559_v36, 1  ;;  %v552_v41 = vrot.slane %v551_v54, 2  ;;  %v646_v60 = vrot.slane %v504_v56, 4 }
 0x188   :  { %v656_v63 = vrot.slane %v655_v19, 1  ;;  %v561_v39 = vmax.f32 %v559_v36, %v560_v45  ;;  %v553_v0 = vmax.f32 %v551_v54, %v552_v41  ;;  %v647_v1 = vmax.f32 %v504_v56, %v646_v60 }
 0x189   :  { %v465_v2 = vpop.xlane.xlu0 %464 }
 0x18a   :  { %v657_v58 = vmax.f32 %v655_v19, %v656_v63  ;;  %v743_v3 = vsub.f32 %v459_v57, %v561_v39  ;;  %v554_v42 = vrot.slane %v553_v0, 1  ;;  %v648_v4 = vrot.slane %v647_v1, 2 }
 0x18b   :  { %v568_v7 = vrot.slane %v465_v2, 4 }
 0x18c   :  { %v759_v10 = vsub.f32 %v507_v44, %v657_v58  ;;  %v776_v11 = vmul.f32 1.442695, %v743_v3  ;;  %v555_v47 = vmax.f32 %v553_v0, %v554_v42  ;;  %v649_v14 = vmax.f32 %v647_v1, %v648_v4 }
 0x18d   :  { %v569_v15 = vmax.f32 %v465_v2, %v568_v7  ;;  %v2156_v38 = vpop.xlane.xlu1 %482  ;;  %v2158_v59 = vpop.xlane.xlu0 %512 }
 0x18e   :  { %v808_v16 = vmul.f32 1.442695, %v759_v10  ;;  %1646 = vpow2.f32 %v776_v11  ;;  %v742_v17 = vsub.f32 %v456_v50, %v555_v47  ;;  %v650_v18 = vrot.slane %v649_v14, 1 }
 0x18f   :  { %v570_v20 = vrot.slane %v569_v15, 2  ;;  %v604_v21 = vrot.slane %v2156_v38, 4  ;;  %v664_v22 = vrot.slane %v2158_v59, 4 }
 0x190   :  { %1648 = vpow2.f32 %v808_v16  ;;  %v774_v55 = vmul.f32 1.442695, %v742_v17  ;;  %v651_v23 = vmax.f32 %v649_v14, %v650_v18 }
 0x191   :  { %v571_v26 = vmax.f32 %v569_v15, %v570_v20  ;;  %v605_v27 = vmax.f32 %v2156_v38, %v604_v21  ;;  %v665_v28 = vmax.f32 %v2158_v59, %v664_v22  ;;  %v2164_v29 = vpop.xlane.xlu1 %530  ;;  %v2166_v30 = vpop.xlane.xlu0 %461 }
 0x192   :  { %1650 = vpow2.f32 %v774_v55  ;;  %v758_v31 = vsub.f32 %v504_v56, %v651_v23  ;;  %v700_v33 = vrot.slane %v2164_v29, 4  ;;  %v562_v61 = vrot.slane %v2166_v30, 4 }
 0x193   :  { %v572_v32 = vrot.slane %v571_v26, 1  ;;  %v606_v34 = vrot.slane %v605_v27, 2  ;;  %v666_v35 = vrot.slane %v665_v28, 2 }
 0x194   :  { %v806_v37 = vmul.f32 1.442695, %v758_v31  ;;  %v701_v43 = vmax.f32 %v2164_v29, %v700_v33  ;;  %v2172_v62 = vmax.f32 %v2166_v30, %v562_v61 }
 0x195   :  { %v573_v40 = vmax.f32 %v571_v26, %v572_v32  ;;  %v607_v57 = vmax.f32 %v605_v27, %v606_v34  ;;  %v667_v44 = vmax.f32 %v665_v28, %v666_v35  ;;  %v2174_v46 = vpop.xlane.xlu1 %479  ;;  %v2176_v48 = vpop.xlane.xlu0 %509 }
 0x196   :  { %1652 = vpow2.f32 %v806_v37  ;;  %v702_v50 = vrot.slane %v701_v43, 2  ;;  %v598_v51 = vrot.slane %v2174_v46, 4  ;;  %v564_v36 = vrot.slane %v2172_v62, 2 }
 0x197   :  { %v745_v49 = vsub.f32 %v465_v2, %v573_v40  ;;  %v608_v52 = vrot.slane %v607_v57, 1  ;;  %v668_v53 = vrot.slane %v667_v44, 1  ;;  %v658_v41 = vrot.slane %v2176_v48, 4 }
 0x198   :  { %v1647_v54 = vpop.eup %1646  ;;  %v703_v56 = vmax.f32 %v701_v43, %v702_v50  ;;  %v2181_v45 = vmax.f32 %v2174_v46, %v598_v51 }
 0x199   :  { %v780_v19 = vmul.f32 1.442695, %v745_v49  ;;  %v844_v63 = vrot.slane %v1647_v54, 4  ;;  %v1063_v39 = vmul.f32 %v1647_v54, %v1879_v8  ;;  %v609_v0 = vmax.f32 %v607_v57, %v608_v52 }
 0x19a   :  { %v1649_v60 = vpop.eup %1648  ;;  %v669_v1 = vmax.f32 %v667_v44, %v668_v53  ;;  %v704_v3 = vrot.slane %v703_v56, 1 }
 0x19b   :  { %v940_v58 = vrot.slane %v1649_v60, 4  ;;  %v1079_v2 = vmul.f32 %v1649_v60, %v1884_v9  ;;  %1654 = vpow2.f32 %v780_v19  ;;  %v845_v42 = vadd.f32 %v1647_v54, %v844_v63 }
 0x19c   :  { %v1101_v4 = vsel %vm62_vm0, %v1063_v39, 0.0  ;;  %v751_v7 = vsub.f32 %v2156_v38, %v609_v0  ;;  %v761_v10 = vsub.f32 %v2158_v59, %v669_v1  ;;  %v1651_v11 = vpop.eup %1650  ;;  %v2190_v8 = vmax.f32 %v703_v56, %v704_v3 }
 0x19d   :  { %v941_v47 = vadd.f32 %v1649_v60, %v940_v58  ;;  %v1213_v14 = vsel %vm62_vm0, %v1079_v2, 0.0  ;;  %v1102_v15 = vrot.slane %v1101_v4, 4  ;;  %v846_v17 = vrot.slane %v845_v42, 2 }
 0x19e   :  { %v1214_v16 = vrot.slane %v1213_v14, 4  ;;  %v838_v18 = vrot.slane %v1651_v11, 4  ;;  %v1062_v9 = vmul.f32 %v1651_v11, %v1865_v5  ;;  %v792_v22 = vmul.f32 1.442695, %v751_v7 }
 0x19f   :  { %v942_v20 = vrot.slane %v941_v47, 2  ;;  %v1103_v21 = vadd.f32 %v1102_v15, %v1101_v4  ;;  %v812_v55 = vmul.f32 1.442695, %v761_v10  ;;  %v847_v38 = vadd.f32 %v846_v17, %v845_v42 }
 0x1a0   :  { %v1215_v23 = vadd.f32 %v1214_v16, %v1213_v14  ;;  %v839_v26 = vadd.f32 %v1651_v11, %v838_v18  ;;  %v1094_v59 = vsel %vm62_vm0, %v1062_v9, 0.0  ;;  %v1653_v27 = vpop.eup %1652  ;;  %1656 = vpow2.f32 %v792_v22 }
 0x1a1   :  { %v943_v28 = vadd.f32 %v942_v20, %v941_v47  ;;  %v1104_v31 = vrot.slane %v1103_v21, 2  ;;  %v1095_v32 = vrot.slane %v1094_v59, 4  ;;  %v848_v34 = vrot.slane %v847_v38, 1 }
 0x1a2   :  { %v1216_v33 = vrot.slane %v1215_v23, 2  ;;  %v840_v35 = vrot.slane %v839_v26, 2  ;;  %v934_v61 = vrot.slane %v1653_v27, 4  ;;  %v1078_v43 = vmul.f32 %v1653_v27, %v1870_v6 }
 0x1a3   :  { %v944_v37 = vrot.slane %v943_v28, 1  ;;  %v1105_v5 = vadd.f32 %v1104_v31, %v1103_v21  ;;  %v1096_v40 = vadd.f32 %v1095_v32, %v1094_v59  ;;  %v849_v44 = vadd.f32 %v848_v34, %v847_v38  ;;  %v2218_v34 = vpop.xlane.xlu0 %470 }
 0x1a4   :  { %v1217_v57 = vadd.f32 %v1216_v33, %v1215_v23  ;;  %v841_v49 = vadd.f32 %v840_v35, %v839_v26  ;;  %v935_v50 = vadd.f32 %v1653_v27, %v934_v61  ;;  %v1206_v19 = vsel %vm62_vm0, %v1078_v43, 0.0 }
 0x1a5   :  { %v1655_v51 = vpop.eup %1654  ;;  %v945_v52 = vadd.f32 %v944_v37, %v943_v28  ;;  %v1106_v53 = vrot.slane %v1105_v5, 1  ;;  %v1097_v54 = vrot.slane %v1096_v40, 2  ;;  %1658 = vrcp.f32 %v849_v44 }
 0x1a6   :  { %v1218_v56 = vrot.slane %v1217_v57, 1  ;;  %v842_v60 = vrot.slane %v841_v49, 1  ;;  %v936_v63 = vrot.slane %v935_v50, 2  ;;  %v1207_v1 = vrot.slane %v1206_v19, 4 }
 0x1a7   :  { %1660 = vrcp.f32 %v945_v52  ;;  %v2196_v39 = vadd.f32 %v1106_v53, %v1105_v5  ;;  %v1098_v0 = vadd.f32 %v1097_v54, %v1096_v40  ;;  %v856_v3 = vrot.slane %v1655_v51, 4 }
 0x1a8   :  { %v2198_v6 = vadd.f32 %v1218_v56, %v1217_v57  ;;  %v843_v58 = vadd.f32 %v842_v60, %v841_v49  ;;  %v937_v2 = vadd.f32 %v936_v63, %v935_v50  ;;  %v1208_v4 = vadd.f32 %v1207_v1, %v1206_v19 }
 0x1a9   :  { %v1099_v42 = vrot.slane %v1098_v0, 1  ;;  %v1065_v7 = vmul.f32 %v1655_v51, %v1900_v12  ;;  %1662 = vpow2.f32 %v812_v55  ;;  %v857_v11 = vadd.f32 %v1655_v51, %v856_v3 }
 0x1aa   :  { %2727 = vst [vmem:[#allocation5_spill] sm:$0xff] %v2198_v6  ;;  %1664 = vrcp.f32 %v843_v58  ;;  %v938_v10 = vrot.slane %v937_v2, 1  ;;  %v767_v47 = vsub.f32 %v2164_v29, %v2190_v8  ;;  %v1657_v14 = vpop.eup %1656  ;;  %v1209_v16 = vrot.slane %v1208_v4, 2 }
 0x1ab   :  { %v2203_v15 = vadd.f32 %v1099_v42, %v1098_v0  ;;  %v1115_v17 = vsel %vm62_vm0, %v1065_v7, 0.0  ;;  %v565_v18 = vmax.f32 %v2172_v62, %v564_v36  ;;  %v858_v20 = vrot.slane %v857_v11, 2  ;;  %v2213_v62 = vpop.xlane.xlu1 %488 }
 0x1ac   :  { %v939_v9 = vadd.f32 %v938_v10, %v937_v2  ;;  %v1116_v12 = vrot.slane %v1115_v17, 4  ;;  %v892_v21 = vrot.slane %v1657_v14, 4  ;;  %v1210_v22 = vadd.f32 %v1209_v16, %v1208_v4 }
 0x1ad   :  { %v1071_v55 = vmul.f32 %v1657_v14, %v1954_v24  ;;  %v824_v23 = vmul.f32 1.442695, %v767_v47  ;;  %v566_v38 = vrot.slane %v565_v18, 1  ;;  %v859_v29 = vadd.f32 %v858_v20, %v857_v11 }
 0x1ae   :  { %1666 = vrcp.f32 %v939_v9  ;;  %v2210_v8 = vadd.f32 %v1116_v12, %v1115_v17  ;;  %v893_v26 = vadd.f32 %v1657_v14, %v892_v21  ;;  %v1211_v59 = vrot.slane %v1210_v22, 1 }
 0x1af   :  { %v1157_v27 = vsel %vm62_vm0, %v1071_v55, 0.0  ;;  %1668 = vpow2.f32 %v824_v23  ;;  %v567_v28 = vmax.f32 %v565_v18, %v566_v38  ;;  %v2215_v36 = vpop.eup %1658  ;;  %v860_v31 = vrot.slane %v859_v29, 1 }
 0x1b0   :  { %v894_v24 = vrot.slane %v893_v26, 2  ;;  %v1158_v33 = vrot.slane %v1157_v27, 4  ;;  %v2222_v61 = vadd.f32 %v1211_v59, %v1210_v22  ;;  %v600_v5 = vrot.slane %v2181_v45, 2 }
 0x1b1   :  { %v2220_v35 = vpop.eup %1660  ;;  %v744_v37 = vsub.f32 %v2166_v30, %v567_v28  ;;  %v659_v40 = vmax.f32 %v2176_v48, %v658_v41  ;;  %v861_v43 = vadd.f32 %v860_v31, %v859_v29  ;;  %v616_v49 = vrot.slane %v2213_v62, 4  ;;  %v2248_v28 = vpop.xlane.xlu1 %536 }
 0x1b2   :  { %2728 = vst [vmem:[#allocation6_spill] sm:$0xff] %v2220_v35  ;;  %2729 = vst [vmem:[#allocation7_spill] sm:$0xff] %v2222_v61  ;;  %v895_v57 = vadd.f32 %v894_v24, %v893_v26  ;;  %v1159_v44 = vadd.f32 %v1158_v33, %v1157_v27  ;;  %v601_v52 = vmax.f32 %v2181_v45, %v600_v5  ;;  %v580_v54 = vrot.slane %v2218_v34, 4  ;;  %v2250_v31 = vpop.xlane.xlu0 %518 }
 0x1b3   :  { %v1663_v50 = vpop.eup %1662  ;;  %v778_v51 = vmul.f32 1.442695, %v744_v37  ;;  %v660_v53 = vrot.slane %v659_v40, 2  ;;  %1670 = vrcp.f32 %v861_v43  ;;  %v617_v3 = vmax.f32 %v2213_v62, %v616_v49 }
 0x1b4   :  { %v2232_v19 = vpop.eup %1664  ;;  %v896_v30 = vrot.slane %v895_v57, 1  ;;  %v1160_v56 = vrot.slane %v1159_v44, 2  ;;  %v952_v60 = vrot.slane %v1663_v50, 4  ;;  %v1081_v41 = vmul.f32 %v1663_v50, %v1906_v13 }
 0x1b5   :  { %1672 = vpow2.f32 %v778_v51  ;;  %v602_v63 = vrot.slane %v601_v52, 1  ;;  %v661_v0 = vmax.f32 %v659_v40, %v660_v53  ;;  %v581_v7 = vmax.f32 %v2218_v34, %v580_v54  ;;  %v1774_v54 = vld [vmem:[%s2722_s0 + $0x10] sm:$0xff] }
 0x1b6   :  { %v897_v1 = vadd.f32 %v896_v30, %v895_v57  ;;  %v1161_v58 = vadd.f32 %v1160_v56, %v1159_v44  ;;  %v953_v2 = vadd.f32 %v1663_v50, %v952_v60  ;;  %v1227_v45 = vsel %vm62_vm0, %v1081_v41, 0.0 }
 0x1b7   :  { %v603_v42 = vmax.f32 %v601_v52, %v602_v63  ;;  %v662_v4 = vrot.slane %v661_v0, 1  ;;  %v1228_v13 = vrot.slane %v1227_v45, 4  ;;  %v618_v18 = vrot.slane %v617_v3, 2 }
 0x1b8   :  { %v2238_v10 = vpop.eup %1666  ;;  %1674 = vrcp.f32 %v897_v1  ;;  %v1162_v11 = vrot.slane %v1161_v58, 1  ;;  %v954_v47 = vrot.slane %v953_v2, 2  ;;  %v582_v9 = vrot.slane %v581_v7, 2 }
 0x1b9   :  { %2730 = vst [vmem:[#allocation8_spill] sm:$0xff] %v2238_v10  ;;  %v1669_v14 = vpop.eup %1668  ;;  %v750_v16 = vsub.f32 %v2174_v46, %v603_v42  ;;  %v663_v17 = vmax.f32 %v661_v0, %v662_v4  ;;  %v2243_v21 = vadd.f32 %v1228_v13, %v1227_v45  ;;  %v619_v29 = vmax.f32 %v617_v3, %v618_v18  ;;  %v2267_v13 = vpop.xlane.xlu1 %485 }
 0x1ba   :  { %v2241_v20 = vadd.f32 %v1162_v11, %v1161_v58  ;;  %v955_v12 = vadd.f32 %v954_v47, %v953_v2  ;;  %v988_v22 = vrot.slane %v1669_v14, 4  ;;  %v1087_v55 = vmul.f32 %v1669_v14, %v1960_v25 }
 0x1bb   :  { %v790_v23 = vmul.f32 1.442695, %v750_v16  ;;  %v760_v38 = vsub.f32 %v2176_v48, %v663_v17  ;;  %v583_v46 = vmax.f32 %v581_v7, %v582_v9  ;;  %v620_v37 = vrot.slane %v619_v29, 1 }
 0x1bc   :  { %v956_v26 = vrot.slane %v955_v12, 1  ;;  %v989_v27 = vadd.f32 %v1669_v14, %v988_v22  ;;  %v1269_v24 = vsel %vm62_vm0, %v1087_v55, 0.0  ;;  %v712_v49 = vrot.slane %v2248_v28, 4 }
 0x1bd   :  { %1676 = vpow2.f32 %v790_v23  ;;  %v810_v33 = vmul.f32 1.442695, %v760_v38  ;;  %v2253_v5 = vpop.eup %1670  ;;  %v1270_v48 = vrot.slane %v1269_v24, 4  ;;  %v584_v43 = vrot.slane %v583_v46, 1 }
 0x1be   :  { %v957_v25 = vadd.f32 %v956_v26, %v955_v12  ;;  %v990_v40 = vrot.slane %v989_v27, 2  ;;  %v621_v44 = vmax.f32 %v619_v29, %v620_v37  ;;  %v676_v50 = vrot.slane %v2250_v31, 4 }
 0x1bf   :  { %v1673_v57 = vpop.eup %1672  ;;  %1678 = vpow2.f32 %v810_v33  ;;  %v1271_v52 = vadd.f32 %v1270_v48, %v1269_v24  ;;  %v585_v60 = vmax.f32 %v583_v46, %v584_v43  ;;  %v713_v41 = vmax.f32 %v2248_v28, %v712_v49  ;;  %v1775_v24 = vld [vmem:[%s2722_s0 + $0x40] sm:$0xff] }
 0x1c0   :  { %1680 = vrcp.f32 %v957_v25  ;;  %v991_v51 = vadd.f32 %v990_v40, %v989_v27  ;;  %v850_v53 = vrot.slane %v1673_v57, 4  ;;  %v1064_v30 = vmul.f32 %v1774_v54, %v1673_v57 }
 0x1c1   :  { %v753_v56 = vsub.f32 %v2213_v62, %v621_v44  ;;  %v1272_v1 = vrot.slane %v1271_v52, 2  ;;  %v677_v2 = vmax.f32 %v2250_v31, %v676_v50  ;;  %v747_v42 = vsub.f32 %v2218_v34, %v585_v60 }
 0x1c2   :  { %v2262_v63 = vpop.eup %1674  ;;  %v992_v0 = vrot.slane %v991_v51, 1  ;;  %v851_v58 = vadd.f32 %v1673_v57, %v850_v53  ;;  %v1108_v3 = vsel %vm62_vm0, %v1064_v30, 0.0  ;;  %v714_v4 = vrot.slane %v713_v41, 2 }
 0x1c3   :  { %v796_v45 = vmul.f32 1.442695, %v753_v56  ;;  %v1273_v11 = vadd.f32 %v1272_v1, %v1271_v52  ;;  %v1109_v62 = vrot.slane %v1108_v3, 4  ;;  %v784_v14 = vmul.f32 1.442695, %v747_v42 }
 0x1c4   :  { %v993_v7 = vadd.f32 %v992_v0, %v991_v51  ;;  %v852_v47 = vrot.slane %v851_v58, 2  ;;  %v715_v16 = vmax.f32 %v713_v41, %v714_v4  ;;  %v678_v17 = vrot.slane %v677_v2, 2  ;;  %v1776_v51 = vld [vmem:[%s2722_s0 + $0x90] sm:$0xff]  ;;  %v2285_v41 = vpop.xlane.xlu0 %467 }
 0x1c5   :  { %1682 = vpow2.f32 %v796_v45  ;;  %v1274_v18 = vrot.slane %v1273_v11, 1  ;;  %v1110_v12 = vadd.f32 %v1109_v62, %v1108_v3  ;;  %v610_v34 = vrot.slane %v2267_v13, 4  ;;  %v2290_v62 = vpop.xlane.xlu1 %533 }
 0x1c6   :  { %1684 = vrcp.f32 %v993_v7  ;;  %v853_v9 = vadd.f32 %v852_v47, %v851_v58  ;;  %v716_v55 = vrot.slane %v715_v16, 1  ;;  %v679_v23 = vmax.f32 %v677_v2, %v678_v17 }
 0x1c7   :  { %v1677_v22 = vpop.eup %1676  ;;  %1686 = vpow2.f32 %v784_v14  ;;  %v2270_v38 = vadd.f32 %v1274_v18, %v1273_v11  ;;  %v1111_v26 = vrot.slane %v1110_v12, 2  ;;  %v611_v40 = vmax.f32 %v2267_v13, %v610_v34 }
 0x1c8   :  { %v854_v29 = vrot.slane %v853_v9, 1  ;;  %v886_v27 = vrot.slane %v1677_v22, 4  ;;  %v1070_v33 = vmul.f32 %v1775_v24, %v1677_v22  ;;  %v717_v37 = vmax.f32 %v715_v16, %v716_v55 }
 0x1c9   :  { %2731 = vst [vmem:[#allocation9_spill] sm:$0xff] %v2270_v38  ;;  %v1679_v46 = vpop.eup %1678  ;;  %v680_v25 = vrot.slane %v679_v23, 1  ;;  %v2278_v57 = vadd.f32 %v1111_v26, %v1110_v12  ;;  %v612_v2 = vrot.slane %v611_v40, 2  ;;  %v574_v47 = vrot.slane %v2285_v41, 4 }
 0x1ca   :  { %v2276_v48 = vpop.eup %1680  ;;  %v855_v43 = vadd.f32 %v854_v29, %v853_v9  ;;  %v887_v44 = vadd.f32 %v1677_v22, %v886_v27  ;;  %v946_v49 = vrot.slane %v1679_v46, 4  ;;  %v1150_v50 = vsel %vm62_vm0, %v1070_v33, 0.0  ;;  %v1777_v22 = vld [vmem:[%s2722_s0 + $0x58] sm:$0xff] }
 0x1cb   :  { %2732 = vst [vmem:[#allocation10_spill] sm:$0xff] %v2276_v48  ;;  %v1080_v52 = vmul.f32 %v1776_v51, %v1679_v46  ;;  %v769_v53 = vsub.f32 %v2248_v28, %v717_v37  ;;  %v681_v54 = vmax.f32 %v679_v23, %v680_v25  ;;  %v1151_v56 = vrot.slane %v1150_v50, 4  ;;  %v1778_v37 = vld [vmem:[%s2722_s0 + $0x28] sm:$0xff] }
 0x1cc   :  { %1688 = vrcp.f32 %v855_v43  ;;  %v888_v30 = vrot.slane %v887_v44, 2  ;;  %v947_v60 = vadd.f32 %v1679_v46, %v946_v49  ;;  %v613_v11 = vmax.f32 %v611_v40, %v612_v2 }
 0x1cd   :  { %v1220_v0 = vsel %vm62_vm0, %v1080_v52, 0.0  ;;  %v828_v1 = vmul.f32 1.442695, %v769_v53  ;;  %v763_v58 = vsub.f32 %v2250_v31, %v681_v54  ;;  %v1152_v45 = vadd.f32 %v1151_v56, %v1150_v50  ;;  %v2306_v53 = vpop.xlane.xlu0 %515  ;;  %v2308_v54 = vpop.xlane.xlu1 %494 }
 0x1ce   :  { %v889_v3 = vadd.f32 %v888_v30, %v887_v44  ;;  %v948_v42 = vrot.slane %v947_v60, 2  ;;  %v1221_v4 = vrot.slane %v1220_v0, 4  ;;  %v614_v23 = vrot.slane %v613_v11, 1 }
 0x1cf   :  { %v1683_v7 = vpop.eup %1682  ;;  %1690 = vpow2.f32 %v828_v1  ;;  %v816_v28 = vmul.f32 1.442695, %v763_v58  ;;  %v1153_v17 = vrot.slane %v1152_v45, 2 }
 0x1d0   :  { %v2292_v14 = vpop.eup %1684  ;;  %v890_v16 = vrot.slane %v889_v3, 1  ;;  %v949_v18 = vadd.f32 %v948_v42, %v947_v60  ;;  %v1222_v9 = vadd.f32 %v1221_v4, %v1220_v0  ;;  %v904_v12 = vrot.slane %v1683_v7, 4 }
 0x1d1   :  { %2733 = vst [vmem:[#allocation11_spill] sm:$0xff] %v2292_v14  ;;  %v1687_v31 = vpop.eup %1686  ;;  %v1073_v55 = vmul.f32 %v1777_v22, %v1683_v7  ;;  %1692 = vpow2.f32 %v816_v28  ;;  %v1154_v29 = vadd.f32 %v1153_v17, %v1152_v45  ;;  %v615_v0 = vmax.f32 %v613_v11, %v614_v23 }
 0x1d2   :  { %v891_v34 = vadd.f32 %v890_v16, %v889_v3  ;;  %v950_v26 = vrot.slane %v949_v18, 1  ;;  %v1223_v27 = vrot.slane %v1222_v9, 2  ;;  %v905_v46 = vadd.f32 %v1683_v7, %v904_v12 }
 0x1d3   :  { %v1171_v24 = vsel %vm62_vm0, %v1073_v55, 0.0  ;;  %v868_v33 = vrot.slane %v1687_v31, 4  ;;  %v1067_v25 = vmul.f32 %v1778_v37, %v1687_v31  ;;  %v1155_v40 = vrot.slane %v1154_v29, 1 }
 0x1d4   :  { %1694 = vrcp.f32 %v891_v34  ;;  %v951_v43 = vadd.f32 %v950_v26, %v949_v18  ;;  %v2301_v44 = vadd.f32 %v1223_v27, %v1222_v9  ;;  %v906_v49 = vrot.slane %v905_v46, 2 }
 0x1d5   :  { %v1172_v50 = vrot.slane %v1171_v24, 4  ;;  %v869_v51 = vadd.f32 %v1687_v31, %v868_v33  ;;  %v2304_v52 = vsel %vm62_vm0, %v1067_v25, 0.0  ;;  %v2312_v56 = vadd.f32 %v1155_v40, %v1154_v29  ;;  %v1779_v31 = vld [vmem:[%s2722_s0 + $0xd8] sm:$0xff] }
 0x1d6   :  { %v2310_v30 = vpop.eup %1688  ;;  %1696 = vrcp.f32 %v951_v43  ;;  %v907_v1 = vadd.f32 %v906_v49, %v905_v46  ;;  %v575_v3 = vmax.f32 %v2285_v41, %v574_v47  ;;  %v752_v45 = vsub.f32 %v2267_v13, %v615_v0  ;;  %v2337_v0 = vpop.xlane.xlu0 %473 }
 0x1d7   :  { %v2315_v58 = vadd.f32 %v1172_v50, %v1171_v24  ;;  %v870_v2 = vrot.slane %v869_v51, 2  ;;  %v706_v42 = vrot.slane %v2290_v62, 4  ;;  %v670_v4 = vrot.slane %v2306_v53, 4  ;;  %v1780_v24 = vld [vmem:[%s2722_s0 + $0xa8] sm:$0xff] }
 0x1d8   :  { %v628_v7 = vrot.slane %v2308_v54, 4  ;;  %v908_v16 = vrot.slane %v907_v1, 1  ;;  %v576_v11 = vrot.slane %v575_v3, 2  ;;  %v794_v12 = vmul.f32 1.442695, %v752_v45  ;;  %v2342_v45 = vpop.xlane.xlu1 %542 }
 0x1d9   :  { %v1691_v28 = vpop.eup %1690  ;;  %v871_v18 = vadd.f32 %v870_v2, %v869_v51  ;;  %v707_v13 = vmax.f32 %v2290_v62, %v706_v42  ;;  %v671_v29 = vmax.f32 %v2306_v53, %v670_v4 }
 0x1da   :  { %v1000_v9 = vrot.slane %v1691_v28, 4  ;;  %v1089_v47 = vmul.f32 %v1779_v31, %v1691_v28  ;;  %v909_v55 = vadd.f32 %v908_v16, %v907_v1  ;;  %v577_v34 = vmax.f32 %v575_v3, %v576_v11 }
 0x1db   :  { %v1693_v22 = vpop.eup %1692  ;;  %v872_v23 = vrot.slane %v871_v18, 1  ;;  %v708_v16 = vrot.slane %v707_v13, 2  ;;  %v629_v31 = vmax.f32 %v2308_v54, %v628_v7 }
 0x1dc   :  { %v1001_v26 = vadd.f32 %v1691_v28, %v1000_v9  ;;  %v1283_v27 = vsel %vm62_vm0, %v1089_v47, 0.0  ;;  %v964_v46 = vrot.slane %v1693_v22, 4  ;;  %v1083_v33 = vmul.f32 %v1780_v24, %v1693_v22 }
 0x1dd   :  { %1698 = vrcp.f32 %v909_v55  ;;  %v873_v37 = vadd.f32 %v872_v23, %v871_v18  ;;  %v1284_v25 = vrot.slane %v1283_v27, 4  ;;  %v578_v40 = vrot.slane %v577_v34, 1 }
 0x1de   :  { %v2332_v43 = vpop.eup %1694  ;;  %v1002_v49 = vrot.slane %v1001_v26, 2  ;;  %v965_v50 = vadd.f32 %v1693_v22, %v964_v46  ;;  %v2335_v51 = vsel %vm62_vm0, %v1083_v33, 0.0  ;;  %1700 = vpow2.f32 %v794_v12 }
 0x1df   :  { %1702 = vrcp.f32 %v873_v37  ;;  %v2339_v1 = vadd.f32 %v1284_v25, %v1283_v27  ;;  %v579_v3 = vmax.f32 %v577_v34, %v578_v40  ;;  %v672_v18 = vrot.slane %v671_v29, 2  ;;  %v2352_v40 = vpop.xlane.xlu0 %521 }
 0x1e0   :  { %v2344_v42 = vpop.eup %1696  ;;  %v1003_v4 = vadd.f32 %v1002_v49, %v1001_v26  ;;  %v966_v28 = vrot.slane %v965_v50, 2  ;;  %v586_v47 = vrot.slane %v2337_v0, 4  ;;  %v709_v55 = vmax.f32 %v707_v13, %v708_v16 }
 0x1e1   :  { %2734 = vst [vmem:[#allocation12_spill] sm:$0xff] %v2344_v42  ;;  %v746_v9 = vsub.f32 %v2285_v41, %v579_v3  ;;  %v673_v23 = vmax.f32 %v671_v29, %v672_v18  ;;  %v630_v27 = vrot.slane %v629_v31, 2  ;;  %v724_v26 = vrot.slane %v2342_v45, 4 }
 0x1e2   :  { %v1004_v12 = vrot.slane %v1003_v4, 1  ;;  %v967_v22 = vadd.f32 %v966_v28, %v965_v50  ;;  %v587_v46 = vmax.f32 %v2337_v0, %v586_v47  ;;  %v710_v37 = vrot.slane %v709_v55, 1  ;;  %v2355_v50 = vpop.xlane.xlu1 %491 }
 0x1e3   :  { %v782_v34 = vmul.f32 1.442695, %v746_v9  ;;  %v674_v25 = vrot.slane %v673_v23, 1  ;;  %v631_v41 = vmax.f32 %v629_v31, %v630_v27  ;;  %v725_v49 = vmax.f32 %v2342_v45, %v724_v26  ;;  %v2371_v2 = vpop.xlane.xlu0 %527 }
 0x1e4   :  { %v1005_v24 = vadd.f32 %v1004_v12, %v1003_v4  ;;  %v968_v33 = vrot.slane %v967_v22, 1  ;;  %v588_v7 = vrot.slane %v587_v46, 2  ;;  %v711_v29 = vmax.f32 %v709_v55, %v710_v37  ;;  %v1781_v55 = vld [vmem:[%s2722_s0 + $0x50] sm:$0xff] }
 0x1e5   :  { %1704 = vpow2.f32 %v782_v34  ;;  %v675_v3 = vmax.f32 %v673_v23, %v674_v25  ;;  %v632_v16 = vrot.slane %v631_v41, 1  ;;  %v726_v18 = vrot.slane %v725_v49, 2 }
 0x1e6   :  { %1706 = vrcp.f32 %v1005_v24  ;;  %v969_v13 = vadd.f32 %v968_v33, %v967_v22  ;;  %v589_v4 = vmax.f32 %v587_v46, %v588_v7  ;;  %v682_v9 = vrot.slane %v2352_v40, 4 }
 0x1e7   :  { %v2357_v28 = vpop.eup %1698  ;;  %v768_v31 = vsub.f32 %v2290_v62, %v711_v29  ;;  %v762_v12 = vsub.f32 %v2306_v53, %v675_v3  ;;  %v622_v34 = vrot.slane %v2355_v50, 4  ;;  %v633_v46 = vmax.f32 %v631_v41, %v632_v16 }
 0x1e8   :  { %2735 = vst [vmem:[#allocation13_spill] sm:$0xff] %v2357_v28  ;;  %v1701_v47 = vpop.eup %1700  ;;  %1708 = vrcp.f32 %v969_v13  ;;  %v590_v26 = vrot.slane %v589_v4, 1  ;;  %v727_v37 = vmax.f32 %v725_v49, %v726_v18  ;;  %v683_v25 = vmax.f32 %v2352_v40, %v682_v9 }
 0x1e9   :  { %v2363_v27 = vpop.eup %1702  ;;  %v898_v22 = vrot.slane %v1701_v47, 4  ;;  %v1072_v23 = vmul.f32 %v1781_v55, %v1701_v47  ;;  %v826_v24 = vmul.f32 1.442695, %v768_v31  ;;  %v814_v33 = vmul.f32 1.442695, %v762_v12 }
 0x1ea   :  { %v755_v7 = vsub.f32 %v2308_v54, %v633_v46  ;;  %v591_v13 = vmax.f32 %v589_v4, %v590_v26  ;;  %v728_v3 = vrot.slane %v727_v37, 1  ;;  %v684_v11 = vrot.slane %v683_v25, 2  ;;  %v1782_v26 = vld [vmem:[%s2722_s0 + $0x20] sm:$0xff] }
 0x1eb   :  { %v899_v62 = vadd.f32 %v1701_v47, %v898_v22  ;;  %v1164_v53 = vsel %vm62_vm0, %v1072_v23, 0.0  ;;  %1710 = vpow2.f32 %v826_v24  ;;  %v623_v47 = vmax.f32 %v2355_v50, %v622_v34 }
 0x1ec   :  { %v1165_v29 = vrot.slane %v1164_v53, 4  ;;  %1712 = vpow2.f32 %v814_v33  ;;  %v800_v41 = vmul.f32 1.442695, %v755_v7  ;;  %v748_v16 = vsub.f32 %v2337_v0, %v591_v13 }
 0x1ed   :  { %v900_v55 = vrot.slane %v899_v62, 2  ;;  %v729_v18 = vmax.f32 %v727_v37, %v728_v3  ;;  %v685_v9 = vmax.f32 %v683_v25, %v684_v11  ;;  %v694_v4 = vrot.slane %v2371_v2, 4  ;;  %v2382_v37 = vpop.xlane.xlu1 %539 }
 0x1ee   :  { %v1166_v49 = vadd.f32 %v1165_v29, %v1164_v53  ;;  %1714 = vpow2.f32 %v800_v41  ;;  %v786_v54 = vmul.f32 1.442695, %v748_v16  ;;  %v624_v33 = vrot.slane %v623_v47, 2  ;;  %v2389_v16 = vpop.xlane.xlu0 %476 }
 0x1ef   :  { %v1705_v31 = vpop.eup %1704  ;;  %v901_v12 = vadd.f32 %v900_v55, %v899_v62  ;;  %v771_v24 = vsub.f32 %v2342_v45, %v729_v18  ;;  %v686_v34 = vrot.slane %v685_v9, 1  ;;  %v695_v18 = vmax.f32 %v2371_v2, %v694_v4  ;;  %v1783_v4 = vld [vmem:[%s2722_s0 + $0xd0] sm:$0xff] }
 0x1f0   :  { %v2376_v22 = vpop.eup %1706  ;;  %v1167_v23 = vrot.slane %v1166_v49, 2  ;;  %v862_v46 = vrot.slane %v1705_v31, 4  ;;  %v1066_v0 = vmul.f32 %v1782_v26, %v1705_v31  ;;  %1716 = vpow2.f32 %v786_v54 }
 0x1f1   :  { %2736 = vst [vmem:[#allocation14_spill] sm:$0xff] %v2376_v22  ;;  %v902_v11 = vrot.slane %v901_v12, 1  ;;  %v832_v13 = vmul.f32 1.442695, %v771_v24  ;;  %v687_v55 = vmax.f32 %v685_v9, %v686_v34  ;;  %v625_v41 = vmax.f32 %v623_v47, %v624_v33  ;;  %v2410_v59 = vpop.xlane.xlu1 %500 }
 0x1f2   :  { %v2384_v25 = vpop.eup %1708  ;;  %v2386_v62 = vadd.f32 %v1167_v23, %v1166_v49  ;;  %v863_v53 = vadd.f32 %v1705_v31, %v862_v46  ;;  %v1122_v7 = vsel %vm62_vm0, %v1066_v0, 0.0  ;;  %v718_v54 = vrot.slane %v2382_v37, 4 }
 0x1f3   :  { %2737 = vst [vmem:[#allocation15_spill] sm:$0xff] %v2384_v25  ;;  %v903_v29 = vadd.f32 %v902_v11, %v901_v12  ;;  %v1123_v3 = vrot.slane %v1122_v7, 4  ;;  %1718 = vpow2.f32 %v832_v13  ;;  %v764_v49 = vsub.f32 %v2352_v40, %v687_v55 }
 0x1f4   :  { %v864_v45 = vrot.slane %v863_v53, 2  ;;  %v626_v31 = vrot.slane %v625_v41, 1  ;;  %v696_v12 = vrot.slane %v695_v18, 2  ;;  %v2397_v9 = vmax.f32 %v2382_v37, %v718_v54 }
 0x1f5   :  { %1720 = vrcp.f32 %v903_v29  ;;  %v2393_v26 = vadd.f32 %v1123_v3, %v1122_v7  ;;  %v1711_v23 = vpop.eup %1710  ;;  %v818_v34 = vmul.f32 1.442695, %v764_v49 }
 0x1f6   :  { %v865_v46 = vadd.f32 %v864_v45, %v863_v53  ;;  %v1713_v0 = vpop.eup %1712  ;;  %v994_v24 = vrot.slane %v1711_v23, 4  ;;  %v1088_v11 = vmul.f32 %v1783_v4, %v1711_v23  ;;  %v627_v33 = vmax.f32 %v625_v41, %v626_v31  ;;  %v1784_v53 = vld [vmem:[%s2722_s0 + $0xa0] sm:$0xff] }
 0x1f7   :  { %v958_v40 = vrot.slane %v1713_v0, 4  ;;  %v1082_v13 = vmul.f32 %v1784_v53, %v1713_v0  ;;  %v2406_v29 = vmax.f32 %v695_v18, %v696_v12  ;;  %1722 = vpow2.f32 %v818_v34  ;;  %v1785_v18 = vld [vmem:[%s2722_s0 + $0x68] sm:$0xff] }
 0x1f8   :  { %v866_v7 = vrot.slane %v865_v46, 1  ;;  %v1715_v3 = vpop.eup %1714  ;;  %v995_v55 = vadd.f32 %v1711_v23, %v994_v24  ;;  %v1276_v45 = vsel %vm62_vm0, %v1088_v11, 0.0  ;;  %v754_v54 = vsub.f32 %v2355_v50, %v627_v33 }
 0x1f9   :  { %v1277_v41 = vrot.slane %v1276_v45, 4  ;;  %v959_v31 = vadd.f32 %v1713_v0, %v958_v40  ;;  %v1234_v4 = vsel %vm62_vm0, %v1082_v13, 0.0  ;;  %v916_v53 = vrot.slane %v1715_v3, 4 }
 0x1fa   :  { %v867_v49 = vadd.f32 %v866_v7, %v865_v46  ;;  %v1717_v17 = vpop.eup %1716  ;;  %v996_v60 = vrot.slane %v995_v55, 2  ;;  %v1235_v32 = vrot.slane %v1234_v4, 4  ;;  %v1075_v23 = vmul.f32 %v1785_v18, %v1715_v3 }
 0x1fb   :  { %v1278_v12 = vadd.f32 %v1277_v41, %v1276_v45  ;;  %v960_v24 = vrot.slane %v959_v31, 2  ;;  %v874_v50 = vrot.slane %v1717_v17, 4  ;;  %v917_v46 = vadd.f32 %v1715_v3, %v916_v53 }
 0x1fc   :  { %1724 = vrcp.f32 %v867_v49  ;;  %v997_v11 = vadd.f32 %v996_v60, %v995_v55  ;;  %v2416_v34 = vadd.f32 %v1235_v32, %v1234_v4  ;;  %v2419_v0 = vsel %vm62_vm0, %v1075_v23, 0.0  ;;  %v1786_v60 = vld [vmem:[%s2722_s0 + $0x30] sm:$0xff]  ;;  %v2429_v55 = vpop.xlane.xlu1 %497  ;;  %v1787_v4 = vld [vmem:[%s2722_s0 + $0xe8] sm:$0xff] }
 0x1fd   :  { %v1719_v33 = vpop.eup %1718  ;;  %v1279_v7 = vrot.slane %v1278_v12, 2  ;;  %v961_v40 = vadd.f32 %v960_v24, %v959_v31  ;;  %v875_v47 = vadd.f32 %v1717_v17, %v874_v50  ;;  %v918_v49 = vrot.slane %v917_v46, 2 }
 0x1fe   :  { %v998_v18 = vrot.slane %v997_v11, 1  ;;  %v2427_v32 = vmul.f32 %v1786_v60, %v1717_v17  ;;  %v1012_v3 = vrot.slane %v1719_v33, 4  ;;  %v1091_v53 = vmul.f32 %v1787_v4, %v1719_v33 }
 0x1ff   :  { %v2422_v22 = vpop.eup %1720  ;;  %v2431_v45 = vadd.f32 %v1279_v7, %v1278_v12  ;;  %v962_v41 = vrot.slane %v961_v40, 1  ;;  %v876_v31 = vrot.slane %v875_v47, 2  ;;  %v919_v24 = vadd.f32 %v918_v49, %v917_v46 }
 0x200   :  { %2738 = vst [vmem:[#allocation16_spill] sm:$0xff] %v2422_v22  ;;  %v999_v23 = vadd.f32 %v998_v18, %v997_v11  ;;  %v1013_v50 = vadd.f32 %v1719_v33, %v1012_v3  ;;  %v798_v13 = vmul.f32 1.442695, %v754_v54  ;;  %v2437_v17 = vsel %vm62_vm0, %v1091_v53, 0.0  ;;  %v1788_v54 = vld [vmem:[%s2722_s0 + $0xb0] sm:$0xff]  ;;  %v2455_v53 = vpop.xlane.xlu0 %524 }
 0x201   :  { %v963_v14 = vadd.f32 %v962_v41, %v961_v40  ;;  %v877_v38 = vadd.f32 %v876_v31, %v875_v47  ;;  %v698_v60 = vrot.slane %v2406_v29, 1  ;;  %v1723_v12 = vpop.eup %1722  ;;  %v920_v7 = vrot.slane %v919_v24, 1  ;;  %v2447_v40 = vpop.xlane.xlu1 %545 }
 0x202   :  { %1726 = vrcp.f32 %v999_v23  ;;  %v1014_v25 = vrot.slane %v1013_v50, 2  ;;  %v970_v4 = vrot.slane %v1723_v12, 4  ;;  %v2444_v11 = vmul.f32 %v1788_v54, %v1723_v12 }
 0x203   :  { %1728 = vrcp.f32 %v963_v14  ;;  %v878_v42 = vrot.slane %v877_v38, 1  ;;  %v921_v47 = vadd.f32 %v920_v7, %v919_v24  ;;  %v699_v33 = vmax.f32 %v2406_v29, %v698_v60 }
 0x204   :  { %v1015_v46 = vadd.f32 %v1014_v25, %v1013_v50  ;;  %1730 = vpow2.f32 %v798_v13  ;;  %v971_v3 = vadd.f32 %v1723_v12, %v970_v4  ;;  %v720_v14 = vrot.slane %v2397_v9, 2 }
 0x205   :  { %v879_v49 = vadd.f32 %v878_v42, %v877_v38  ;;  %v2739_v41 = vrot.slane %v2389_v16, 4  ;;  %1732 = vrcp.f32 %v921_v47  ;;  %v766_v25 = vsub.f32 %v2371_v2, %v699_v33 }
 0x206   :  { %v2449_v18 = vpop.eup %1724  ;;  %v1016_v23 = vrot.slane %v1015_v46, 1  ;;  %v640_v29 = vrot.slane %v2410_v59, 4  ;;  %v972_v13 = vrot.slane %v971_v3, 2  ;;  %v721_v24 = vmax.f32 %v2397_v9, %v720_v14 }
 0x207   :  { %v593_v31 = vmax.f32 %v2389_v16, %v2739_v41  ;;  %1734 = vrcp.f32 %v879_v49  ;;  %v822_v50 = vmul.f32 1.442695, %v766_v25  ;;  %v688_v12 = vrot.slane %v2455_v53, 4  ;;  %v2465_v41 = vpop.xlane.xlu1 %548 }
 0x208   :  { %v1017_v42 = vadd.f32 %v1016_v23, %v1015_v46  ;;  %v641_v60 = vmax.f32 %v2410_v59, %v640_v29  ;;  %v973_v7 = vadd.f32 %v972_v13, %v971_v3  ;;  %v722_v4 = vrot.slane %v721_v24, 1 }
 0x209   :  { %v594_v38 = vrot.slane %v593_v31, 2  ;;  %v634_v47 = vrot.slane %v2429_v55, 4  ;;  %v689_v33 = vmax.f32 %v2455_v53, %v688_v12  ;;  %v730_v49 = vrot.slane %v2447_v40, 4 }
 0x20a   :  { %1736 = vrcp.f32 %v1017_v42  ;;  %v642_v2 = vrot.slane %v641_v60, 2  ;;  %v974_v9 = vrot.slane %v973_v7, 1  ;;  %v723_v46 = vmax.f32 %v721_v24, %v722_v4 }
 0x20b   :  { %v595_v54 = vmax.f32 %v593_v31, %v594_v38  ;;  %1738 = vpow2.f32 %v822_v50  ;;  %v690_v3 = vrot.slane %v689_v33, 2  ;;  %v635_v31 = vmax.f32 %v2429_v55, %v634_v47  ;;  %v1789_v47 = vld [vmem:[%s2722_s0 + $0x60] sm:$0xff] }
 0x20c   :  { %v2467_v23 = vpop.eup %1726  ;;  %v643_v25 = vmax.f32 %v641_v60, %v642_v2  ;;  %v731_v29 = vmax.f32 %v2447_v40, %v730_v49  ;;  %v975_v38 = vadd.f32 %v974_v9, %v973_v7  ;;  %v770_v42 = vsub.f32 %v2382_v37, %v723_v46 }
 0x20d   :  { %v596_v14 = vrot.slane %v595_v54, 1  ;;  %2740 = vst [vmem:[#allocation17_spill] sm:$0xff] %v2467_v23  ;;  %v2471_v13 = vpop.eup %1728  ;;  %v736_v48 = vrot.slane %v2465_v41, 4  ;;  %v691_v24 = vmax.f32 %v689_v33, %v690_v3  ;;  %v636_v4 = vrot.slane %v635_v31, 2 }
 0x20e   :  { %2741 = vst [vmem:[#allocation18_spill] sm:$0xff] %v2471_v13  ;;  %v1731_v35 = vpop.eup %1730  ;;  %v644_v50 = vrot.slane %v643_v25, 1  ;;  %v732_v6 = vrot.slane %v731_v29, 2  ;;  %1740 = vrcp.f32 %v975_v38  ;;  %v830_v49 = vmul.f32 1.442695, %v770_v42 }
 0x20f   :  { %v597_v12 = vmax.f32 %v595_v54, %v596_v14  ;;  %v910_v60 = vrot.slane %v1731_v35, 4  ;;  %v1074_v2 = vmul.f32 %v1789_v47, %v1731_v35  ;;  %v2478_v23 = vpop.eup %1732  ;;  %v692_v54 = vrot.slane %v691_v24, 1 }
 0x210   :  { %2742 = vst [vmem:[#allocation19_spill] sm:$0xff] %v2478_v23  ;;  %v645_v7 = vmax.f32 %v643_v25, %v644_v50  ;;  %v637_v9 = vmax.f32 %v635_v31, %v636_v4  ;;  %1742 = vpow2.f32 %v830_v49  ;;  %v733_v3 = vmax.f32 %v731_v29, %v732_v6 }
 0x211   :  { %v749_v37 = vsub.f32 %v2389_v16, %v597_v12  ;;  %v2481_v46 = vpop.eup %1734  ;;  %v911_v33 = vadd.f32 %v1731_v35, %v910_v60  ;;  %v1178_v14 = vsel %vm62_vm0, %v1074_v2, 0.0  ;;  %v693_v47 = vmax.f32 %v691_v24, %v692_v54  ;;  %v1790_v24 = vld [vmem:[%s2722_s0 + $0xc0] sm:$0xff] }
 0x212   :  { %v1179_v38 = vrot.slane %v1178_v14, 4  ;;  %v757_v10 = vsub.f32 %v2410_v59, %v645_v7  ;;  %v638_v61 = vrot.slane %v637_v9, 1  ;;  %v734_v23 = vrot.slane %v733_v3, 1 }
 0x213   :  { %v788_v13 = vmul.f32 1.442695, %v749_v37  ;;  %v912_v42 = vrot.slane %v911_v33, 2  ;;  %v737_v16 = vmax.f32 %v2465_v41, %v736_v48  ;;  %v765_v12 = vsub.f32 %v2455_v53, %v693_v47 }
 0x214   :  { %v2486_v25 = vpop.eup %1736  ;;  %v2488_v31 = vadd.f32 %v1179_v38, %v1178_v14  ;;  %v804_v35 = vmul.f32 1.442695, %v757_v10  ;;  %v639_v29 = vmax.f32 %v637_v9, %v638_v61  ;;  %v735_v4 = vmax.f32 %v733_v3, %v734_v23 }
 0x215   :  { %2743 = vst [vmem:[#allocation20_spill] sm:$0xff] %v2486_v25  ;;  %1744 = vpow2.f32 %v788_v13  ;;  %v1739_v50 = vpop.eup %1738  ;;  %v913_v6 = vadd.f32 %v912_v42, %v911_v33  ;;  %v738_v60 = vrot.slane %v737_v16, 2  ;;  %v820_v48 = vmul.f32 1.442695, %v765_v12 }
 0x216   :  { %v982_v59 = vrot.slane %v1739_v50, 4  ;;  %v1086_v2 = vmul.f32 %v1790_v24, %v1739_v50  ;;  %1746 = vpow2.f32 %v804_v35  ;;  %v756_v37 = vsub.f32 %v2429_v55, %v639_v29 }
 0x217   :  { %v914_v49 = vrot.slane %v913_v6, 1  ;;  %v772_v10 = vsub.f32 %v2447_v40, %v735_v4  ;;  %v739_v13 = vmax.f32 %v737_v16, %v738_v60  ;;  %1748 = vpow2.f32 %v820_v48 }
 0x218   :  { %v983_v53 = vadd.f32 %v1739_v50, %v982_v59  ;;  %v1262_v7 = vsel %vm62_vm0, %v1086_v2, 0.0  ;;  %v1113_v61 = vrot.slane %v2278_v57, 1  ;;  %v2498_v23 = vpop.eup %1740  ;;  %v802_v33 = vmul.f32 1.442695, %v756_v37 }
 0x219   :  { %2744 = vst [vmem:[#allocation21_spill] sm:$0xff] %v2498_v23  ;;  %v915_v54 = vadd.f32 %v914_v49, %v913_v6  ;;  %v1263_v9 = vrot.slane %v1262_v7, 4  ;;  %v834_v14 = vmul.f32 1.442695, %v772_v10  ;;  %v740_v38 = vrot.slane %v739_v13, 1 }
 0x21a   :  { %v984_v3 = vrot.slane %v983_v53, 2  ;;  %v2501_v47 = vadd.f32 %v1113_v61, %v2278_v57  ;;  %v2745_v55 = vrot.slane %v2210_v8, 2  ;;  %v1743_v42 = vpop.eup %1742  ;;  %v1125_v35 = vrot.slane %v2393_v26, 2  ;;  %v1791_v57 = vld [vmem:[%s2722_s0 + $0xe0] sm:$0xff] }
 0x21b   :  { %1750 = vrcp.f32 %v915_v54  ;;  %v1264_v16 = vadd.f32 %v1263_v9, %v1262_v7  ;;  %v2746_v12 = vrot.slane %v2304_v52, 4  ;;  %v1006_v29 = vrot.slane %v1743_v42, 4  ;;  %v1792_v7 = vld [vmem:[%s2722_s0 + $0x38] sm:$0xff] }
 0x21c   :  { %v1119_v40 = vadd.f32 %v2745_v55, %v2210_v8  ;;  %v985_v6 = vadd.f32 %v984_v3, %v983_v53  ;;  %v1090_v4 = vmul.f32 %v1791_v57, %v1743_v42  ;;  %1752 = vpow2.f32 %v802_v33 }
 0x21d   :  { %v2510_v50 = vadd.f32 %v2746_v12, %v2304_v52  ;;  %v1265_v60 = vrot.slane %v1264_v16, 2  ;;  %1754 = vpow2.f32 %v834_v14  ;;  %v741_v8 = vmax.f32 %v739_v13, %v740_v38 }
 0x21e   :  { %v1120_v59 = vrot.slane %v1119_v40, 1  ;;  %v986_v2 = vrot.slane %v985_v6, 1  ;;  %v1007_v48 = vadd.f32 %v1743_v42, %v1006_v29  ;;  %v1290_v49 = vsel %vm62_vm0, %v1090_v4, 0.0 }
 0x21f   :  { %v1745_v24 = vpop.eup %1744  ;;  %v1126_v52 = vadd.f32 %v1125_v35, %v2393_v26  ;;  %v1266_v37 = vadd.f32 %v1265_v60, %v1264_v16  ;;  %v1291_v10 = vrot.slane %v1290_v49, 4  ;;  %v773_v13 = vsub.f32 %v2465_v41, %v741_v8  ;;  %v1793_v35 = vld [vmem:[%s2722_s0 + $0x78] sm:$0xff] }
 0x220   :  { %v880_v53 = vrot.slane %v1745_v24, 4  ;;  %v1069_v61 = vmul.f32 %v1792_v7, %v1745_v24  ;;  %v1747_v54 = vpop.eup %1746  ;;  %v987_v9 = vadd.f32 %v986_v2, %v985_v6  ;;  %v1008_v33 = vrot.slane %v1007_v48, 2  ;;  %v1794_v60 = vld [vmem:[%s2722_s0 + $0xb8] sm:$0xff] }
 0x221   :  { %v2521_v14 = vadd.f32 %v1120_v59, %v1119_v40  ;;  %v1267_v3 = vrot.slane %v1266_v37, 1  ;;  %v2523_v38 = vadd.f32 %v1291_v10, %v1290_v49  ;;  %v928_v26 = vrot.slane %v1747_v54, 4  ;;  %v1749_v42 = vpop.eup %1748 }
 0x222   :  { %v881_v55 = vadd.f32 %v1745_v24, %v880_v53  ;;  %1756 = vrcp.f32 %v987_v9  ;;  %v1009_v16 = vadd.f32 %v1008_v33, %v1007_v48  ;;  %v2528_v12 = vmul.f32 %v1793_v35, %v1747_v54 }
 0x223   :  { %v836_v6 = vmul.f32 1.442695, %v773_v13  ;;  %v2530_v29 = vadd.f32 %v1267_v3, %v1266_v37  ;;  %v929_v40 = vadd.f32 %v1747_v54, %v928_v26  ;;  %v976_v57 = vrot.slane %v1749_v42, 4 }
 0x224   :  { %v882_v41 = vrot.slane %v881_v55, 2  ;;  %v1010_v4 = vrot.slane %v1009_v16, 1  ;;  %v2535_v8 = vmul.f32 %v1794_v60, %v1749_v42  ;;  %v1127_v59 = vrot.slane %v1126_v52, 1 }
 0x225   :  { %2747 = vst [vmem:[#allocation22_spill] sm:$0xff] %v2530_v29  ;;  %1758 = vpow2.f32 %v836_v6  ;;  %v2537_v24 = vpop.eup %1750  ;;  %v930_v48 = vrot.slane %v929_v40, 2  ;;  %v977_v49 = vadd.f32 %v1749_v42, %v976_v57  ;;  %v1132_v37 = vrot.slane %v2510_v50, 2 }
 0x226   :  { %2748 = vst [vmem:[#allocation23_spill] sm:$0xff] %v2537_v24  ;;  %v883_v2 = vadd.f32 %v882_v41, %v881_v55  ;;  %v1753_v10 = vpop.eup %1752  ;;  %v1011_v53 = vadd.f32 %v1010_v4, %v1009_v16  ;;  %v2540_v7 = vadd.f32 %v1127_v59, %v1126_v52  ;;  %v1136_v54 = vsel %vm62_vm0, %v2427_v32, 0.0  ;;  %v1795_v55 = vld [vmem:[%s2722_s0 + $0x70] sm:$0xff] }
 0x227   :  { %v1143_v9 = vsel %vm62_vm0, %v1069_v61, 0.0  ;;  %v1755_v33 = vpop.eup %1754  ;;  %v931_v3 = vadd.f32 %v930_v48, %v929_v40  ;;  %v978_v26 = vrot.slane %v977_v49, 2  ;;  %v922_v35 = vrot.slane %v1753_v10, 4  ;;  %v1796_v52 = vld [vmem:[%s2722_s0 + $0xf0] sm:$0xff] }
 0x228   :  { %v884_v13 = vrot.slane %v883_v2, 1  ;;  %1760 = vrcp.f32 %v1011_v53  ;;  %v1076_v42 = vmul.f32 %v1795_v55, %v1753_v10  ;;  %v1018_v6 = vrot.slane %v1755_v33, 4 }
 0x229   :  { %v2551_v16 = vmul.f32 %v1796_v52, %v1755_v33  ;;  %v932_v32 = vrot.slane %v931_v3, 1  ;;  %v979_v61 = vadd.f32 %v978_v26, %v977_v49  ;;  %v923_v41 = vadd.f32 %v1753_v10, %v922_v35  ;;  %v1797_v26 = vld [vmem:[%s2722_s0 + $0xf8] sm:$0xff]  ;;  %s1822_s0 = smov [#allocation2]  }
 0x22a   :  { %v885_v57 = vadd.f32 %v884_v13, %v883_v2  ;;  %v1019_v40 = vadd.f32 %v1755_v33, %v1018_v6  ;;  %v1133_v4 = vadd.f32 %v1132_v37, %v2510_v50  ;;  %v1137_v60 = vrot.slane %v1136_v54, 4  ;;  %s1430_s1 = sshll.u32 %s1822_s0, 4  ;;  %s1431_s1 = int_to_ptr.vmem [resolvable:$true] %s1430_s1 }
 0x22b   :  { %v1144_v59 = vrot.slane %v1143_v9, 4  ;;  %v980_v48 = vrot.slane %v979_v61, 1  ;;  %v924_v53 = vrot.slane %v923_v41, 2  ;;  %v933_v25 = vadd.f32 %v932_v32, %v931_v3  ;;  %s1798_s27 = scalar_lea.vmem %s1431_s1, 512  ;;  %p1803_p1 = scmp.lt.s32.totalorder %s1431_s1, %s1431_s1 }
 0x22c   :  { %1762 = vrcp.f32 %v885_v57  ;;  %v2554_v55 = vpop.eup %1756  ;;  %v1020_v29 = vrot.slane %v1019_v40, 2  ;;  %v1134_v23 = vrot.slane %v1133_v4, 1  ;;  %v1138_v24 = vadd.f32 %v1137_v60, %v1136_v54  ;;  %p1799_p0 = scmp.ne.s32.totalorder %s1431_s1, %s1798_s27  ;;  %p1804_p2 = scmp.lt.s32.totalorder %s1798_s27, %s1798_s27 }
 0x22d   :  { %v1145_v52 = vadd.f32 %v1144_v59, %v1143_v9  ;;  %v981_v28 = vadd.f32 %v980_v48, %v979_v61  ;;  %v925_v22 = vadd.f32 %v924_v53, %v923_v41  ;;  %1764 = vrcp.f32 %v933_v25 }
 0x22e   :  { %v1169_v2 = vrot.slane %v2386_v62, 1  ;;  %v1021_v10 = vadd.f32 %v1020_v29, %v1019_v40  ;;  %v2557_v50 = vadd.f32 %v1134_v23, %v1133_v4  ;;  %v1139_v37 = vrot.slane %v1138_v24, 2  ;;  %p1805_p3 = por %p1804_p2, %p1803_p1 }
 0x22f   :  { %v1759_v49 = vpop.eup %1758  ;;  %v1146_v33 = vrot.slane %v1145_v52, 2  ;;  %v926_v13 = vrot.slane %v925_v22, 1  ;;  %1766 = vrcp.f32 %v981_v28  ;;  %v2749_v32 = vrot.slane %v2315_v58, 2 }
 0x230   :  { %v1024_v3 = vrot.slane %v1759_v49, 4  ;;  %v2562_v35 = vmul.f32 %v1797_v26, %v1759_v49  ;;  %v1022_v54 = vrot.slane %v1021_v10, 1  ;;  %v1140_v9 = vadd.f32 %v1139_v37, %v1138_v24  ;;  %p1806_p4 = pnand %p1805_p3, %p1799_p0 }
 0x231   :  { %v1147_v25 = vadd.f32 %v1146_v33, %v1145_v52  ;;  %v2565_v6 = vadd.f32 %v1169_v2, %v2386_v62  ;;  %v927_v29 = vadd.f32 %v926_v13, %v925_v22  ;;  %v1175_v61 = vadd.f32 %v2749_v32, %v2315_v58 }
 0x232   :  { %v1025_v23 = vadd.f32 %v1759_v49, %v1024_v3  ;;  %v1181_v41 = vrot.slane %v2488_v31, 2  ;;  %v2571_v57 = vpop.eup %1760  ;;  %v1023_v40 = vadd.f32 %v1022_v54, %v1021_v10  ;;  %v1141_v4 = vrot.slane %v1140_v9, 1 }
 0x233   :  { %v1148_v60 = vrot.slane %v1147_v25, 1  ;;  %v2750_v28 = vrot.slane %v2419_v0, 4  ;;  %1768 = vrcp.f32 %v927_v29  ;;  %v1176_v59 = vrot.slane %v1175_v61, 1 }
 0x234   :  { %v1026_v62 = vrot.slane %v1025_v23, 2  ;;  %v1182_v22 = vadd.f32 %v1181_v41, %v2488_v31  ;;  %1770 = vrcp.f32 %v1023_v40  ;;  %v2577_v48 = vadd.f32 %v1141_v4, %v1140_v9 }
 0x235   :  { %v1187_v24 = vadd.f32 %v2750_v28, %v2419_v0  ;;  %v2579_v58 = vadd.f32 %v1148_v60, %v1147_v25  ;;  %v2583_v49 = vadd.f32 %v1176_v59, %v1175_v61  ;;  %v1192_v37 = vsel %vm62_vm0, %v1076_v42, 0.0 }
 0x236   :  { %v2581_v52 = vpop.eup %1762  ;;  %v1027_v2 = vadd.f32 %v1026_v62, %v1025_v23  ;;  %v1183_v10 = vrot.slane %v1182_v22, 1  ;;  %v1193_v33 = vrot.slane %v1192_v37, 4  ;;  %v1199_v13 = vsel %vm62_vm0, %v2528_v12, 0.0 }
 0x237   :  { %v1188_v53 = vrot.slane %v1187_v24, 2  ;;  %v1225_v31 = vrot.slane %v2301_v44, 1  ;;  %v2589_v3 = vpop.eup %1764  ;;  %v1200_v9 = vrot.slane %v1199_v13, 4  ;;  %v2751_v25 = vrot.slane %v2243_v21, 2 }
 0x238   :  { %v1028_v26 = vrot.slane %v1027_v2, 1  ;;  %v2591_v54 = vadd.f32 %v1183_v10, %v1182_v22  ;;  %v1194_v32 = vadd.f32 %v1193_v33, %v1192_v37  ;;  %v1237_v61 = vrot.slane %v2416_v34, 2 }
 0x239   :  { %v1189_v0 = vadd.f32 %v1188_v53, %v1187_v24  ;;  %v1231_v29 = vadd.f32 %v2751_v25, %v2243_v21  ;;  %v2597_v42 = vadd.f32 %v1225_v31, %v2301_v44  ;;  %v2600_v12 = vpop.eup %1766  ;;  %v1201_v40 = vadd.f32 %v1200_v9, %v1199_v13 }
 0x23a   :  { %v1029_v41 = vadd.f32 %v1028_v26, %v1027_v2  ;;  %v2752_v60 = vrot.slane %v2335_v51, 4  ;;  %v1195_v62 = vrot.slane %v1194_v32, 2  ;;  %v1238_v21 = vadd.f32 %v1237_v61, %v2416_v34 }
 0x23b   :  { %v1190_v23 = vrot.slane %v1189_v0, 1  ;;  %v1232_v4 = vrot.slane %v1231_v29, 1  ;;  %v1248_v44 = vsel %vm62_vm0, %v2444_v11, 0.0  ;;  %v1202_v59 = vrot.slane %v1201_v40, 2 }
 0x23c   :  { %v1243_v28 = vadd.f32 %v2752_v60, %v2335_v51  ;;  %1772 = vrcp.f32 %v1029_v41  ;;  %v1196_v2 = vadd.f32 %v1195_v62, %v1194_v32  ;;  %v1239_v10 = vrot.slane %v1238_v21, 1 }
 0x23d   :  { %v2605_v24 = vadd.f32 %v1190_v23, %v1189_v0  ;;  %v2610_v22 = vadd.f32 %v1232_v4, %v1231_v29  ;;  %v1249_v37 = vrot.slane %v1248_v44, 4  ;;  %v1255_v33 = vsel %vm62_vm0, %v2535_v8, 0.0  ;;  %v1769_v51 = vpop.eup %1768 }
 0x23e   :  { %v1244_v53 = vrot.slane %v1243_v28, 2  ;;  %v1203_v0 = vadd.f32 %v1202_v59, %v1201_v40  ;;  %v1256_v31 = vrot.slane %v1255_v33, 4  ;;  %v1281_v34 = vrot.slane %v2431_v45, 1  ;;  %v2615_v26 = vpop.eup %1770 }
 0x23f   :  { %v1197_v11 = vrot.slane %v1196_v2, 1  ;;  %v2617_v9 = vadd.f32 %v1239_v10, %v1238_v21  ;;  %v1250_v25 = vadd.f32 %v1249_v37, %v1248_v44  ;;  %v2753_v29 = vrot.slane %v2339_v1, 2 }
 0x240   :  { %v1245_v13 = vadd.f32 %v1244_v53, %v1243_v28  ;;  %v1204_v32 = vrot.slane %v1203_v0, 1  ;;  %v1257_v41 = vadd.f32 %v1256_v31, %v1255_v33  ;;  %v2623_v8 = vadd.f32 %v1281_v34, %v2431_v45 }
 0x241   :  { %v1287_v23 = vadd.f32 %v2753_v29, %v2339_v1  ;;  %v1198_v40 = vadd.f32 %v1197_v11, %v1196_v2  ;;  %v1251_v4 = vrot.slane %v1250_v25, 2  ;;  %v1293_v28 = vrot.slane %v2523_v38, 2 }
 0x242   :  { %v1246_v61 = vrot.slane %v1245_v13, 1  ;;  %v1205_v62 = vadd.f32 %v1204_v32, %v1203_v0  ;;  %v1258_v21 = vrot.slane %v1257_v41, 2  ;;  %v2754_v44 = vrot.slane %v2437_v17, 4 }
 0x243   :  { %v1288_v60 = vrot.slane %v1287_v23, 1  ;;  %v1252_v10 = vadd.f32 %v1251_v4, %v1250_v25  ;;  %v1294_v37 = vadd.f32 %v1293_v28, %v2523_v38  ;;  %v1304_v45 = vsel %vm62_vm0, %v2551_v16, 0.0 }
 0x244   :  { %v1247_v59 = vadd.f32 %v1246_v61, %v1245_v13  ;;  %v1299_v53 = vadd.f32 %v2754_v44, %v2437_v17  ;;  %v1259_v33 = vadd.f32 %v1258_v21, %v1257_v41  ;;  %v1305_v31 = vrot.slane %v1304_v45, 4 }
 0x245   :  { %v1289_v1 = vadd.f32 %v1288_v60, %v1287_v23  ;;  %v1311_v34 = vsel %vm62_vm0, %v2562_v35, 0.0  ;;  %v1253_v0 = vrot.slane %v1252_v10, 1  ;;  %v1295_v13 = vrot.slane %v1294_v37, 1 }
 0x246   :  { %v1300_v2 = vrot.slane %v1299_v53, 2  ;;  %v1312_v11 = vrot.slane %v1311_v34, 4  ;;  %v1318_v29 = vmul.f32 %v2232_v19, %v2203_v15  ;;  %v1773_v17 = vpop.eup %1772  ;;  %v1260_v25 = vrot.slane %v1259_v33, 1 }
 0x247   :  { %v1306_v32 = vadd.f32 %v1305_v31, %v1304_v45  ;;  %v1319_v38 = vmul.f32 %v2215_v36, %v2196_v39  ;;  %v1254_v16 = vadd.f32 %v1253_v0, %v1252_v10  ;;  %v1296_v61 = vadd.f32 %v1295_v13, %v1294_v37  ;;  %v2758_v37 = vld [vmem:[#allocation19_spill] sm:$0xff]  ;;  %v2764_v0 = vld [vmem:[#allocation10_spill] sm:$0xff] }
 0x248   :  { %v1301_v23 = vadd.f32 %v1300_v2, %v1299_v53  ;;  %v1313_v41 = vadd.f32 %v1312_v11, %v1311_v34  ;;  %v1320_v4 = vmul.f32 %v2310_v30, %v2501_v47  ;;  %v1261_v35 = vadd.f32 %v1260_v25, %v1259_v33  ;;  %v2760_v33 = vld [vmem:[#allocation8_spill] sm:$0xff]  ;;  %v2762_v2 = vld [vmem:[#allocation6_spill] sm:$0xff] }
 0x249   :  { %v1307_v28 = vrot.slane %v1306_v32, 2  ;;  %v1321_v21 = vmul.f32 %v2253_v5, %v2521_v14  ;;  %v1322_v19 = vmul.f32 %v2449_v18, %v2540_v7  ;;  %v1323_v44 = vmul.f32 %v2363_v27, %v2557_v50  ;;  %v2755_v18 = vld [vmem:[#allocation16_spill] sm:$0xff]  ;;  %v2756_v27 = vld [vmem:[#allocation13_spill] sm:$0xff]  ;;  %v2765_v13 = vld [vmem:[#allocation18_spill] sm:$0xff] }
 0x24a   :  { %v1302_v60 = vrot.slane %v1301_v23, 1  ;;  %v1314_v15 = vrot.slane %v1313_v41, 2  ;;  %v1324_v39 = vmul.f32 %v2481_v46, %v2577_v48  ;;  %v1325_v30 = vmul.f32 %v2581_v52, %v2579_v58  ;;  %v2757_v46 = vld [vmem:[#allocation23_spill] sm:$0xff] }
 0x24b   :  { %v1308_v53 = vadd.f32 %v1307_v28, %v1306_v32  ;;  %v1326_v47 = vmul.f32 %v2332_v43, %v2312_v56  ;;  %v1327_v5 = vmul.f32 %v2262_v63, %v2241_v20  ;;  %v1328_v14 = vmul.f32 %v2755_v18, %v2565_v6  ;;  %v2759_v43 = vld [vmem:[#allocation7_spill] sm:$0xff]  ;;  %v2761_v63 = vld [vmem:[#allocation5_spill] sm:$0xff] }
 0x24c   :  { %v1303_v36 = vadd.f32 %v1302_v60, %v1301_v23  ;;  %v1315_v10 = vadd.f32 %v1314_v15, %v1313_v41  ;;  %v1329_v7 = vmul.f32 %v2756_v27, %v2583_v49  ;;  %v1330_v48 = vmul.f32 %v2757_v46, %v2591_v54  ;;  %v2763_v49 = vld [vmem:[#allocation12_spill] sm:$0xff]  ;;  %v2768_v23 = vld [vmem:[#allocation22_spill] sm:$0xff]  ;;  %v2769_v41 = vld [vmem:[#allocation9_spill] sm:$0xff] }
 0x24d   :  { %v1309_v50 = vrot.slane %v1308_v53, 1  ;;  %v1331_v58 = vmul.f32 %v2758_v37, %v2605_v24  ;;  %v1332_v52 = vmul.f32 %v1769_v51, %v1198_v40  ;;  %v1333_v56 = vmul.f32 %v2589_v3, %v1205_v62  ;;  %v2766_v40 = vld [vmem:[#allocation15_spill] sm:$0xff]  ;;  %v2767_v3 = vld [vmem:[#allocation21_spill] sm:$0xff] }
 0x24e   :  { %v1316_v45 = vrot.slane %v1315_v10, 1  ;;  %v1334_v20 = vmul.f32 %v2760_v33, %v2759_v43  ;;  %v1335_v6 = vmul.f32 %v2762_v2, %v2761_v63  ;;  %v1336_v34 = vmul.f32 %v2763_v49, %v2597_v42  ;;  %v2770_v60 = vld [vmem:[#allocation11_spill] sm:$0xff]  ;;  %v2771_v42 = vld [vmem:[#allocation17_spill] sm:$0xff] }
 0x24f   :  { %v1310_v31 = vadd.f32 %v1309_v50, %v1308_v53  ;;  %v1337_v54 = vmul.f32 %v2764_v0, %v2610_v22  ;;  %v1338_v24 = vmul.f32 %v2765_v13, %v2617_v9  ;;  %v1339_v11 = vmul.f32 %v2766_v40, %v1247_v59  ;;  %v2772_v22 = vld [vmem:[#allocation14_spill] sm:$0xff] }
 0x250   :  { %v1317_v51 = vadd.f32 %v1316_v45, %v1315_v10  ;;  %v1340_v62 = vmul.f32 %v2767_v3, %v1254_v16  ;;  %v1341_v25 = vmul.f32 %v2600_v12, %v1261_v35  ;;  %v1342_v32 = vmul.f32 %v2554_v55, %v2768_v23  ;;  %v2773_v10 = vld [vmem:[#allocation20_spill] sm:$0xff] }
 0x251   :  { %v1343_v28 = vmul.f32 %v2770_v60, %v2769_v41  ;;  %v1344_v15 = vmul.f32 %v2771_v42, %v2623_v8  ;;  %v1345_v53 = vmul.f32 %v2772_v22, %v1289_v1  ;;  %v1346_v9 = vmul.f32 %v2571_v57, %v1296_v61 }
 0x252   :  { %v1347_v18 = vmul.f32 %v2773_v10, %v1303_v36  ;;  %v1348_v59 = vmul.f32 %v2615_v26, %v1310_v31  ;;  %v1349_v16 = vmul.f32 %v1773_v17, %v1317_v51  ;;  %v1383_v55 = vsel %vm1382_vm1, %v1319_v38, %v1318_v29 }
 0x253   :  { %v1385_v12 = vsel %vm1384_vm2, %v1320_v4, %v1383_v55  ;;  %v1396_v35 = vsel %vm1382_vm1, %v1327_v5, %v1326_v47  ;;  %v1403_v8 = vsel %vm1382_vm1, %v1335_v6, %v1334_v20  ;;  %v1410_v27 = vsel %vm1382_vm1, %v1343_v28, %v1342_v32 }
 0x254   :  { %v1387_v1 = vsel %vm1386_vm3, %v1321_v21, %v1385_v12  ;;  %v1397_v57 = vsel %vm1384_vm2, %v1328_v14, %v1396_v35  ;;  %v1404_v61 = vsel %vm1384_vm2, %v1336_v34, %v1403_v8  ;;  %v1411_v36 = vsel %vm1384_vm2, %v1344_v15, %v1410_v27 }
 0x255   :  { %v1389_v26 = vsel %vm1388_vm4, %v1322_v19, %v1387_v1  ;;  %v1398_v17 = vsel %vm1386_vm3, %v1329_v7, %v1397_v57  ;;  %v1405_v50 = vsel %vm1386_vm3, %v1337_v54, %v1404_v61  ;;  %v1412_v29 = vsel %vm1386_vm3, %v1345_v53, %v1411_v36 }
 0x256   :  { %v1391_v38 = vsel %vm1390_vm5, %v1323_v44, %v1389_v26  ;;  %v1399_v4 = vsel %vm1388_vm4, %v1330_v48, %v1398_v17  ;;  %v1406_v47 = vsel %vm1388_vm4, %v1338_v24, %v1405_v50  ;;  %v1413_v21 = vsel %vm1388_vm4, %v1346_v9, %v1412_v29 }
 0x257   :  { %v1393_v5 = vsel %vm1392_vm6, %v1324_v39, %v1391_v38  ;;  %v1400_v19 = vsel %vm1390_vm5, %v1331_v58, %v1399_v4  ;;  %v1407_v14 = vsel %vm1390_vm5, %v1339_v11, %v1406_v47  ;;  %v1414_v7 = vsel %vm1390_vm5, %v1347_v18, %v1413_v21 }
 0x258   :  { %v1395_v46 = vsel %vm1394_vm7, %v1325_v30, %v1393_v5  ;;  %v1401_v37 = vsel %vm1392_vm6, %v1332_v52, %v1400_v19  ;;  %v1408_v44 = vsel %vm1392_vm6, %v1340_v62, %v1407_v14  ;;  %v1415_v48 = vsel %vm1392_vm6, %v1348_v59, %v1414_v7 }
 0x259   :  { %v1402_v45 = vsel %vm1394_vm7, %v1333_v56, %v1401_v37  ;;  %v1409_v43 = vsel %vm1394_vm7, %v1341_v25, %v1408_v44  ;;  %v1416_v39 = vsel %vm1394_vm7, %v1349_v16, %v1415_v48  ;;  %1421 = vst.msk [vmem:[#allocation2] sm:$0xff] %vm62_vm0, %v1395_v46 }
 0x25a   :  { %1422 = vst.msk [vmem:[#allocation2 + $0x8] sm:$0xff] %vm62_vm0, %v1402_v45  ;;  %1423 = vst.msk [vmem:[#allocation2 + $0x10] sm:$0xff] %vm62_vm0, %v1409_v43 }
 0x25b   :  { %1424 = vst.msk [vmem:[#allocation2 + $0x18] sm:$0xff] %vm62_vm0, %v1416_v39 }
 0x25c   :  { %1809 = shalt.err (!%p1806_p4)
}
 0x25d   :  { %s1810_s30 = scalar_lea.hbm %s2726_s4, 512 }
 0x25e   :  { %p1811_p5 = scmp.ne.s32.totalorder %s2726_s4, %s1810_s30  ;;  %p1814_p6 = scmp.lt.u32.totalorder %s1810_s30, %s2726_s4 }
 0x260   :  { %p1816_p7 = pnand %p1814_p6, %p1811_p5 }
 0x262   :  { %1819 = shalt.err (!%p1816_p7)
}
 0x263   :  { %s1823_s8 = smov 128   ;;  %s1824_s3 = smov 8  }
 0x264   :  { %1436 = dma.vmem_to_hbm [thread:$0]  %s1431_s1, 512, %s2726_s4, [#allocation3], %s1823_s8, %s1823_s8, %s1824_s3  }
 0x265   :  { %1820 = dma.done.wait [#allocation3], 512  }
 0x266   :  { %1821 = vsyncadd [#allocation3], 4294966784 }
 0x267   :  { %1440 = vsyncpa [#allocation3], 1 }

</bundles_post_ra>
